<compile_context>
chip_gen: v7x
topology: tpu7x:2x2x1
jax: 0.10.0
libtpu: 0.0.40
codegen_flags: <defaults>
</compile_context>

<pallas_src>
import math
import functools

import jax
import jax.numpy as jnp
from jax.experimental import pallas as pl
from jax.experimental.pallas import tpu as pltpu


def _layernorm(x, gamma, beta, eps=1e-5):
    # x: (T, D) f32, gamma/beta: (1, D).  Matches torch.nn.LayerNorm (biased variance).
    mean = jnp.mean(x, axis=-1, keepdims=True)
    var = jnp.mean((x - mean) ** 2, axis=-1, keepdims=True)
    inv = jax.lax.rsqrt(var + eps)
    return (x - mean) * inv * gamma + beta


def encoder_layer_kernel(x_tile_ref, x_hbm_ref,
                         wq_ref, bq_ref,          # Wq / bq pre-scaled by 1/sqrt(d_k)
                         wkv_ref, bkv_ref,        # fused [Wk | Wv]: (D, 2D) bf16, (1, 2D) f32
                         wo_ref, bo_ref,
                         g1_ref, be1_ref,
                         w1_ref, b1_ref, w2_ref, b2_ref,
                         g2_ref, be2_ref,
                         out_ref,
                         k_s, v_s,                # (S, D) bf16 lane-dense K / V scratch
                         o_s,                     # (block_q, D) bf16 per-head output staging
                         xbuf, sem,               # (2, kv_chunk, D) x chunk double buffer + DMA sems
                         *, num_heads, d_k, kv_chunk, seq_len):
    b = pl.program_id(0)
    qi = pl.program_id(1)
    d_model = num_heads * d_k
    bf16 = jnp.bfloat16

    # ---- once per batch element: chunked, double-buffered fused K/V projection ----
    # x rows are streamed from HBM (memory_space=ANY) so x residency stays O(tq*D),
    # and the (chunk, 2D) f32 temporary stays small (no monolithic (S, 2D) intermediate).
    @pl.when(qi == 0)
    def _():
        n_chunks = seq_len // kv_chunk          # static

        def kv_dma(c, slot):
            return pltpu.make_async_copy(
                x_hbm_ref.at[b, pl.ds(c * kv_chunk, kv_chunk), :],
                xbuf.at[slot], sem.at[slot])

        kv_dma(0, 0).start()
        for c in range(n_chunks):               # static trip count
            slot = c & 1
            if c + 1 < n_chunks:
                kv_dma(c + 1, 1 - slot).start()
            kv_dma(c, slot).wait()
            xc = xbuf[slot].astype(bf16)                                 # (ck, D)
            kv = jnp.dot(xc, wkv_ref[...],
                         preferred_element_type=jnp.float32) + bkv_ref[...]   # (ck, 2D) f32
            rows = pl.ds(c * kv_chunk, kv_chunk)
            k_s[rows, :] = kv[:, :d_model].astype(bf16)                  # lane-dense stores
            v_s[rows, :] = kv[:, d_model:].astype(bf16)

    # ---- per query tile ----
    xq = x_tile_ref[0]                                                   # (TQ, D) f32 residual
    # Q projection; the 1/sqrt(d_k) softmax scale is folded into Wq/bq in the wrapper.
    qtb = (jnp.dot(xq.astype(bf16), wq_ref[...],
                   preferred_element_type=jnp.float32) + bq_ref[...]).astype(bf16)

    # Per-head attention.  Head outputs go into the bf16 staging scratch (bounds the
    # per-head (TQ,S) temporaries' live ranges); combine_heads + W_o is then ONE matmul
    # with K=d_model (full MXU) instead of H partial K=d_k matmuls.
    for h in range(num_heads):                                           # static unroll, small H
        lo = h * d_k
        qh = qtb[:, lo:lo + d_k]                                         # (TQ, d_k) bf16
        s = jax.lax.dot_general(qh, k_s[:, lo:lo + d_k],                 # q·kᵀ, no transpose copy
                                dimension_numbers=(((1,), (1,)), ((), ())),
                                preferred_element_type=jnp.float32)      # (TQ, S) f32
        s = s - jnp.max(s, axis=-1, keepdims=True)                       # mask is None
        p = jnp.exp(s)
        # approx reciprocal: ~1e-3 rel error, fine for bf16-level parity; use approx=False
        # if bit-level parity with the PyTorch reference is required.
        p = p * pl.reciprocal(jnp.sum(p, axis=-1, keepdims=True), approx=True)
        o = jnp.dot(p.astype(bf16), v_s[:, lo:lo + d_k],
                    preferred_element_type=jnp.float32)                  # (TQ, d_k) f32
        o_s[:, lo:lo + d_k] = o.astype(bf16)

    attn = jnp.dot(o_s[...], wo_ref[...],
                   preferred_element_type=jnp.float32) + bo_ref[...]     # single K=D matmul

    # ---- residual + LayerNorm 1 (dropout is identity in eval mode) ----
    x1 = _layernorm(xq + attn, g1_ref[...], be1_ref[...])

    # ---- position-wise feed forward (bf16 operands + bf16 hidden, f32 accumulation) ----
    hdn = (jnp.dot(x1.astype(bf16), w1_ref[...],
                   preferred_element_type=jnp.float32) + b1_ref[...]).astype(bf16)
    hdn = jnp.maximum(hdn, 0.0)
    ff = jnp.dot(hdn, w2_ref[...],
                 preferred_element_type=jnp.float32) + b2_ref[...]

    # ---- residual + LayerNorm 2, bf16 writeback ----
    out_ref[0] = _layernorm(x1 + ff, g2_ref[...], be2_ref[...]).astype(out_ref.dtype)


def _vmem_limit_bytes():
    # Generation-aware: ~100 MiB on v5e/v6e (128 MiB physical), ~56 MiB on v7x (64 MiB).
    try:
        cap = int(pltpu.get_tpu_info().vmem_capacity_bytes)
        return max(32 * 1024 * 1024, min(100 * 1024 * 1024, cap - 8 * 1024 * 1024))
    except Exception:
        return 48 * 1024 * 1024   # conservative, known-good fallback


def encoder_layer(x, params, *, num_heads, block_q=256, kv_chunk=256,
                  out_dtype=jnp.bfloat16):
    """Pallas TPU forward of EncoderLayer (eval mode, mask=None).

    block_q: keep >=256 on v6e/v7x and >=128 on v5e for real shapes (full MXU occupancy);
    pass out_dtype=jnp.float32 for exact PyTorch output-dtype parity (bf16 halves writeback).
    """
    B, S, D = x.shape
    assert D % num_heads == 0, "d_model must be divisible by num_heads"
    d_k = D // num_heads

    tq = min(block_q, S)
    assert S % tq == 0 and tq % 8 == 0, "seq length must be divisible by the query tile"
    n_q = S // tq

    ck = min(kv_chunk, S)
    assert S % ck == 0 and ck % 8 == 0, "seq length must be divisible by the K/V chunk"

    scale = 1.0 / math.sqrt(d_k)
    bf16, f32 = jnp.bfloat16, jnp.float32

    # Weight preprocessing (runs once, outside the kernel):
    #  * matmul operands in bf16, f32 accumulation inside the kernel,
    #  * 1/sqrt(d_k) folded into Wq / bq,
    #  * K and V projections fused into a single (D, 2D) weight / (1, 2D) bias.
    wq = (params["wq"].astype(f32) * scale).astype(bf16)
    bq = params["bq"].astype(f32) * scale
    wkv = jnp.concatenate([params["wk"], params["wv"]], axis=1).astype(bf16)
    bkv = jnp.concatenate([params["bk"], params["bv"]], axis=1).astype(f32)
    wo, bo = params["wo"].astype(bf16), params["bo"].astype(f32)
    w1, b1 = params["w1"].astype(bf16), params["b1"].astype(f32)
    w2, b2 = params["w2"].astype(bf16), params["b2"].astype(f32)
    g1, be1 = params["g1"].astype(f32), params["be1"].astype(f32)
    g2, be2 = params["g2"].astype(f32), params["be2"].astype(f32)

    kernel = functools.partial(encoder_layer_kernel, num_heads=num_heads, d_k=d_k,
                               kv_chunk=ck, seq_len=S)
    vmem_limit = _vmem_limit_bytes()
    weights = (wq, bq, wkv, bkv, wo, bo, g1, be1, w1, b1, w2, b2, g2, be2)

    def build_and_call(single_buffer_weights):
        # Constant-index weight blocks: single-buffered (double-buffering them is pure
        # VMEM waste since their index_map never changes).
        def wspec(arr):
            zeros = (0,) * arr.ndim
            if single_buffer_weights:
                return pl.BlockSpec(arr.shape, lambda b, q: zeros,
                                    pipeline_mode=pl.Buffered(1))
            return pl.BlockSpec(arr.shape, lambda b, q: zeros)

        in_specs = [
            # x (Q / residual path): streamed per query tile -> O(tq*D) residency.
            pl.BlockSpec((1, tq, D), lambda b, q: (b, q, 0)),
            # x (K/V projection path): raw HBM ref, chunk-DMA'd manually at qi==0.
            pl.BlockSpec(memory_space=pl.ANY),
        ] + [wspec(a) for a in weights]

        return pl.pallas_call(
            kernel,
            out_shape=jax.ShapeDtypeStruct((B, S, D), out_dtype),
            grid_spec=pltpu.PrefetchScalarGridSpec(
                num_scalar_prefetch=0,
                grid=(B, n_q),                      # batch outer, query tile inner
                in_specs=in_specs,
                out_specs=pl.BlockSpec((1, tq, D), lambda b, q: (b, q, 0)),
                scratch_shapes=[
                    pltpu.VMEM((S, D), bf16),       # K, lane-dense
                    pltpu.VMEM((S, D), bf16),       # V, lane-dense
                    pltpu.VMEM((tq, D), bf16),      # per-head output staging
                    pltpu.VMEM((2, ck, D), x.dtype),  # x chunk double buffer
                    pltpu.SemaphoreType.DMA((2,)),
                ],
            ),
            compiler_params=pltpu.CompilerParams(
                # batch axis is independent (megacore); the q-tile axis carries the
                # per-batch K/V scratch and must stay sequential.
                # TODO(synk): for B==1 on v7x add a core-level split of the q-tile range
                # (each core recomputing its own K/V) to use both TensorCores.
                dimension_semantics=("parallel", "arbitrary"),
                vmem_limit_bytes=vmem_limit,
            ),
        )(x, x, *weights)

    try:
        return build_and_call(True)
    except Exception:
        # pipeline_mode=pl.Buffered(1) unsupported in this JAX version: fall back to the
        # default (double-buffered) weight blocks; everything else is unchanged.
        return build_and_call(False)


def encoder_layer_ref(x, params, *, num_heads):
    """Pure-JAX f32 reference (mirrors PyTorch EncoderLayer.forward, eval mode)."""
    B, S, D = x.shape
    d_k = D // num_heads

    def lin(t, w, b):
        return jnp.einsum("bsd,de->bse", t, w) + b[0]

    q = lin(x, params["wq"], params["bq"]).reshape(B, S, num_heads, d_k).transpose(0, 2, 1, 3)
    k = lin(x, params["wk"], params["bk"]).reshape(B, S, num_heads, d_k).transpose(0, 2, 1, 3)
    v = lin(x, params["wv"], params["bv"]).reshape(B, S, num_heads, d_k).transpose(0, 2, 1, 3)
    s = jnp.einsum("bhsd,bhtd->bhst", q, k) / math.sqrt(d_k)
    p = jax.nn.softmax(s, axis=-1)
    a = jnp.einsum("bhst,bhtd->bhsd", p, v).transpose(0, 2, 1, 3).reshape(B, S, D)
    a = lin(a, params["wo"], params["bo"])

    def ln(t, g, b, eps=1e-5):
        m = t.mean(-1, keepdims=True)
        var = ((t - m) ** 2).mean(-1, keepdims=True)
        return (t - m) / jnp.sqrt(var + eps) * g[0] + b[0]

    x1 = ln(x + a, params["g1"], params["be1"])
    h = jax.nn.relu(lin(x1, params["w1"], params["b1"]))
    f = lin(h, params["w2"], params["b2"])
    return ln(x1 + f, params["g2"], params["be2"])


def make_params(key, d_model, d_ff):
    ks = jax.random.split(key, 12)
    n = lambda k, shape: (0.1 * jax.random.normal(k, shape)).astype(jnp.float32)
    return {
        "wq": n(ks[0], (d_model, d_model)), "bq": n(ks[1], (1, d_model)),
        "wk": n(ks[2], (d_model, d_model)), "bk": n(ks[3], (1, d_model)),
        "wv": n(ks[4], (d_model, d_model)), "bv": n(ks[5], (1, d_model)),
        "wo": n(ks[6], (d_model, d_model)), "bo": n(ks[7], (1, d_model)),
        "g1": jnp.ones((1, d_model), jnp.float32), "be1": jnp.zeros((1, d_model), jnp.float32),
        "w1": n(ks[8], (d_model, d_ff)), "b1": n(ks[9], (1, d_ff)),
        "w2": n(ks[10], (d_ff, d_model)), "b2": n(ks[11], (1, d_model)),
        "g2": jnp.ones((1, d_model), jnp.float32), "be2": jnp.zeros((1, d_model), jnp.float32),
    }


if __name__ == "__main__":
    # Small but lane-friendly shapes (D multiple of 128).  block_q=32 / kv_chunk=32 are
    # TEST values chosen to exercise query tiling and the chunked K/V DMA loop; for real
    # shapes keep the defaults (block_q>=256 on v6e/v7x, >=128 on v5e; kv_chunk ~256).
    B, S, d_model, num_heads, d_ff = 2, 64, 128, 4, 256
    key = jax.random.PRNGKey(0)
    kx, kp = jax.random.split(key)
    x = jax.random.normal(kx, (B, S, d_model), dtype=jnp.float32)
    params = make_params(kp, d_model, d_ff)

    out = encoder_layer(x, params, num_heads=num_heads, block_q=32, kv_chunk=32)
    out = jax.block_until_ready(out)

    ref = encoder_layer_ref(x, params, num_heads=num_heads)
    assert out.shape == (B, S, d_model)
    # Tolerance accounts for bf16 matmul operands / bf16 output (f32 accumulation) and the
    # approx reciprocal; structural errors (wrong bias / head mixing / LN) would be O(1).
    assert jnp.allclose(out.astype(jnp.float32), ref, atol=1e-1, rtol=1e-1), "mismatch vs reference"
    print("KERNEL_OK")
</pallas_src>

<mosaic_0001>
module attributes {stable_mosaic.version = 11 : i64} {
  func.func @encoder_layer_kernel(%arg0: i32, %arg1: i32, %arg2: memref<1x32x128xf32, #tpu.memory_space<vmem>>, %arg3: memref<2x64x128xf32, #tpu.memory_space<any>>, %arg4: memref<128x128xbf16, #tpu.memory_space<vmem>>, %arg5: memref<1x128xf32, #tpu.memory_space<vmem>>, %arg6: memref<128x256xbf16, #tpu.memory_space<vmem>>, %arg7: memref<1x256xf32, #tpu.memory_space<vmem>>, %arg8: memref<128x128xbf16, #tpu.memory_space<vmem>>, %arg9: memref<1x128xf32, #tpu.memory_space<vmem>>, %arg10: memref<1x128xf32, #tpu.memory_space<vmem>>, %arg11: memref<1x128xf32, #tpu.memory_space<vmem>>, %arg12: memref<128x256xbf16, #tpu.memory_space<vmem>>, %arg13: memref<1x256xf32, #tpu.memory_space<vmem>>, %arg14: memref<256x128xbf16, #tpu.memory_space<vmem>>, %arg15: memref<1x128xf32, #tpu.memory_space<vmem>>, %arg16: memref<1x128xf32, #tpu.memory_space<vmem>>, %arg17: memref<1x128xf32, #tpu.memory_space<vmem>>, %arg18: memref<1x32x128xbf16, #tpu.memory_space<vmem>>, %arg19: memref<64x128xbf16, #tpu.memory_space<vmem>>, %arg20: memref<64x128xbf16, #tpu.memory_space<vmem>>, %arg21: memref<32x128xbf16, #tpu.memory_space<vmem>>, %arg22: memref<2x32x128xf32, #tpu.memory_space<vmem>>, %arg23: memref<2x!tpu.dma_semaphore, #tpu.memory_space<semaphore_mem>>) attributes {dimension_semantics = [#tpu.dimension_semantics<parallel>, #tpu.dimension_semantics<arbitrary>], iteration_bounds = array<i64: 2, 2>, scalar_prefetch = 0 : i64, scratch_operands = 5 : i64, tpu.core_type = #tpu.core_type<tc>, window_params = [{transform_indices = @transform_0, window_bounds = array<i64: 1, 32, 128>}, {}, {pipeline_mode = #tpu.pipeline_mode<synchronous>, transform_indices = @transform_2, window_bounds = array<i64: 128, 128>}, {pipeline_mode = #tpu.pipeline_mode<synchronous>, transform_indices = @transform_3, window_bounds = array<i64: 1, 128>}, {pipeline_mode = #tpu.pipeline_mode<synchronous>, transform_indices = @transform_4, window_bounds = array<i64: 128, 256>}, {pipeline_mode = #tpu.pipeline_mode<synchronous>, transform_indices = @transform_5, window_bounds = array<i64: 1, 256>}, {pipeline_mode = #tpu.pipeline_mode<synchronous>, transform_indices = @transform_6, window_bounds = array<i64: 128, 128>}, {pipeline_mode = #tpu.pipeline_mode<synchronous>, transform_indices = @transform_7, window_bounds = array<i64: 1, 128>}, {pipeline_mode = #tpu.pipeline_mode<synchronous>, transform_indices = @transform_8, window_bounds = array<i64: 1, 128>}, {pipeline_mode = #tpu.pipeline_mode<synchronous>, transform_indices = @transform_9, window_bounds = array<i64: 1, 128>}, {pipeline_mode = #tpu.pipeline_mode<synchronous>, transform_indices = @transform_10, window_bounds = array<i64: 128, 256>}, {pipeline_mode = #tpu.pipeline_mode<synchronous>, transform_indices = @transform_11, window_bounds = array<i64: 1, 256>}, {pipeline_mode = #tpu.pipeline_mode<synchronous>, transform_indices = @transform_12, window_bounds = array<i64: 256, 128>}, {pipeline_mode = #tpu.pipeline_mode<synchronous>, transform_indices = @transform_13, window_bounds = array<i64: 1, 128>}, {pipeline_mode = #tpu.pipeline_mode<synchronous>, transform_indices = @transform_14, window_bounds = array<i64: 1, 128>}, {pipeline_mode = #tpu.pipeline_mode<synchronous>, transform_indices = @transform_15, window_bounds = array<i64: 1, 128>}, {transform_indices = @transform_16, window_bounds = array<i64: 1, 32, 128>}]} {
    %c0_i32 = arith.constant 0 : i32
    %0 = arith.cmpi eq, %arg1, %c0_i32 : i32
    %1 = arith.extui %0 : i1 to i32
    %c0_i32_0 = arith.constant 0 : i32
    %2 = arith.cmpi ne, %1, %c0_i32_0 : i32
    scf.if %2 {
      %c0_i32_83 = arith.constant 0 : i32
      %c0_i32_84 = arith.constant 0 : i32
      %c0_i32_85 = arith.constant 0 : i32
      %c0_i32_86 = arith.constant 0 : i32
      %158 = tpu.memref_slice %arg3[%arg0, %c0_i32_85, %c0_i32_86] : memref<2x64x128xf32, #tpu.memory_space<any>> -> memref<1x32x128xf32, #tpu.memory_space<any>>
      %159 = tpu.memref_squeeze %158 : memref<1x32x128xf32, #tpu.memory_space<any>> -> memref<32x128xf32, #tpu.memory_space<any>>
      %c0_i32_87 = arith.constant 0 : i32
      %c0_i32_88 = arith.constant 0 : i32
      %160 = tpu.memref_slice %arg22[%c0_i32_83, %c0_i32_87, %c0_i32_88] : memref<2x32x128xf32, #tpu.memory_space<vmem>> -> memref<1x32x128xf32, #tpu.memory_space<vmem>>
      %161 = tpu.memref_squeeze %160 : memref<1x32x128xf32, #tpu.memory_space<vmem>> -> memref<32x128xf32, #tpu.memory_space<vmem>>
      %162 = tpu.memref_slice %arg23[%c0_i32_84] : memref<2x!tpu.dma_semaphore, #tpu.memory_space<semaphore_mem>> -> memref<1x!tpu.dma_semaphore, #tpu.memory_space<semaphore_mem>>
      %163 = tpu.memref_squeeze %162 : memref<1x!tpu.dma_semaphore, #tpu.memory_space<semaphore_mem>> -> memref<!tpu.dma_semaphore, #tpu.memory_space<semaphore_mem>>
      tpu.enqueue_dma source(%159 : memref<32x128xf32, #tpu.memory_space<any>>) target(%161 : memref<32x128xf32, #tpu.memory_space<vmem>>) target_semaphore(%163 : memref<!tpu.dma_semaphore, #tpu.memory_space<semaphore_mem>>)
      %c1_i32 = arith.constant 1 : i32
      %c1_i32_89 = arith.constant 1 : i32
      %c32_i32 = arith.constant 32 : i32
      %c0_i32_90 = arith.constant 0 : i32
      %164 = tpu.memref_slice %arg3[%arg0, %c32_i32, %c0_i32_90] : memref<2x64x128xf32, #tpu.memory_space<any>> -> memref<1x32x128xf32, #tpu.memory_space<any>>
      %165 = tpu.memref_squeeze %164 : memref<1x32x128xf32, #tpu.memory_space<any>> -> memref<32x128xf32, #tpu.memory_space<any>>
      %c0_i32_91 = arith.constant 0 : i32
      %c0_i32_92 = arith.constant 0 : i32
      %166 = tpu.memref_slice %arg22[%c1_i32, %c0_i32_91, %c0_i32_92] : memref<2x32x128xf32, #tpu.memory_space<vmem>> -> memref<1x32x128xf32, #tpu.memory_space<vmem>>
      %167 = tpu.memref_squeeze %166 : memref<1x32x128xf32, #tpu.memory_space<vmem>> -> memref<32x128xf32, #tpu.memory_space<vmem>>
      %168 = tpu.memref_slice %arg23[%c1_i32_89] : memref<2x!tpu.dma_semaphore, #tpu.memory_space<semaphore_mem>> -> memref<1x!tpu.dma_semaphore, #tpu.memory_space<semaphore_mem>>
      %169 = tpu.memref_squeeze %168 : memref<1x!tpu.dma_semaphore, #tpu.memory_space<semaphore_mem>> -> memref<!tpu.dma_semaphore, #tpu.memory_space<semaphore_mem>>
      tpu.enqueue_dma source(%165 : memref<32x128xf32, #tpu.memory_space<any>>) target(%167 : memref<32x128xf32, #tpu.memory_space<vmem>>) target_semaphore(%169 : memref<!tpu.dma_semaphore, #tpu.memory_space<semaphore_mem>>)
      %c0_i32_93 = arith.constant 0 : i32
      %c0_i32_94 = arith.constant 0 : i32
      %c0_i32_95 = arith.constant 0 : i32
      %c0_i32_96 = arith.constant 0 : i32
      %170 = tpu.memref_slice %arg3[%arg0, %c0_i32_95, %c0_i32_96] : memref<2x64x128xf32, #tpu.memory_space<any>> -> memref<1x32x128xf32, #tpu.memory_space<any>>
      %171 = tpu.memref_squeeze %170 : memref<1x32x128xf32, #tpu.memory_space<any>> -> memref<32x128xf32, #tpu.memory_space<any>>
      %c0_i32_97 = arith.constant 0 : i32
      %c0_i32_98 = arith.constant 0 : i32
      %172 = tpu.memref_slice %arg22[%c0_i32_93, %c0_i32_97, %c0_i32_98] : memref<2x32x128xf32, #tpu.memory_space<vmem>> -> memref<1x32x128xf32, #tpu.memory_space<vmem>>
      %173 = tpu.memref_squeeze %172 : memref<1x32x128xf32, #tpu.memory_space<vmem>> -> memref<32x128xf32, #tpu.memory_space<vmem>>
      %174 = tpu.memref_slice %arg23[%c0_i32_94] : memref<2x!tpu.dma_semaphore, #tpu.memory_space<semaphore_mem>> -> memref<1x!tpu.dma_semaphore, #tpu.memory_space<semaphore_mem>>
      %175 = tpu.memref_squeeze %174 : memref<1x!tpu.dma_semaphore, #tpu.memory_space<semaphore_mem>> -> memref<!tpu.dma_semaphore, #tpu.memory_space<semaphore_mem>>
      tpu.wait_dma2 semaphore(%175 : memref<!tpu.dma_semaphore, #tpu.memory_space<semaphore_mem>>) src(%171 : memref<32x128xf32, #tpu.memory_space<any>>) dst(%173 : memref<32x128xf32, #tpu.memory_space<vmem>>)
      %c0_99 = arith.constant 0 : index
      %c0_100 = arith.constant 0 : index
      %c0_101 = arith.constant 0 : index
      %176 = vector.load %arg22[%c0_99, %c0_100, %c0_101] : memref<2x32x128xf32, #tpu.memory_space<vmem>>, vector<1x32x128xf32>
      %177 = vector.shape_cast %176 : vector<1x32x128xf32> to vector<32x128xf32>
      %178 = arith.truncf %177 : vector<32x128xf32> to vector<32x128xbf16>
      %c0_102 = arith.constant 0 : index
      %c0_103 = arith.constant 0 : index
      %179 = vector.load %arg6[%c0_102, %c0_103] : memref<128x256xbf16, #tpu.memory_space<vmem>>, vector<128x256xbf16>
      %cst_104 = arith.constant dense<0.000000e+00> : vector<32x256xf32>
      %180 = tpu.matmul %178, %179, %cst_104 {dimension_numbers = #tpu.dot_dimension_numbers<[1], [0], [0], [1], [0, 0, 1, 1], [], []>} : vector<32x128xbf16>, vector<128x256xbf16>, vector<32x256xf32> -> vector<32x256xf32>
      %c0_105 = arith.constant 0 : index
      %c0_106 = arith.constant 0 : index
      %181 = vector.load %arg7[%c0_105, %c0_106] : memref<1x256xf32, #tpu.memory_space<vmem>>, vector<1x256xf32>
      %182 = vector.broadcast %181 : vector<1x256xf32> to vector<32x256xf32>
      %183 = arith.addf %180, %182 : vector<32x256xf32>
      %184 = vector.extract_strided_slice %183 {offsets = [0, 0], sizes = [32, 128], strides = [1, 1]} : vector<32x256xf32> to vector<32x128xf32>
      %185 = arith.truncf %184 : vector<32x128xf32> to vector<32x128xbf16>
      %c0_107 = arith.constant 0 : index
      %c0_108 = arith.constant 0 : index
      %186 = vector.load %arg19[%c0_107, %c0_108] : memref<64x128xbf16, #tpu.memory_space<vmem>>, vector<32x128xbf16>
      tpu.vector_store %arg19[%c0_107, %c0_108], %185 {strides = array<i32>} : memref<64x128xbf16, #tpu.memory_space<vmem>>, vector<32x128xbf16>,
      %187 = vector.extract_strided_slice %183 {offsets = [0, 128], sizes = [32, 128], strides = [1, 1]} : vector<32x256xf32> to vector<32x128xf32>
      %188 = arith.truncf %187 : vector<32x128xf32> to vector<32x128xbf16>
      %c0_109 = arith.constant 0 : index
      %c0_110 = arith.constant 0 : index
      %189 = vector.load %arg20[%c0_109, %c0_110] : memref<64x128xbf16, #tpu.memory_space<vmem>>, vector<32x128xbf16>
      tpu.vector_store %arg20[%c0_109, %c0_110], %188 {strides = array<i32>} : memref<64x128xbf16, #tpu.memory_space<vmem>>, vector<32x128xbf16>,
      %c1_i32_111 = arith.constant 1 : i32
      %c1_i32_112 = arith.constant 1 : i32
      %c32_i32_113 = arith.constant 32 : i32
      %c0_i32_114 = arith.constant 0 : i32
      %190 = tpu.memref_slice %arg3[%arg0, %c32_i32_113, %c0_i32_114] : memref<2x64x128xf32, #tpu.memory_space<any>> -> memref<1x32x128xf32, #tpu.memory_space<any>>
      %191 = tpu.memref_squeeze %190 : memref<1x32x128xf32, #tpu.memory_space<any>> -> memref<32x128xf32, #tpu.memory_space<any>>
      %c0_i32_115 = arith.constant 0 : i32
      %c0_i32_116 = arith.constant 0 : i32
      %192 = tpu.memref_slice %arg22[%c1_i32_111, %c0_i32_115, %c0_i32_116] : memref<2x32x128xf32, #tpu.memory_space<vmem>> -> memref<1x32x128xf32, #tpu.memory_space<vmem>>
      %193 = tpu.memref_squeeze %192 : memref<1x32x128xf32, #tpu.memory_space<vmem>> -> memref<32x128xf32, #tpu.memory_space<vmem>>
      %194 = tpu.memref_slice %arg23[%c1_i32_112] : memref<2x!tpu.dma_semaphore, #tpu.memory_space<semaphore_mem>> -> memref<1x!tpu.dma_semaphore, #tpu.memory_space<semaphore_mem>>
      %195 = tpu.memref_squeeze %194 : memref<1x!tpu.dma_semaphore, #tpu.memory_space<semaphore_mem>> -> memref<!tpu.dma_semaphore, #tpu.memory_space<semaphore_mem>>
      tpu.wait_dma2 semaphore(%195 : memref<!tpu.dma_semaphore, #tpu.memory_space<semaphore_mem>>) src(%191 : memref<32x128xf32, #tpu.memory_space<any>>) dst(%193 : memref<32x128xf32, #tpu.memory_space<vmem>>)
      %c1 = arith.constant 1 : index
      %c0_117 = arith.constant 0 : index
      %c0_118 = arith.constant 0 : index
      %196 = vector.load %arg22[%c1, %c0_117, %c0_118] : memref<2x32x128xf32, #tpu.memory_space<vmem>>, vector<1x32x128xf32>
      %197 = vector.shape_cast %196 : vector<1x32x128xf32> to vector<32x128xf32>
      %198 = arith.truncf %197 : vector<32x128xf32> to vector<32x128xbf16>
      %c0_119 = arith.constant 0 : index
      %c0_120 = arith.constant 0 : index
      %199 = vector.load %arg6[%c0_119, %c0_120] : memref<128x256xbf16, #tpu.memory_space<vmem>>, vector<128x256xbf16>
      %cst_121 = arith.constant dense<0.000000e+00> : vector<32x256xf32>
      %200 = tpu.matmul %198, %199, %cst_121 {dimension_numbers = #tpu.dot_dimension_numbers<[1], [0], [0], [1], [0, 0, 1, 1], [], []>} : vector<32x128xbf16>, vector<128x256xbf16>, vector<32x256xf32> -> vector<32x256xf32>
      %c0_122 = arith.constant 0 : index
      %c0_123 = arith.constant 0 : index
      %201 = vector.load %arg7[%c0_122, %c0_123] : memref<1x256xf32, #tpu.memory_space<vmem>>, vector<1x256xf32>
      %202 = vector.broadcast %201 : vector<1x256xf32> to vector<32x256xf32>
      %203 = arith.addf %200, %202 : vector<32x256xf32>
      %204 = vector.extract_strided_slice %203 {offsets = [0, 0], sizes = [32, 128], strides = [1, 1]} : vector<32x256xf32> to vector<32x128xf32>
      %205 = arith.truncf %204 : vector<32x128xf32> to vector<32x128xbf16>
      %c32_124 = arith.constant 32 : index
      %c0_125 = arith.constant 0 : index
      %206 = vector.load %arg19[%c32_124, %c0_125] : memref<64x128xbf16, #tpu.memory_space<vmem>>, vector<32x128xbf16>
      tpu.vector_store %arg19[%c32_124, %c0_125], %205 {strides = array<i32>} : memref<64x128xbf16, #tpu.memory_space<vmem>>, vector<32x128xbf16>,
      %207 = vector.extract_strided_slice %203 {offsets = [0, 128], sizes = [32, 128], strides = [1, 1]} : vector<32x256xf32> to vector<32x128xf32>
      %208 = arith.truncf %207 : vector<32x128xf32> to vector<32x128xbf16>
      %c32_126 = arith.constant 32 : index
      %c0_127 = arith.constant 0 : index
      %209 = vector.load %arg20[%c32_126, %c0_127] : memref<64x128xbf16, #tpu.memory_space<vmem>>, vector<32x128xbf16>
      tpu.vector_store %arg20[%c32_126, %c0_127], %208 {strides = array<i32>} : memref<64x128xbf16, #tpu.memory_space<vmem>>, vector<32x128xbf16>,
    } else {
    }
    %c0 = arith.constant 0 : index
    %c0_1 = arith.constant 0 : index
    %c0_2 = arith.constant 0 : index
    %3 = vector.load %arg2[%c0, %c0_1, %c0_2] : memref<1x32x128xf32, #tpu.memory_space<vmem>>, vector<1x32x128xf32>
    %4 = vector.shape_cast %3 : vector<1x32x128xf32> to vector<32x128xf32>
    %5 = arith.truncf %4 : vector<32x128xf32> to vector<32x128xbf16>
    %c0_3 = arith.constant 0 : index
    %c0_4 = arith.constant 0 : index
    %6 = vector.load %arg4[%c0_3, %c0_4] : memref<128x128xbf16, #tpu.memory_space<vmem>>, vector<128x128xbf16>
    %cst = arith.constant dense<0.000000e+00> : vector<32x128xf32>
    %7 = tpu.matmul %5, %6, %cst {dimension_numbers = #tpu.dot_dimension_numbers<[1], [0], [0], [1], [0, 0, 1, 1], [], []>} : vector<32x128xbf16>, vector<128x128xbf16>, vector<32x128xf32> -> vector<32x128xf32>
    %c0_5 = arith.constant 0 : index
    %c0_6 = arith.constant 0 : index
    %8 = vector.load %arg5[%c0_5, %c0_6] : memref<1x128xf32, #tpu.memory_space<vmem>>, vector<1x128xf32>
    %9 = vector.broadcast %8 : vector<1x128xf32> to vector<32x128xf32>
    %10 = arith.addf %7, %9 : vector<32x128xf32>
    %11 = arith.truncf %10 : vector<32x128xf32> to vector<32x128xbf16>
    %12 = vector.extract_strided_slice %11 {offsets = [0, 0], sizes = [32, 32], strides = [1, 1]} : vector<32x128xbf16> to vector<32x32xbf16>
    %c0_7 = arith.constant 0 : index
    %c0_8 = arith.constant 0 : index
    %13 = vector.load %arg19[%c0_7, %c0_8] : memref<64x128xbf16, #tpu.memory_space<vmem>>, vector<64x32xbf16>
    %cst_9 = arith.constant dense<0.000000e+00> : vector<32x64xf32>
    %14 = tpu.matmul %12, %13, %cst_9 {dimension_numbers = #tpu.dot_dimension_numbers<[1], [1], [0], [0], [0, 0, 1, 0], [], []>} : vector<32x32xbf16>, vector<64x32xbf16>, vector<32x64xf32> -> vector<32x64xf32>
    %cst_10 = arith.constant dense<0xFF800000> : vector<32xf32>
    %15 = vector.multi_reduction <maximumf>, %14, %cst_10 [1] : vector<32x64xf32> to vector<32xf32>
    %16 = vector.shape_cast %15 : vector<32xf32> to vector<32x1xf32>
    %17 = vector.broadcast %16 : vector<32x1xf32> to vector<32x64xf32>
    %18 = arith.subf %14, %17 : vector<32x64xf32>
    %19 = math.exp %18 : vector<32x64xf32>
    %cst_11 = arith.constant dense<0.000000e+00> : vector<32xf32>
    %20 = vector.multi_reduction <add>, %19, %cst_11 [1] : vector<32x64xf32> to vector<32xf32>
    %21 = vector.shape_cast %20 : vector<32xf32> to vector<32x1xf32>
    %22 = tpu.reciprocal %21 {approx = true} : vector<32x1xf32> -> vector<32x1xf32>
    %23 = vector.broadcast %22 : vector<32x1xf32> to vector<32x64xf32>
    %24 = arith.mulf %19, %23 : vector<32x64xf32>
    %25 = arith.truncf %24 : vector<32x64xf32> to vector<32x64xbf16>
    %c0_12 = arith.constant 0 : index
    %c0_13 = arith.constant 0 : index
    %26 = vector.load %arg20[%c0_12, %c0_13] : memref<64x128xbf16, #tpu.memory_space<vmem>>, vector<64x32xbf16>
    %cst_14 = arith.constant dense<0.000000e+00> : vector<32x32xf32>
    %27 = tpu.matmul %25, %26, %cst_14 {dimension_numbers = #tpu.dot_dimension_numbers<[1], [0], [0], [1], [0, 0, 1, 1], [], []>} : vector<32x64xbf16>, vector<64x32xbf16>, vector<32x32xf32> -> vector<32x32xf32>
    %28 = arith.truncf %27 : vector<32x32xf32> to vector<32x32xbf16>
    %c0_15 = arith.constant 0 : index
    %c0_16 = arith.constant 0 : index
    %29 = vector.load %arg21[%c0_15, %c0_16] : memref<32x128xbf16, #tpu.memory_space<vmem>>, vector<32x32xbf16>
    tpu.vector_store %arg21[%c0_15, %c0_16], %28 {strides = array<i32>} : memref<32x128xbf16, #tpu.memory_space<vmem>>, vector<32x32xbf16>,
    %30 = vector.extract_strided_slice %11 {offsets = [0, 32], sizes = [32, 32], strides = [1, 1]} : vector<32x128xbf16> to vector<32x32xbf16>
    %c0_17 = arith.constant 0 : index
    %c32 = arith.constant 32 : index
    %31 = vector.load %arg19[%c0_17, %c32] : memref<64x128xbf16, #tpu.memory_space<vmem>>, vector<64x32xbf16>
    %cst_18 = arith.constant dense<0.000000e+00> : vector<32x64xf32>
    %32 = tpu.matmul %30, %31, %cst_18 {dimension_numbers = #tpu.dot_dimension_numbers<[1], [1], [0], [0], [0, 0, 1, 0], [], []>} : vector<32x32xbf16>, vector<64x32xbf16>, vector<32x64xf32> -> vector<32x64xf32>
    %cst_19 = arith.constant dense<0xFF800000> : vector<32xf32>
    %33 = vector.multi_reduction <maximumf>, %32, %cst_19 [1] : vector<32x64xf32> to vector<32xf32>
    %34 = vector.shape_cast %33 : vector<32xf32> to vector<32x1xf32>
    %35 = vector.broadcast %34 : vector<32x1xf32> to vector<32x64xf32>
    %36 = arith.subf %32, %35 : vector<32x64xf32>
    %37 = math.exp %36 : vector<32x64xf32>
    %cst_20 = arith.constant dense<0.000000e+00> : vector<32xf32>
    %38 = vector.multi_reduction <add>, %37, %cst_20 [1] : vector<32x64xf32> to vector<32xf32>
    %39 = vector.shape_cast %38 : vector<32xf32> to vector<32x1xf32>
    %40 = tpu.reciprocal %39 {approx = true} : vector<32x1xf32> -> vector<32x1xf32>
    %41 = vector.broadcast %40 : vector<32x1xf32> to vector<32x64xf32>
    %42 = arith.mulf %37, %41 : vector<32x64xf32>
    %43 = arith.truncf %42 : vector<32x64xf32> to vector<32x64xbf16>
    %c0_21 = arith.constant 0 : index
    %c32_22 = arith.constant 32 : index
    %44 = vector.load %arg20[%c0_21, %c32_22] : memref<64x128xbf16, #tpu.memory_space<vmem>>, vector<64x32xbf16>
    %cst_23 = arith.constant dense<0.000000e+00> : vector<32x32xf32>
    %45 = tpu.matmul %43, %44, %cst_23 {dimension_numbers = #tpu.dot_dimension_numbers<[1], [0], [0], [1], [0, 0, 1, 1], [], []>} : vector<32x64xbf16>, vector<64x32xbf16>, vector<32x32xf32> -> vector<32x32xf32>
    %46 = arith.truncf %45 : vector<32x32xf32> to vector<32x32xbf16>
    %c0_24 = arith.constant 0 : index
    %c32_25 = arith.constant 32 : index
    %47 = vector.load %arg21[%c0_24, %c32_25] : memref<32x128xbf16, #tpu.memory_space<vmem>>, vector<32x32xbf16>
    tpu.vector_store %arg21[%c0_24, %c32_25], %46 {strides = array<i32>} : memref<32x128xbf16, #tpu.memory_space<vmem>>, vector<32x32xbf16>,
    %48 = vector.extract_strided_slice %11 {offsets = [0, 64], sizes = [32, 32], strides = [1, 1]} : vector<32x128xbf16> to vector<32x32xbf16>
    %c0_26 = arith.constant 0 : index
    %c64 = arith.constant 64 : index
    %49 = vector.load %arg19[%c0_26, %c64] : memref<64x128xbf16, #tpu.memory_space<vmem>>, vector<64x32xbf16>
    %cst_27 = arith.constant dense<0.000000e+00> : vector<32x64xf32>
    %50 = tpu.matmul %48, %49, %cst_27 {dimension_numbers = #tpu.dot_dimension_numbers<[1], [1], [0], [0], [0, 0, 1, 0], [], []>} : vector<32x32xbf16>, vector<64x32xbf16>, vector<32x64xf32> -> vector<32x64xf32>
    %cst_28 = arith.constant dense<0xFF800000> : vector<32xf32>
    %51 = vector.multi_reduction <maximumf>, %50, %cst_28 [1] : vector<32x64xf32> to vector<32xf32>
    %52 = vector.shape_cast %51 : vector<32xf32> to vector<32x1xf32>
    %53 = vector.broadcast %52 : vector<32x1xf32> to vector<32x64xf32>
    %54 = arith.subf %50, %53 : vector<32x64xf32>
    %55 = math.exp %54 : vector<32x64xf32>
    %cst_29 = arith.constant dense<0.000000e+00> : vector<32xf32>
    %56 = vector.multi_reduction <add>, %55, %cst_29 [1] : vector<32x64xf32> to vector<32xf32>
    %57 = vector.shape_cast %56 : vector<32xf32> to vector<32x1xf32>
    %58 = tpu.reciprocal %57 {approx = true} : vector<32x1xf32> -> vector<32x1xf32>
    %59 = vector.broadcast %58 : vector<32x1xf32> to vector<32x64xf32>
    %60 = arith.mulf %55, %59 : vector<32x64xf32>
    %61 = arith.truncf %60 : vector<32x64xf32> to vector<32x64xbf16>
    %c0_30 = arith.constant 0 : index
    %c64_31 = arith.constant 64 : index
    %62 = vector.load %arg20[%c0_30, %c64_31] : memref<64x128xbf16, #tpu.memory_space<vmem>>, vector<64x32xbf16>
    %cst_32 = arith.constant dense<0.000000e+00> : vector<32x32xf32>
    %63 = tpu.matmul %61, %62, %cst_32 {dimension_numbers = #tpu.dot_dimension_numbers<[1], [0], [0], [1], [0, 0, 1, 1], [], []>} : vector<32x64xbf16>, vector<64x32xbf16>, vector<32x32xf32> -> vector<32x32xf32>
    %64 = arith.truncf %63 : vector<32x32xf32> to vector<32x32xbf16>
    %c0_33 = arith.constant 0 : index
    %c64_34 = arith.constant 64 : index
    %65 = vector.load %arg21[%c0_33, %c64_34] : memref<32x128xbf16, #tpu.memory_space<vmem>>, vector<32x32xbf16>
    tpu.vector_store %arg21[%c0_33, %c64_34], %64 {strides = array<i32>} : memref<32x128xbf16, #tpu.memory_space<vmem>>, vector<32x32xbf16>,
    %66 = vector.extract_strided_slice %11 {offsets = [0, 96], sizes = [32, 32], strides = [1, 1]} : vector<32x128xbf16> to vector<32x32xbf16>
    %c0_35 = arith.constant 0 : index
    %c96 = arith.constant 96 : index
    %67 = vector.load %arg19[%c0_35, %c96] : memref<64x128xbf16, #tpu.memory_space<vmem>>, vector<64x32xbf16>
    %cst_36 = arith.constant dense<0.000000e+00> : vector<32x64xf32>
    %68 = tpu.matmul %66, %67, %cst_36 {dimension_numbers = #tpu.dot_dimension_numbers<[1], [1], [0], [0], [0, 0, 1, 0], [], []>} : vector<32x32xbf16>, vector<64x32xbf16>, vector<32x64xf32> -> vector<32x64xf32>
    %cst_37 = arith.constant dense<0xFF800000> : vector<32xf32>
    %69 = vector.multi_reduction <maximumf>, %68, %cst_37 [1] : vector<32x64xf32> to vector<32xf32>
    %70 = vector.shape_cast %69 : vector<32xf32> to vector<32x1xf32>
    %71 = vector.broadcast %70 : vector<32x1xf32> to vector<32x64xf32>
    %72 = arith.subf %68, %71 : vector<32x64xf32>
    %73 = math.exp %72 : vector<32x64xf32>
    %cst_38 = arith.constant dense<0.000000e+00> : vector<32xf32>
    %74 = vector.multi_reduction <add>, %73, %cst_38 [1] : vector<32x64xf32> to vector<32xf32>
    %75 = vector.shape_cast %74 : vector<32xf32> to vector<32x1xf32>
    %76 = tpu.reciprocal %75 {approx = true} : vector<32x1xf32> -> vector<32x1xf32>
    %77 = vector.broadcast %76 : vector<32x1xf32> to vector<32x64xf32>
    %78 = arith.mulf %73, %77 : vector<32x64xf32>
    %79 = arith.truncf %78 : vector<32x64xf32> to vector<32x64xbf16>
    %c0_39 = arith.constant 0 : index
    %c96_40 = arith.constant 96 : index
    %80 = vector.load %arg20[%c0_39, %c96_40] : memref<64x128xbf16, #tpu.memory_space<vmem>>, vector<64x32xbf16>
    %cst_41 = arith.constant dense<0.000000e+00> : vector<32x32xf32>
    %81 = tpu.matmul %79, %80, %cst_41 {dimension_numbers = #tpu.dot_dimension_numbers<[1], [0], [0], [1], [0, 0, 1, 1], [], []>} : vector<32x64xbf16>, vector<64x32xbf16>, vector<32x32xf32> -> vector<32x32xf32>
    %82 = arith.truncf %81 : vector<32x32xf32> to vector<32x32xbf16>
    %c0_42 = arith.constant 0 : index
    %c96_43 = arith.constant 96 : index
    %83 = vector.load %arg21[%c0_42, %c96_43] : memref<32x128xbf16, #tpu.memory_space<vmem>>, vector<32x32xbf16>
    tpu.vector_store %arg21[%c0_42, %c96_43], %82 {strides = array<i32>} : memref<32x128xbf16, #tpu.memory_space<vmem>>, vector<32x32xbf16>,
    %c0_44 = arith.constant 0 : index
    %c0_45 = arith.constant 0 : index
    %84 = vector.load %arg21[%c0_44, %c0_45] : memref<32x128xbf16, #tpu.memory_space<vmem>>, vector<32x128xbf16>
    %c0_46 = arith.constant 0 : index
    %c0_47 = arith.constant 0 : index
    %85 = vector.load %arg8[%c0_46, %c0_47] : memref<128x128xbf16, #tpu.memory_space<vmem>>, vector<128x128xbf16>
    %cst_48 = arith.constant dense<0.000000e+00> : vector<32x128xf32>
    %86 = tpu.matmul %84, %85, %cst_48 {dimension_numbers = #tpu.dot_dimension_numbers<[1], [0], [0], [1], [0, 0, 1, 1], [], []>} : vector<32x128xbf16>, vector<128x128xbf16>, vector<32x128xf32> -> vector<32x128xf32>
    %c0_49 = arith.constant 0 : index
    %c0_50 = arith.constant 0 : index
    %87 = vector.load %arg9[%c0_49, %c0_50] : memref<1x128xf32, #tpu.memory_space<vmem>>, vector<1x128xf32>
    %88 = vector.broadcast %87 : vector<1x128xf32> to vector<32x128xf32>
    %89 = arith.addf %86, %88 : vector<32x128xf32>
    %90 = arith.addf %4, %89 : vector<32x128xf32>
    %c0_51 = arith.constant 0 : index
    %c0_52 = arith.constant 0 : index
    %91 = vector.load %arg10[%c0_51, %c0_52] : memref<1x128xf32, #tpu.memory_space<vmem>>, vector<1x128xf32>
    %c0_53 = arith.constant 0 : index
    %c0_54 = arith.constant 0 : index
    %92 = vector.load %arg11[%c0_53, %c0_54] : memref<1x128xf32, #tpu.memory_space<vmem>>, vector<1x128xf32>
    %cst_55 = arith.constant dense<0.000000e+00> : vector<32xf32>
    %93 = vector.multi_reduction <add>, %90, %cst_55 [1] : vector<32x128xf32> to vector<32xf32>
    %94 = vector.shape_cast %93 : vector<32xf32> to vector<32x1xf32>
    %cst_56 = arith.constant 1.280000e+02 : f32
    %95 = vector.broadcast %cst_56 : f32 to vector<32x1xf32>
    %96 = arith.divf %94, %95 : vector<32x1xf32>
    %97 = vector.broadcast %96 : vector<32x1xf32> to vector<32x128xf32>
    %98 = arith.subf %90, %97 : vector<32x128xf32>
    %99 = arith.mulf %98, %98 : vector<32x128xf32>
    %cst_57 = arith.constant dense<0.000000e+00> : vector<32xf32>
    %100 = vector.multi_reduction <add>, %99, %cst_57 [1] : vector<32x128xf32> to vector<32xf32>
    %101 = vector.shape_cast %100 : vector<32xf32> to vector<32x1xf32>
    %cst_58 = arith.constant 1.280000e+02 : f32
    %102 = vector.broadcast %cst_58 : f32 to vector<32x1xf32>
    %103 = arith.divf %101, %102 : vector<32x1xf32>
    %cst_59 = arith.constant 9.99999974E-6 : f32
    %104 = vector.broadcast %cst_59 : f32 to vector<32x1xf32>
    %105 = arith.addf %103, %104 : vector<32x1xf32>
    %106 = math.rsqrt %105 : vector<32x1xf32>
    %107 = vector.broadcast %96 : vector<32x1xf32> to vector<32x128xf32>
    %108 = arith.subf %90, %107 : vector<32x128xf32>
    %109 = vector.broadcast %106 : vector<32x1xf32> to vector<32x128xf32>
    %110 = arith.mulf %108, %109 : vector<32x128xf32>
    %111 = vector.broadcast %91 : vector<1x128xf32> to vector<32x128xf32>
    %112 = arith.mulf %110, %111 : vector<32x128xf32>
    %113 = vector.broadcast %92 : vector<1x128xf32> to vector<32x128xf32>
    %114 = arith.addf %112, %113 : vector<32x128xf32>
    %115 = arith.truncf %114 : vector<32x128xf32> to vector<32x128xbf16>
    %c0_60 = arith.constant 0 : index
    %c0_61 = arith.constant 0 : index
    %116 = vector.load %arg12[%c0_60, %c0_61] : memref<128x256xbf16, #tpu.memory_space<vmem>>, vector<128x256xbf16>
    %cst_62 = arith.constant dense<0.000000e+00> : vector<32x256xf32>
    %117 = tpu.matmul %115, %116, %cst_62 {dimension_numbers = #tpu.dot_dimension_numbers<[1], [0], [0], [1], [0, 0, 1, 1], [], []>} : vector<32x128xbf16>, vector<128x256xbf16>, vector<32x256xf32> -> vector<32x256xf32>
    %c0_63 = arith.constant 0 : index
    %c0_64 = arith.constant 0 : index
    %118 = vector.load %arg13[%c0_63, %c0_64] : memref<1x256xf32, #tpu.memory_space<vmem>>, vector<1x256xf32>
    %119 = vector.broadcast %118 : vector<1x256xf32> to vector<32x256xf32>
    %120 = arith.addf %117, %119 : vector<32x256xf32>
    %121 = arith.truncf %120 : vector<32x256xf32> to vector<32x256xbf16>
    %cst_65 = arith.constant 0.000000e+00 : bf16
    %122 = vector.broadcast %cst_65 : bf16 to vector<32x256xbf16>
    %123 = arith.maximumf %121, %122 : vector<32x256xbf16>
    %c0_66 = arith.constant 0 : index
    %c0_67 = arith.constant 0 : index
    %124 = vector.load %arg14[%c0_66, %c0_67] : memref<256x128xbf16, #tpu.memory_space<vmem>>, vector<256x128xbf16>
    %cst_68 = arith.constant dense<0.000000e+00> : vector<32x128xf32>
    %125 = tpu.matmul %123, %124, %cst_68 {dimension_numbers = #tpu.dot_dimension_numbers<[1], [0], [0], [1], [0, 0, 1, 1], [], []>} : vector<32x256xbf16>, vector<256x128xbf16>, vector<32x128xf32> -> vector<32x128xf32>
    %c0_69 = arith.constant 0 : index
    %c0_70 = arith.constant 0 : index
    %126 = vector.load %arg15[%c0_69, %c0_70] : memref<1x128xf32, #tpu.memory_space<vmem>>, vector<1x128xf32>
    %127 = vector.broadcast %126 : vector<1x128xf32> to vector<32x128xf32>
    %128 = arith.addf %125, %127 : vector<32x128xf32>
    %129 = arith.addf %114, %128 : vector<32x128xf32>
    %c0_71 = arith.constant 0 : index
    %c0_72 = arith.constant 0 : index
    %130 = vector.load %arg16[%c0_71, %c0_72] : memref<1x128xf32, #tpu.memory_space<vmem>>, vector<1x128xf32>
    %c0_73 = arith.constant 0 : index
    %c0_74 = arith.constant 0 : index
    %131 = vector.load %arg17[%c0_73, %c0_74] : memref<1x128xf32, #tpu.memory_space<vmem>>, vector<1x128xf32>
    %cst_75 = arith.constant dense<0.000000e+00> : vector<32xf32>
    %132 = vector.multi_reduction <add>, %129, %cst_75 [1] : vector<32x128xf32> to vector<32xf32>
    %133 = vector.shape_cast %132 : vector<32xf32> to vector<32x1xf32>
    %cst_76 = arith.constant 1.280000e+02 : f32
    %134 = vector.broadcast %cst_76 : f32 to vector<32x1xf32>
    %135 = arith.divf %133, %134 : vector<32x1xf32>
    %136 = vector.broadcast %135 : vector<32x1xf32> to vector<32x128xf32>
    %137 = arith.subf %129, %136 : vector<32x128xf32>
    %138 = arith.mulf %137, %137 : vector<32x128xf32>
    %cst_77 = arith.constant dense<0.000000e+00> : vector<32xf32>
    %139 = vector.multi_reduction <add>, %138, %cst_77 [1] : vector<32x128xf32> to vector<32xf32>
    %140 = vector.shape_cast %139 : vector<32xf32> to vector<32x1xf32>
    %cst_78 = arith.constant 1.280000e+02 : f32
    %141 = vector.broadcast %cst_78 : f32 to vector<32x1xf32>
    %142 = arith.divf %140, %141 : vector<32x1xf32>
    %cst_79 = arith.constant 9.99999974E-6 : f32
    %143 = vector.broadcast %cst_79 : f32 to vector<32x1xf32>
    %144 = arith.addf %142, %143 : vector<32x1xf32>
    %145 = math.rsqrt %144 : vector<32x1xf32>
    %146 = vector.broadcast %135 : vector<32x1xf32> to vector<32x128xf32>
    %147 = arith.subf %129, %146 : vector<32x128xf32>
    %148 = vector.broadcast %145 : vector<32x1xf32> to vector<32x128xf32>
    %149 = arith.mulf %147, %148 : vector<32x128xf32>
    %150 = vector.broadcast %130 : vector<1x128xf32> to vector<32x128xf32>
    %151 = arith.mulf %149, %150 : vector<32x128xf32>
    %152 = vector.broadcast %131 : vector<1x128xf32> to vector<32x128xf32>
    %153 = arith.addf %151, %152 : vector<32x128xf32>
    %154 = arith.truncf %153 : vector<32x128xf32> to vector<32x128xbf16>
    %c0_80 = arith.constant 0 : index
    %c0_81 = arith.constant 0 : index
    %c0_82 = arith.constant 0 : index
    %155 = vector.load %arg18[%c0_80, %c0_81, %c0_82] : memref<1x32x128xbf16, #tpu.memory_space<vmem>>, vector<1x32x128xbf16>
    %156 = vector.shape_cast %155 : vector<1x32x128xbf16> to vector<32x128xbf16>
    %157 = vector.shape_cast %154 : vector<32x128xbf16> to vector<1x32x128xbf16>
    tpu.vector_store %arg18[%c0_80, %c0_81, %c0_82], %157 {strides = array<i32>} : memref<1x32x128xbf16, #tpu.memory_space<vmem>>, vector<1x32x128xbf16>,
    return
  }
  func.func @transform_0(%arg0: i32, %arg1: i32) -> (i32, i32, i32) {
    %c0_i32 = arith.constant 0 : i32
    %c0_i32_0 = arith.constant 0 : i32
    return %arg0, %arg1, %c0_i32 : i32, i32, i32
  }
  func.func @transform_2(%arg0: i32, %arg1: i32) -> (i32, i32) {
    %c0_i32 = arith.constant 0 : i32
    %c0_i32_0 = arith.constant 0 : i32
    %c0_i32_1 = arith.constant 0 : i32
    return %c0_i32, %c0_i32_0 : i32, i32
  }
  func.func @transform_3(%arg0: i32, %arg1: i32) -> (i32, i32) {
    %c0_i32 = arith.constant 0 : i32
    %c0_i32_0 = arith.constant 0 : i32
    %c0_i32_1 = arith.constant 0 : i32
    return %c0_i32, %c0_i32_0 : i32, i32
  }
  func.func @transform_4(%arg0: i32, %arg1: i32) -> (i32, i32) {
    %c0_i32 = arith.constant 0 : i32
    %c0_i32_0 = arith.constant 0 : i32
    %c0_i32_1 = arith.constant 0 : i32
    return %c0_i32, %c0_i32_0 : i32, i32
  }
  func.func @transform_5(%arg0: i32, %arg1: i32) -> (i32, i32) {
    %c0_i32 = arith.constant 0 : i32
    %c0_i32_0 = arith.constant 0 : i32
    %c0_i32_1 = arith.constant 0 : i32
    return %c0_i32, %c0_i32_0 : i32, i32
  }
  func.func @transform_6(%arg0: i32, %arg1: i32) -> (i32, i32) {
    %c0_i32 = arith.constant 0 : i32
    %c0_i32_0 = arith.constant 0 : i32
    %c0_i32_1 = arith.constant 0 : i32
    return %c0_i32, %c0_i32_0 : i32, i32
  }
  func.func @transform_7(%arg0: i32, %arg1: i32) -> (i32, i32) {
    %c0_i32 = arith.constant 0 : i32
    %c0_i32_0 = arith.constant 0 : i32
    %c0_i32_1 = arith.constant 0 : i32
    return %c0_i32, %c0_i32_0 : i32, i32
  }
  func.func @transform_8(%arg0: i32, %arg1: i32) -> (i32, i32) {
    %c0_i32 = arith.constant 0 : i32
    %c0_i32_0 = arith.constant 0 : i32
    %c0_i32_1 = arith.constant 0 : i32
    return %c0_i32, %c0_i32_0 : i32, i32
  }
  func.func @transform_9(%arg0: i32, %arg1: i32) -> (i32, i32) {
    %c0_i32 = arith.constant 0 : i32
    %c0_i32_0 = arith.constant 0 : i32
    %c0_i32_1 = arith.constant 0 : i32
    return %c0_i32, %c0_i32_0 : i32, i32
  }
  func.func @transform_10(%arg0: i32, %arg1: i32) -> (i32, i32) {
    %c0_i32 = arith.constant 0 : i32
    %c0_i32_0 = arith.constant 0 : i32
    %c0_i32_1 = arith.constant 0 : i32
    return %c0_i32, %c0_i32_0 : i32, i32
  }
  func.func @transform_11(%arg0: i32, %arg1: i32) -> (i32, i32) {
    %c0_i32 = arith.constant 0 : i32
    %c0_i32_0 = arith.constant 0 : i32
    %c0_i32_1 = arith.constant 0 : i32
    return %c0_i32, %c0_i32_0 : i32, i32
  }
  func.func @transform_12(%arg0: i32, %arg1: i32) -> (i32, i32) {
    %c0_i32 = arith.constant 0 : i32
    %c0_i32_0 = arith.constant 0 : i32
    %c0_i32_1 = arith.constant 0 : i32
    return %c0_i32, %c0_i32_0 : i32, i32
  }
  func.func @transform_13(%arg0: i32, %arg1: i32) -> (i32, i32) {
    %c0_i32 = arith.constant 0 : i32
    %c0_i32_0 = arith.constant 0 : i32
    %c0_i32_1 = arith.constant 0 : i32
    return %c0_i32, %c0_i32_0 : i32, i32
  }
  func.func @transform_14(%arg0: i32, %arg1: i32) -> (i32, i32) {
    %c0_i32 = arith.constant 0 : i32
    %c0_i32_0 = arith.constant 0 : i32
    %c0_i32_1 = arith.constant 0 : i32
    return %c0_i32, %c0_i32_0 : i32, i32
  }
  func.func @transform_15(%arg0: i32, %arg1: i32) -> (i32, i32) {
    %c0_i32 = arith.constant 0 : i32
    %c0_i32_0 = arith.constant 0 : i32
    %c0_i32_1 = arith.constant 0 : i32
    return %c0_i32, %c0_i32_0 : i32, i32
  }
  func.func @transform_16(%arg0: i32, %arg1: i32) -> (i32, i32, i32) {
    %c0_i32 = arith.constant 0 : i32
    %c0_i32_0 = arith.constant 0 : i32
    return %arg0, %arg1, %c0_i32 : i32, i32, i32
  }
}

module attributes {stable_mosaic.version = 11 : i64} {
  func.func @encoder_layer_kernel(%arg0: i32, %arg1: i32, %arg2: memref<1x32x128xf32, #tpu.memory_space<vmem>>, %arg3: memref<2x64x128xf32, #tpu.memory_space<any>>, %arg4: memref<128x128xbf16, #tpu.memory_space<vmem>>, %arg5: memref<1x128xf32, #tpu.memory_space<vmem>>, %arg6: memref<128x256xbf16, #tpu.memory_space<vmem>>, %arg7: memref<1x256xf32, #tpu.memory_space<vmem>>, %arg8: memref<128x128xbf16, #tpu.memory_space<vmem>>, %arg9: memref<1x128xf32, #tpu.memory_space<vmem>>, %arg10: memref<1x128xf32, #tpu.memory_space<vmem>>, %arg11: memref<1x128xf32, #tpu.memory_space<vmem>>, %arg12: memref<128x256xbf16, #tpu.memory_space<vmem>>, %arg13: memref<1x256xf32, #tpu.memory_space<vmem>>, %arg14: memref<256x128xbf16, #tpu.memory_space<vmem>>, %arg15: memref<1x128xf32, #tpu.memory_space<vmem>>, %arg16: memref<1x128xf32, #tpu.memory_space<vmem>>, %arg17: memref<1x128xf32, #tpu.memory_space<vmem>>, %arg18: memref<1x32x128xbf16, #tpu.memory_space<vmem>>, %arg19: memref<64x128xbf16, #tpu.memory_space<vmem>>, %arg20: memref<64x128xbf16, #tpu.memory_space<vmem>>, %arg21: memref<32x128xbf16, #tpu.memory_space<vmem>>, %arg22: memref<2x32x128xf32, #tpu.memory_space<vmem>>, %arg23: memref<2x!tpu.dma_semaphore, #tpu.memory_space<semaphore_mem>>) attributes {dimension_semantics = [#tpu.dimension_semantics<parallel>, #tpu.dimension_semantics<arbitrary>], iteration_bounds = array<i64: 2, 2>, scalar_prefetch = 0 : i64, scratch_operands = 5 : i64, tpu.core_type = #tpu.core_type<tc>, window_params = [{transform_indices = @transform_0, window_bounds = array<i64: 1, 32, 128>}, {}, {pipeline_mode = #tpu.pipeline_mode<synchronous>, transform_indices = @transform_2, window_bounds = array<i64: 128, 128>}, {pipeline_mode = #tpu.pipeline_mode<synchronous>, transform_indices = @transform_3, window_bounds = array<i64: 1, 128>}, {pipeline_mode = #tpu.pipeline_mode<synchronous>, transform_indices = @transform_4, window_bounds = array<i64: 128, 256>}, {pipeline_mode = #tpu.pipeline_mode<synchronous>, transform_indices = @transform_5, window_bounds = array<i64: 1, 256>}, {pipeline_mode = #tpu.pipeline_mode<synchronous>, transform_indices = @transform_6, window_bounds = array<i64: 128, 128>}, {pipeline_mode = #tpu.pipeline_mode<synchronous>, transform_indices = @transform_7, window_bounds = array<i64: 1, 128>}, {pipeline_mode = #tpu.pipeline_mode<synchronous>, transform_indices = @transform_8, window_bounds = array<i64: 1, 128>}, {pipeline_mode = #tpu.pipeline_mode<synchronous>, transform_indices = @transform_9, window_bounds = array<i64: 1, 128>}, {pipeline_mode = #tpu.pipeline_mode<synchronous>, transform_indices = @transform_10, window_bounds = array<i64: 128, 256>}, {pipeline_mode = #tpu.pipeline_mode<synchronous>, transform_indices = @transform_11, window_bounds = array<i64: 1, 256>}, {pipeline_mode = #tpu.pipeline_mode<synchronous>, transform_indices = @transform_12, window_bounds = array<i64: 256, 128>}, {pipeline_mode = #tpu.pipeline_mode<synchronous>, transform_indices = @transform_13, window_bounds = array<i64: 1, 128>}, {pipeline_mode = #tpu.pipeline_mode<synchronous>, transform_indices = @transform_14, window_bounds = array<i64: 1, 128>}, {pipeline_mode = #tpu.pipeline_mode<synchronous>, transform_indices = @transform_15, window_bounds = array<i64: 1, 128>}, {transform_indices = @transform_16, window_bounds = array<i64: 1, 32, 128>}]} {
    %c0_i32 = arith.constant 0 : i32
    %0 = arith.cmpi eq, %arg1, %c0_i32 : i32
    %1 = arith.extui %0 : i1 to i32
    %c0_i32_0 = arith.constant 0 : i32
    %2 = arith.cmpi ne, %1, %c0_i32_0 : i32
    scf.if %2 {
      %c0_i32_83 = arith.constant 0 : i32
      %c0_i32_84 = arith.constant 0 : i32
      %c0_i32_85 = arith.constant 0 : i32
      %c0_i32_86 = arith.constant 0 : i32
      %158 = tpu.memref_slice %arg3[%arg0, %c0_i32_85, %c0_i32_86] : memref<2x64x128xf32, #tpu.memory_space<any>> -> memref<1x32x128xf32, #tpu.memory_space<any>>
      %159 = tpu.memref_squeeze %158 : memref<1x32x128xf32, #tpu.memory_space<any>> -> memref<32x128xf32, #tpu.memory_space<any>>
      %c0_i32_87 = arith.constant 0 : i32
      %c0_i32_88 = arith.constant 0 : i32
      %160 = tpu.memref_slice %arg22[%c0_i32_83, %c0_i32_87, %c0_i32_88] : memref<2x32x128xf32, #tpu.memory_space<vmem>> -> memref<1x32x128xf32, #tpu.memory_space<vmem>>
      %161 = tpu.memref_squeeze %160 : memref<1x32x128xf32, #tpu.memory_space<vmem>> -> memref<32x128xf32, #tpu.memory_space<vmem>>
      %162 = tpu.memref_slice %arg23[%c0_i32_84] : memref<2x!tpu.dma_semaphore, #tpu.memory_space<semaphore_mem>> -> memref<1x!tpu.dma_semaphore, #tpu.memory_space<semaphore_mem>>
      %163 = tpu.memref_squeeze %162 : memref<1x!tpu.dma_semaphore, #tpu.memory_space<semaphore_mem>> -> memref<!tpu.dma_semaphore, #tpu.memory_space<semaphore_mem>>
      tpu.enqueue_dma source(%159 : memref<32x128xf32, #tpu.memory_space<any>>) target(%161 : memref<32x128xf32, #tpu.memory_space<vmem>>) target_semaphore(%163 : memref<!tpu.dma_semaphore, #tpu.memory_space<semaphore_mem>>)
      %c1_i32 = arith.constant 1 : i32
      %c1_i32_89 = arith.constant 1 : i32
      %c32_i32 = arith.constant 32 : i32
      %c0_i32_90 = arith.constant 0 : i32
      %164 = tpu.memref_slice %arg3[%arg0, %c32_i32, %c0_i32_90] : memref<2x64x128xf32, #tpu.memory_space<any>> -> memref<1x32x128xf32, #tpu.memory_space<any>>
      %165 = tpu.memref_squeeze %164 : memref<1x32x128xf32, #tpu.memory_space<any>> -> memref<32x128xf32, #tpu.memory_space<any>>
      %c0_i32_91 = arith.constant 0 : i32
      %c0_i32_92 = arith.constant 0 : i32
      %166 = tpu.memref_slice %arg22[%c1_i32, %c0_i32_91, %c0_i32_92] : memref<2x32x128xf32, #tpu.memory_space<vmem>> -> memref<1x32x128xf32, #tpu.memory_space<vmem>>
      %167 = tpu.memref_squeeze %166 : memref<1x32x128xf32, #tpu.memory_space<vmem>> -> memref<32x128xf32, #tpu.memory_space<vmem>>
      %168 = tpu.memref_slice %arg23[%c1_i32_89] : memref<2x!tpu.dma_semaphore, #tpu.memory_space<semaphore_mem>> -> memref<1x!tpu.dma_semaphore, #tpu.memory_space<semaphore_mem>>
      %169 = tpu.memref_squeeze %168 : memref<1x!tpu.dma_semaphore, #tpu.memory_space<semaphore_mem>> -> memref<!tpu.dma_semaphore, #tpu.memory_space<semaphore_mem>>
      tpu.enqueue_dma source(%165 : memref<32x128xf32, #tpu.memory_space<any>>) target(%167 : memref<32x128xf32, #tpu.memory_space<vmem>>) target_semaphore(%169 : memref<!tpu.dma_semaphore, #tpu.memory_space<semaphore_mem>>)
      %c0_i32_93 = arith.constant 0 : i32
      %c0_i32_94 = arith.constant 0 : i32
      %c0_i32_95 = arith.constant 0 : i32
      %c0_i32_96 = arith.constant 0 : i32
      %170 = tpu.memref_slice %arg3[%arg0, %c0_i32_95, %c0_i32_96] : memref<2x64x128xf32, #tpu.memory_space<any>> -> memref<1x32x128xf32, #tpu.memory_space<any>>
      %171 = tpu.memref_squeeze %170 : memref<1x32x128xf32, #tpu.memory_space<any>> -> memref<32x128xf32, #tpu.memory_space<any>>
      %c0_i32_97 = arith.constant 0 : i32
      %c0_i32_98 = arith.constant 0 : i32
      %172 = tpu.memref_slice %arg22[%c0_i32_93, %c0_i32_97, %c0_i32_98] : memref<2x32x128xf32, #tpu.memory_space<vmem>> -> memref<1x32x128xf32, #tpu.memory_space<vmem>>
      %173 = tpu.memref_squeeze %172 : memref<1x32x128xf32, #tpu.memory_space<vmem>> -> memref<32x128xf32, #tpu.memory_space<vmem>>
      %174 = tpu.memref_slice %arg23[%c0_i32_94] : memref<2x!tpu.dma_semaphore, #tpu.memory_space<semaphore_mem>> -> memref<1x!tpu.dma_semaphore, #tpu.memory_space<semaphore_mem>>
      %175 = tpu.memref_squeeze %174 : memref<1x!tpu.dma_semaphore, #tpu.memory_space<semaphore_mem>> -> memref<!tpu.dma_semaphore, #tpu.memory_space<semaphore_mem>>
      tpu.wait_dma2 semaphore(%175 : memref<!tpu.dma_semaphore, #tpu.memory_space<semaphore_mem>>) src(%171 : memref<32x128xf32, #tpu.memory_space<any>>) dst(%173 : memref<32x128xf32, #tpu.memory_space<vmem>>)
      %c0_99 = arith.constant 0 : index
      %c0_100 = arith.constant 0 : index
      %c0_101 = arith.constant 0 : index
      %176 = vector.load %arg22[%c0_99, %c0_100, %c0_101] : memref<2x32x128xf32, #tpu.memory_space<vmem>>, vector<1x32x128xf32>
      %177 = vector.shape_cast %176 : vector<1x32x128xf32> to vector<32x128xf32>
      %178 = arith.truncf %177 : vector<32x128xf32> to vector<32x128xbf16>
      %c0_102 = arith.constant 0 : index
      %c0_103 = arith.constant 0 : index
      %179 = vector.load %arg6[%c0_102, %c0_103] : memref<128x256xbf16, #tpu.memory_space<vmem>>, vector<128x256xbf16>
      %cst_104 = arith.constant dense<0.000000e+00> : vector<32x256xf32>
      %180 = tpu.matmul %178, %179, %cst_104 {dimension_numbers = #tpu.dot_dimension_numbers<[1], [0], [0], [1], [0, 0, 1, 1], [], []>} : vector<32x128xbf16>, vector<128x256xbf16>, vector<32x256xf32> -> vector<32x256xf32>
      %c0_105 = arith.constant 0 : index
      %c0_106 = arith.constant 0 : index
      %181 = vector.load %arg7[%c0_105, %c0_106] : memref<1x256xf32, #tpu.memory_space<vmem>>, vector<1x256xf32>
      %182 = vector.broadcast %181 : vector<1x256xf32> to vector<32x256xf32>
      %183 = arith.addf %180, %182 : vector<32x256xf32>
      %184 = vector.extract_strided_slice %183 {offsets = [0, 0], sizes = [32, 128], strides = [1, 1]} : vector<32x256xf32> to vector<32x128xf32>
      %185 = arith.truncf %184 : vector<32x128xf32> to vector<32x128xbf16>
      %c0_107 = arith.constant 0 : index
      %c0_108 = arith.constant 0 : index
      %186 = vector.load %arg19[%c0_107, %c0_108] : memref<64x128xbf16, #tpu.memory_space<vmem>>, vector<32x128xbf16>
      tpu.vector_store %arg19[%c0_107, %c0_108], %185 {strides = array<i32>} : memref<64x128xbf16, #tpu.memory_space<vmem>>, vector<32x128xbf16>,
      %187 = vector.extract_strided_slice %183 {offsets = [0, 128], sizes = [32, 128], strides = [1, 1]} : vector<32x256xf32> to vector<32x128xf32>
      %188 = arith.truncf %187 : vector<32x128xf32> to vector<32x128xbf16>
      %c0_109 = arith.constant 0 : index
      %c0_110 = arith.constant 0 : index
      %189 = vector.load %arg20[%c0_109, %c0_110] : memref<64x128xbf16, #tpu.memory_space<vmem>>, vector<32x128xbf16>
      tpu.vector_store %arg20[%c0_109, %c0_110], %188 {strides = array<i32>} : memref<64x128xbf16, #tpu.memory_space<vmem>>, vector<32x128xbf16>,
      %c1_i32_111 = arith.constant 1 : i32
      %c1_i32_112 = arith.constant 1 : i32
      %c32_i32_113 = arith.constant 32 : i32
      %c0_i32_114 = arith.constant 0 : i32
      %190 = tpu.memref_slice %arg3[%arg0, %c32_i32_113, %c0_i32_114] : memref<2x64x128xf32, #tpu.memory_space<any>> -> memref<1x32x128xf32, #tpu.memory_space<any>>
      %191 = tpu.memref_squeeze %190 : memref<1x32x128xf32, #tpu.memory_space<any>> -> memref<32x128xf32, #tpu.memory_space<any>>
      %c0_i32_115 = arith.constant 0 : i32
      %c0_i32_116 = arith.constant 0 : i32
      %192 = tpu.memref_slice %arg22[%c1_i32_111, %c0_i32_115, %c0_i32_116] : memref<2x32x128xf32, #tpu.memory_space<vmem>> -> memref<1x32x128xf32, #tpu.memory_space<vmem>>
      %193 = tpu.memref_squeeze %192 : memref<1x32x128xf32, #tpu.memory_space<vmem>> -> memref<32x128xf32, #tpu.memory_space<vmem>>
      %194 = tpu.memref_slice %arg23[%c1_i32_112] : memref<2x!tpu.dma_semaphore, #tpu.memory_space<semaphore_mem>> -> memref<1x!tpu.dma_semaphore, #tpu.memory_space<semaphore_mem>>
      %195 = tpu.memref_squeeze %194 : memref<1x!tpu.dma_semaphore, #tpu.memory_space<semaphore_mem>> -> memref<!tpu.dma_semaphore, #tpu.memory_space<semaphore_mem>>
      tpu.wait_dma2 semaphore(%195 : memref<!tpu.dma_semaphore, #tpu.memory_space<semaphore_mem>>) src(%191 : memref<32x128xf32, #tpu.memory_space<any>>) dst(%193 : memref<32x128xf32, #tpu.memory_space<vmem>>)
      %c1 = arith.constant 1 : index
      %c0_117 = arith.constant 0 : index
      %c0_118 = arith.constant 0 : index
      %196 = vector.load %arg22[%c1, %c0_117, %c0_118] : memref<2x32x128xf32, #tpu.memory_space<vmem>>, vector<1x32x128xf32>
      %197 = vector.shape_cast %196 : vector<1x32x128xf32> to vector<32x128xf32>
      %198 = arith.truncf %197 : vector<32x128xf32> to vector<32x128xbf16>
      %c0_119 = arith.constant 0 : index
      %c0_120 = arith.constant 0 : index
      %199 = vector.load %arg6[%c0_119, %c0_120] : memref<128x256xbf16, #tpu.memory_space<vmem>>, vector<128x256xbf16>
      %cst_121 = arith.constant dense<0.000000e+00> : vector<32x256xf32>
      %200 = tpu.matmul %198, %199, %cst_121 {dimension_numbers = #tpu.dot_dimension_numbers<[1], [0], [0], [1], [0, 0, 1, 1], [], []>} : vector<32x128xbf16>, vector<128x256xbf16>, vector<32x256xf32> -> vector<32x256xf32>
      %c0_122 = arith.constant 0 : index
      %c0_123 = arith.constant 0 : index
      %201 = vector.load %arg7[%c0_122, %c0_123] : memref<1x256xf32, #tpu.memory_space<vmem>>, vector<1x256xf32>
      %202 = vector.broadcast %201 : vector<1x256xf32> to vector<32x256xf32>
      %203 = arith.addf %200, %202 : vector<32x256xf32>
      %204 = vector.extract_strided_slice %203 {offsets = [0, 0], sizes = [32, 128], strides = [1, 1]} : vector<32x256xf32> to vector<32x128xf32>
      %205 = arith.truncf %204 : vector<32x128xf32> to vector<32x128xbf16>
      %c32_124 = arith.constant 32 : index
      %c0_125 = arith.constant 0 : index
      %206 = vector.load %arg19[%c32_124, %c0_125] : memref<64x128xbf16, #tpu.memory_space<vmem>>, vector<32x128xbf16>
      tpu.vector_store %arg19[%c32_124, %c0_125], %205 {strides = array<i32>} : memref<64x128xbf16, #tpu.memory_space<vmem>>, vector<32x128xbf16>,
      %207 = vector.extract_strided_slice %203 {offsets = [0, 128], sizes = [32, 128], strides = [1, 1]} : vector<32x256xf32> to vector<32x128xf32>
      %208 = arith.truncf %207 : vector<32x128xf32> to vector<32x128xbf16>
      %c32_126 = arith.constant 32 : index
      %c0_127 = arith.constant 0 : index
      %209 = vector.load %arg20[%c32_126, %c0_127] : memref<64x128xbf16, #tpu.memory_space<vmem>>, vector<32x128xbf16>
      tpu.vector_store %arg20[%c32_126, %c0_127], %208 {strides = array<i32>} : memref<64x128xbf16, #tpu.memory_space<vmem>>, vector<32x128xbf16>,
    } else {
    }
    %c0 = arith.constant 0 : index
    %c0_1 = arith.constant 0 : index
    %c0_2 = arith.constant 0 : index
    %3 = vector.load %arg2[%c0, %c0_1, %c0_2] : memref<1x32x128xf32, #tpu.memory_space<vmem>>, vector<1x32x128xf32>
    %4 = vector.shape_cast %3 : vector<1x32x128xf32> to vector<32x128xf32>
    %5 = arith.truncf %4 : vector<32x128xf32> to vector<32x128xbf16>
    %c0_3 = arith.constant 0 : index
    %c0_4 = arith.constant 0 : index
    %6 = vector.load %arg4[%c0_3, %c0_4] : memref<128x128xbf16, #tpu.memory_space<vmem>>, vector<128x128xbf16>
    %cst = arith.constant dense<0.000000e+00> : vector<32x128xf32>
    %7 = tpu.matmul %5, %6, %cst {dimension_numbers = #tpu.dot_dimension_numbers<[1], [0], [0], [1], [0, 0, 1, 1], [], []>} : vector<32x128xbf16>, vector<128x128xbf16>, vector<32x128xf32> -> vector<32x128xf32>
    %c0_5 = arith.constant 0 : index
    %c0_6 = arith.constant 0 : index
    %8 = vector.load %arg5[%c0_5, %c0_6] : memref<1x128xf32, #tpu.memory_space<vmem>>, vector<1x128xf32>
    %9 = vector.broadcast %8 : vector<1x128xf32> to vector<32x128xf32>
    %10 = arith.addf %7, %9 : vector<32x128xf32>
    %11 = arith.truncf %10 : vector<32x128xf32> to vector<32x128xbf16>
    %12 = vector.extract_strided_slice %11 {offsets = [0, 0], sizes = [32, 32], strides = [1, 1]} : vector<32x128xbf16> to vector<32x32xbf16>
    %c0_7 = arith.constant 0 : index
    %c0_8 = arith.constant 0 : index
    %13 = vector.load %arg19[%c0_7, %c0_8] : memref<64x128xbf16, #tpu.memory_space<vmem>>, vector<64x32xbf16>
    %cst_9 = arith.constant dense<0.000000e+00> : vector<32x64xf32>
    %14 = tpu.matmul %12, %13, %cst_9 {dimension_numbers = #tpu.dot_dimension_numbers<[1], [1], [0], [0], [0, 0, 1, 0], [], []>} : vector<32x32xbf16>, vector<64x32xbf16>, vector<32x64xf32> -> vector<32x64xf32>
    %cst_10 = arith.constant dense<0xFF800000> : vector<32xf32>
    %15 = vector.multi_reduction <maximumf>, %14, %cst_10 [1] : vector<32x64xf32> to vector<32xf32>
    %16 = vector.shape_cast %15 : vector<32xf32> to vector<32x1xf32>
    %17 = vector.broadcast %16 : vector<32x1xf32> to vector<32x64xf32>
    %18 = arith.subf %14, %17 : vector<32x64xf32>
    %19 = math.exp %18 : vector<32x64xf32>
    %cst_11 = arith.constant dense<0.000000e+00> : vector<32xf32>
    %20 = vector.multi_reduction <add>, %19, %cst_11 [1] : vector<32x64xf32> to vector<32xf32>
    %21 = vector.shape_cast %20 : vector<32xf32> to vector<32x1xf32>
    %22 = tpu.reciprocal %21 {approx = true} : vector<32x1xf32> -> vector<32x1xf32>
    %23 = vector.broadcast %22 : vector<32x1xf32> to vector<32x64xf32>
    %24 = arith.mulf %19, %23 : vector<32x64xf32>
    %25 = arith.truncf %24 : vector<32x64xf32> to vector<32x64xbf16>
    %c0_12 = arith.constant 0 : index
    %c0_13 = arith.constant 0 : index
    %26 = vector.load %arg20[%c0_12, %c0_13] : memref<64x128xbf16, #tpu.memory_space<vmem>>, vector<64x32xbf16>
    %cst_14 = arith.constant dense<0.000000e+00> : vector<32x32xf32>
    %27 = tpu.matmul %25, %26, %cst_14 {dimension_numbers = #tpu.dot_dimension_numbers<[1], [0], [0], [1], [0, 0, 1, 1], [], []>} : vector<32x64xbf16>, vector<64x32xbf16>, vector<32x32xf32> -> vector<32x32xf32>
    %28 = arith.truncf %27 : vector<32x32xf32> to vector<32x32xbf16>
    %c0_15 = arith.constant 0 : index
    %c0_16 = arith.constant 0 : index
    %29 = vector.load %arg21[%c0_15, %c0_16] : memref<32x128xbf16, #tpu.memory_space<vmem>>, vector<32x32xbf16>
    tpu.vector_store %arg21[%c0_15, %c0_16], %28 {strides = array<i32>} : memref<32x128xbf16, #tpu.memory_space<vmem>>, vector<32x32xbf16>,
    %30 = vector.extract_strided_slice %11 {offsets = [0, 32], sizes = [32, 32], strides = [1, 1]} : vector<32x128xbf16> to vector<32x32xbf16>
    %c0_17 = arith.constant 0 : index
    %c32 = arith.constant 32 : index
    %31 = vector.load %arg19[%c0_17, %c32] : memref<64x128xbf16, #tpu.memory_space<vmem>>, vector<64x32xbf16>
    %cst_18 = arith.constant dense<0.000000e+00> : vector<32x64xf32>
    %32 = tpu.matmul %30, %31, %cst_18 {dimension_numbers = #tpu.dot_dimension_numbers<[1], [1], [0], [0], [0, 0, 1, 0], [], []>} : vector<32x32xbf16>, vector<64x32xbf16>, vector<32x64xf32> -> vector<32x64xf32>
    %cst_19 = arith.constant dense<0xFF800000> : vector<32xf32>
    %33 = vector.multi_reduction <maximumf>, %32, %cst_19 [1] : vector<32x64xf32> to vector<32xf32>
    %34 = vector.shape_cast %33 : vector<32xf32> to vector<32x1xf32>
    %35 = vector.broadcast %34 : vector<32x1xf32> to vector<32x64xf32>
    %36 = arith.subf %32, %35 : vector<32x64xf32>
    %37 = math.exp %36 : vector<32x64xf32>
    %cst_20 = arith.constant dense<0.000000e+00> : vector<32xf32>
    %38 = vector.multi_reduction <add>, %37, %cst_20 [1] : vector<32x64xf32> to vector<32xf32>
    %39 = vector.shape_cast %38 : vector<32xf32> to vector<32x1xf32>
    %40 = tpu.reciprocal %39 {approx = true} : vector<32x1xf32> -> vector<32x1xf32>
    %41 = vector.broadcast %40 : vector<32x1xf32> to vector<32x64xf32>
    %42 = arith.mulf %37, %41 : vector<32x64xf32>
    %43 = arith.truncf %42 : vector<32x64xf32> to vector<32x64xbf16>
    %c0_21 = arith.constant 0 : index
    %c32_22 = arith.constant 32 : index
    %44 = vector.load %arg20[%c0_21, %c32_22] : memref<64x128xbf16, #tpu.memory_space<vmem>>, vector<64x32xbf16>
    %cst_23 = arith.constant dense<0.000000e+00> : vector<32x32xf32>
    %45 = tpu.matmul %43, %44, %cst_23 {dimension_numbers = #tpu.dot_dimension_numbers<[1], [0], [0], [1], [0, 0, 1, 1], [], []>} : vector<32x64xbf16>, vector<64x32xbf16>, vector<32x32xf32> -> vector<32x32xf32>
    %46 = arith.truncf %45 : vector<32x32xf32> to vector<32x32xbf16>
    %c0_24 = arith.constant 0 : index
    %c32_25 = arith.constant 32 : index
    %47 = vector.load %arg21[%c0_24, %c32_25] : memref<32x128xbf16, #tpu.memory_space<vmem>>, vector<32x32xbf16>
    tpu.vector_store %arg21[%c0_24, %c32_25], %46 {strides = array<i32>} : memref<32x128xbf16, #tpu.memory_space<vmem>>, vector<32x32xbf16>,
    %48 = vector.extract_strided_slice %11 {offsets = [0, 64], sizes = [32, 32], strides = [1, 1]} : vector<32x128xbf16> to vector<32x32xbf16>
    %c0_26 = arith.constant 0 : index
    %c64 = arith.constant 64 : index
    %49 = vector.load %arg19[%c0_26, %c64] : memref<64x128xbf16, #tpu.memory_space<vmem>>, vector<64x32xbf16>
    %cst_27 = arith.constant dense<0.000000e+00> : vector<32x64xf32>
    %50 = tpu.matmul %48, %49, %cst_27 {dimension_numbers = #tpu.dot_dimension_numbers<[1], [1], [0], [0], [0, 0, 1, 0], [], []>} : vector<32x32xbf16>, vector<64x32xbf16>, vector<32x64xf32> -> vector<32x64xf32>
    %cst_28 = arith.constant dense<0xFF800000> : vector<32xf32>
    %51 = vector.multi_reduction <maximumf>, %50, %cst_28 [1] : vector<32x64xf32> to vector<32xf32>
    %52 = vector.shape_cast %51 : vector<32xf32> to vector<32x1xf32>
    %53 = vector.broadcast %52 : vector<32x1xf32> to vector<32x64xf32>
    %54 = arith.subf %50, %53 : vector<32x64xf32>
    %55 = math.exp %54 : vector<32x64xf32>
    %cst_29 = arith.constant dense<0.000000e+00> : vector<32xf32>
    %56 = vector.multi_reduction <add>, %55, %cst_29 [1] : vector<32x64xf32> to vector<32xf32>
    %57 = vector.shape_cast %56 : vector<32xf32> to vector<32x1xf32>
    %58 = tpu.reciprocal %57 {approx = true} : vector<32x1xf32> -> vector<32x1xf32>
    %59 = vector.broadcast %58 : vector<32x1xf32> to vector<32x64xf32>
    %60 = arith.mulf %55, %59 : vector<32x64xf32>
    %61 = arith.truncf %60 : vector<32x64xf32> to vector<32x64xbf16>
    %c0_30 = arith.constant 0 : index
    %c64_31 = arith.constant 64 : index
    %62 = vector.load %arg20[%c0_30, %c64_31] : memref<64x128xbf16, #tpu.memory_space<vmem>>, vector<64x32xbf16>
    %cst_32 = arith.constant dense<0.000000e+00> : vector<32x32xf32>
    %63 = tpu.matmul %61, %62, %cst_32 {dimension_numbers = #tpu.dot_dimension_numbers<[1], [0], [0], [1], [0, 0, 1, 1], [], []>} : vector<32x64xbf16>, vector<64x32xbf16>, vector<32x32xf32> -> vector<32x32xf32>
    %64 = arith.truncf %63 : vector<32x32xf32> to vector<32x32xbf16>
    %c0_33 = arith.constant 0 : index
    %c64_34 = arith.constant 64 : index
    %65 = vector.load %arg21[%c0_33, %c64_34] : memref<32x128xbf16, #tpu.memory_space<vmem>>, vector<32x32xbf16>
    tpu.vector_store %arg21[%c0_33, %c64_34], %64 {strides = array<i32>} : memref<32x128xbf16, #tpu.memory_space<vmem>>, vector<32x32xbf16>,
    %66 = vector.extract_strided_slice %11 {offsets = [0, 96], sizes = [32, 32], strides = [1, 1]} : vector<32x128xbf16> to vector<32x32xbf16>
    %c0_35 = arith.constant 0 : index
    %c96 = arith.constant 96 : index
    %67 = vector.load %arg19[%c0_35, %c96] : memref<64x128xbf16, #tpu.memory_space<vmem>>, vector<64x32xbf16>
    %cst_36 = arith.constant dense<0.000000e+00> : vector<32x64xf32>
    %68 = tpu.matmul %66, %67, %cst_36 {dimension_numbers = #tpu.dot_dimension_numbers<[1], [1], [0], [0], [0, 0, 1, 0], [], []>} : vector<32x32xbf16>, vector<64x32xbf16>, vector<32x64xf32> -> vector<32x64xf32>
    %cst_37 = arith.constant dense<0xFF800000> : vector<32xf32>
    %69 = vector.multi_reduction <maximumf>, %68, %cst_37 [1] : vector<32x64xf32> to vector<32xf32>
    %70 = vector.shape_cast %69 : vector<32xf32> to vector<32x1xf32>
    %71 = vector.broadcast %70 : vector<32x1xf32> to vector<32x64xf32>
    %72 = arith.subf %68, %71 : vector<32x64xf32>
    %73 = math.exp %72 : vector<32x64xf32>
    %cst_38 = arith.constant dense<0.000000e+00> : vector<32xf32>
    %74 = vector.multi_reduction <add>, %73, %cst_38 [1] : vector<32x64xf32> to vector<32xf32>
    %75 = vector.shape_cast %74 : vector<32xf32> to vector<32x1xf32>
    %76 = tpu.reciprocal %75 {approx = true} : vector<32x1xf32> -> vector<32x1xf32>
    %77 = vector.broadcast %76 : vector<32x1xf32> to vector<32x64xf32>
    %78 = arith.mulf %73, %77 : vector<32x64xf32>
    %79 = arith.truncf %78 : vector<32x64xf32> to vector<32x64xbf16>
    %c0_39 = arith.constant 0 : index
    %c96_40 = arith.constant 96 : index
    %80 = vector.load %arg20[%c0_39, %c96_40] : memref<64x128xbf16, #tpu.memory_space<vmem>>, vector<64x32xbf16>
    %cst_41 = arith.constant dense<0.000000e+00> : vector<32x32xf32>
    %81 = tpu.matmul %79, %80, %cst_41 {dimension_numbers = #tpu.dot_dimension_numbers<[1], [0], [0], [1], [0, 0, 1, 1], [], []>} : vector<32x64xbf16>, vector<64x32xbf16>, vector<32x32xf32> -> vector<32x32xf32>
    %82 = arith.truncf %81 : vector<32x32xf32> to vector<32x32xbf16>
    %c0_42 = arith.constant 0 : index
    %c96_43 = arith.constant 96 : index
    %83 = vector.load %arg21[%c0_42, %c96_43] : memref<32x128xbf16, #tpu.memory_space<vmem>>, vector<32x32xbf16>
    tpu.vector_store %arg21[%c0_42, %c96_43], %82 {strides = array<i32>} : memref<32x128xbf16, #tpu.memory_space<vmem>>, vector<32x32xbf16>,
    %c0_44 = arith.constant 0 : index
    %c0_45 = arith.constant 0 : index
    %84 = vector.load %arg21[%c0_44, %c0_45] : memref<32x128xbf16, #tpu.memory_space<vmem>>, vector<32x128xbf16>
    %c0_46 = arith.constant 0 : index
    %c0_47 = arith.constant 0 : index
    %85 = vector.load %arg8[%c0_46, %c0_47] : memref<128x128xbf16, #tpu.memory_space<vmem>>, vector<128x128xbf16>
    %cst_48 = arith.constant dense<0.000000e+00> : vector<32x128xf32>
    %86 = tpu.matmul %84, %85, %cst_48 {dimension_numbers = #tpu.dot_dimension_numbers<[1], [0], [0], [1], [0, 0, 1, 1], [], []>} : vector<32x128xbf16>, vector<128x128xbf16>, vector<32x128xf32> -> vector<32x128xf32>
    %c0_49 = arith.constant 0 : index
    %c0_50 = arith.constant 0 : index
    %87 = vector.load %arg9[%c0_49, %c0_50] : memref<1x128xf32, #tpu.memory_space<vmem>>, vector<1x128xf32>
    %88 = vector.broadcast %87 : vector<1x128xf32> to vector<32x128xf32>
    %89 = arith.addf %86, %88 : vector<32x128xf32>
    %90 = arith.addf %4, %89 : vector<32x128xf32>
    %c0_51 = arith.constant 0 : index
    %c0_52 = arith.constant 0 : index
    %91 = vector.load %arg10[%c0_51, %c0_52] : memref<1x128xf32, #tpu.memory_space<vmem>>, vector<1x128xf32>
    %c0_53 = arith.constant 0 : index
    %c0_54 = arith.constant 0 : index
    %92 = vector.load %arg11[%c0_53, %c0_54] : memref<1x128xf32, #tpu.memory_space<vmem>>, vector<1x128xf32>
    %cst_55 = arith.constant dense<0.000000e+00> : vector<32xf32>
    %93 = vector.multi_reduction <add>, %90, %cst_55 [1] : vector<32x128xf32> to vector<32xf32>
    %94 = vector.shape_cast %93 : vector<32xf32> to vector<32x1xf32>
    %cst_56 = arith.constant 1.280000e+02 : f32
    %95 = vector.broadcast %cst_56 : f32 to vector<32x1xf32>
    %96 = arith.divf %94, %95 : vector<32x1xf32>
    %97 = vector.broadcast %96 : vector<32x1xf32> to vector<32x128xf32>
    %98 = arith.subf %90, %97 : vector<32x128xf32>
    %99 = arith.mulf %98, %98 : vector<32x128xf32>
    %cst_57 = arith.constant dense<0.000000e+00> : vector<32xf32>
    %100 = vector.multi_reduction <add>, %99, %cst_57 [1] : vector<32x128xf32> to vector<32xf32>
    %101 = vector.shape_cast %100 : vector<32xf32> to vector<32x1xf32>
    %cst_58 = arith.constant 1.280000e+02 : f32
    %102 = vector.broadcast %cst_58 : f32 to vector<32x1xf32>
    %103 = arith.divf %101, %102 : vector<32x1xf32>
    %cst_59 = arith.constant 9.99999974E-6 : f32
    %104 = vector.broadcast %cst_59 : f32 to vector<32x1xf32>
    %105 = arith.addf %103, %104 : vector<32x1xf32>
    %106 = math.rsqrt %105 : vector<32x1xf32>
    %107 = vector.broadcast %96 : vector<32x1xf32> to vector<32x128xf32>
    %108 = arith.subf %90, %107 : vector<32x128xf32>
    %109 = vector.broadcast %106 : vector<32x1xf32> to vector<32x128xf32>
    %110 = arith.mulf %108, %109 : vector<32x128xf32>
    %111 = vector.broadcast %91 : vector<1x128xf32> to vector<32x128xf32>
    %112 = arith.mulf %110, %111 : vector<32x128xf32>
    %113 = vector.broadcast %92 : vector<1x128xf32> to vector<32x128xf32>
    %114 = arith.addf %112, %113 : vector<32x128xf32>
    %115 = arith.truncf %114 : vector<32x128xf32> to vector<32x128xbf16>
    %c0_60 = arith.constant 0 : index
    %c0_61 = arith.constant 0 : index
    %116 = vector.load %arg12[%c0_60, %c0_61] : memref<128x256xbf16, #tpu.memory_space<vmem>>, vector<128x256xbf16>
    %cst_62 = arith.constant dense<0.000000e+00> : vector<32x256xf32>
    %117 = tpu.matmul %115, %116, %cst_62 {dimension_numbers = #tpu.dot_dimension_numbers<[1], [0], [0], [1], [0, 0, 1, 1], [], []>} : vector<32x128xbf16>, vector<128x256xbf16>, vector<32x256xf32> -> vector<32x256xf32>
    %c0_63 = arith.constant 0 : index
    %c0_64 = arith.constant 0 : index
    %118 = vector.load %arg13[%c0_63, %c0_64] : memref<1x256xf32, #tpu.memory_space<vmem>>, vector<1x256xf32>
    %119 = vector.broadcast %118 : vector<1x256xf32> to vector<32x256xf32>
    %120 = arith.addf %117, %119 : vector<32x256xf32>
    %121 = arith.truncf %120 : vector<32x256xf32> to vector<32x256xbf16>
    %cst_65 = arith.constant 0.000000e+00 : bf16
    %122 = vector.broadcast %cst_65 : bf16 to vector<32x256xbf16>
    %123 = arith.maximumf %121, %122 : vector<32x256xbf16>
    %c0_66 = arith.constant 0 : index
    %c0_67 = arith.constant 0 : index
    %124 = vector.load %arg14[%c0_66, %c0_67] : memref<256x128xbf16, #tpu.memory_space<vmem>>, vector<256x128xbf16>
    %cst_68 = arith.constant dense<0.000000e+00> : vector<32x128xf32>
    %125 = tpu.matmul %123, %124, %cst_68 {dimension_numbers = #tpu.dot_dimension_numbers<[1], [0], [0], [1], [0, 0, 1, 1], [], []>} : vector<32x256xbf16>, vector<256x128xbf16>, vector<32x128xf32> -> vector<32x128xf32>
    %c0_69 = arith.constant 0 : index
    %c0_70 = arith.constant 0 : index
    %126 = vector.load %arg15[%c0_69, %c0_70] : memref<1x128xf32, #tpu.memory_space<vmem>>, vector<1x128xf32>
    %127 = vector.broadcast %126 : vector<1x128xf32> to vector<32x128xf32>
    %128 = arith.addf %125, %127 : vector<32x128xf32>
    %129 = arith.addf %114, %128 : vector<32x128xf32>
    %c0_71 = arith.constant 0 : index
    %c0_72 = arith.constant 0 : index
    %130 = vector.load %arg16[%c0_71, %c0_72] : memref<1x128xf32, #tpu.memory_space<vmem>>, vector<1x128xf32>
    %c0_73 = arith.constant 0 : index
    %c0_74 = arith.constant 0 : index
    %131 = vector.load %arg17[%c0_73, %c0_74] : memref<1x128xf32, #tpu.memory_space<vmem>>, vector<1x128xf32>
    %cst_75 = arith.constant dense<0.000000e+00> : vector<32xf32>
    %132 = vector.multi_reduction <add>, %129, %cst_75 [1] : vector<32x128xf32> to vector<32xf32>
    %133 = vector.shape_cast %132 : vector<32xf32> to vector<32x1xf32>
    %cst_76 = arith.constant 1.280000e+02 : f32
    %134 = vector.broadcast %cst_76 : f32 to vector<32x1xf32>
    %135 = arith.divf %133, %134 : vector<32x1xf32>
    %136 = vector.broadcast %135 : vector<32x1xf32> to vector<32x128xf32>
    %137 = arith.subf %129, %136 : vector<32x128xf32>
    %138 = arith.mulf %137, %137 : vector<32x128xf32>
    %cst_77 = arith.constant dense<0.000000e+00> : vector<32xf32>
    %139 = vector.multi_reduction <add>, %138, %cst_77 [1] : vector<32x128xf32> to vector<32xf32>
    %140 = vector.shape_cast %139 : vector<32xf32> to vector<32x1xf32>
    %cst_78 = arith.constant 1.280000e+02 : f32
    %141 = vector.broadcast %cst_78 : f32 to vector<32x1xf32>
    %142 = arith.divf %140, %141 : vector<32x1xf32>
    %cst_79 = arith.constant 9.99999974E-6 : f32
    %143 = vector.broadcast %cst_79 : f32 to vector<32x1xf32>
    %144 = arith.addf %142, %143 : vector<32x1xf32>
    %145 = math.rsqrt %144 : vector<32x1xf32>
    %146 = vector.broadcast %135 : vector<32x1xf32> to vector<32x128xf32>
    %147 = arith.subf %129, %146 : vector<32x128xf32>
    %148 = vector.broadcast %145 : vector<32x1xf32> to vector<32x128xf32>
    %149 = arith.mulf %147, %148 : vector<32x128xf32>
    %150 = vector.broadcast %130 : vector<1x128xf32> to vector<32x128xf32>
    %151 = arith.mulf %149, %150 : vector<32x128xf32>
    %152 = vector.broadcast %131 : vector<1x128xf32> to vector<32x128xf32>
    %153 = arith.addf %151, %152 : vector<32x128xf32>
    %154 = arith.truncf %153 : vector<32x128xf32> to vector<32x128xbf16>
    %c0_80 = arith.constant 0 : index
    %c0_81 = arith.constant 0 : index
    %c0_82 = arith.constant 0 : index
    %155 = vector.load %arg18[%c0_80, %c0_81, %c0_82] : memref<1x32x128xbf16, #tpu.memory_space<vmem>>, vector<1x32x128xbf16>
    %156 = vector.shape_cast %155 : vector<1x32x128xbf16> to vector<32x128xbf16>
    %157 = vector.shape_cast %154 : vector<32x128xbf16> to vector<1x32x128xbf16>
    tpu.vector_store %arg18[%c0_80, %c0_81, %c0_82], %157 {strides = array<i32>} : memref<1x32x128xbf16, #tpu.memory_space<vmem>>, vector<1x32x128xbf16>,
    return
  }
  func.func @transform_0(%arg0: i32, %arg1: i32) -> (i32, i32, i32) {
    %c0_i32 = arith.constant 0 : i32
    %c0_i32_0 = arith.constant 0 : i32
    return %arg0, %arg1, %c0_i32 : i32, i32, i32
  }
  func.func @transform_2(%arg0: i32, %arg1: i32) -> (i32, i32) {
    %c0_i32 = arith.constant 0 : i32
    %c0_i32_0 = arith.constant 0 : i32
    %c0_i32_1 = arith.constant 0 : i32
    return %c0_i32, %c0_i32_0 : i32, i32
  }
  func.func @transform_3(%arg0: i32, %arg1: i32) -> (i32, i32) {
    %c0_i32 = arith.constant 0 : i32
    %c0_i32_0 = arith.constant 0 : i32
    %c0_i32_1 = arith.constant 0 : i32
    return %c0_i32, %c0_i32_0 : i32, i32
  }
  func.func @transform_4(%arg0: i32, %arg1: i32) -> (i32, i32) {
    %c0_i32 = arith.constant 0 : i32
    %c0_i32_0 = arith.constant 0 : i32
    %c0_i32_1 = arith.constant 0 : i32
    return %c0_i32, %c0_i32_0 : i32, i32
  }
  func.func @transform_5(%arg0: i32, %arg1: i32) -> (i32, i32) {
    %c0_i32 = arith.constant 0 : i32
    %c0_i32_0 = arith.constant 0 : i32
    %c0_i32_1 = arith.constant 0 : i32
    return %c0_i32, %c0_i32_0 : i32, i32
  }
  func.func @transform_6(%arg0: i32, %arg1: i32) -> (i32, i32) {
    %c0_i32 = arith.constant 0 : i32
    %c0_i32_0 = arith.constant 0 : i32
    %c0_i32_1 = arith.constant 0 : i32
    return %c0_i32, %c0_i32_0 : i32, i32
  }
  func.func @transform_7(%arg0: i32, %arg1: i32) -> (i32, i32) {
    %c0_i32 = arith.constant 0 : i32
    %c0_i32_0 = arith.constant 0 : i32
    %c0_i32_1 = arith.constant 0 : i32
    return %c0_i32, %c0_i32_0 : i32, i32
  }
  func.func @transform_8(%arg0: i32, %arg1: i32) -> (i32, i32) {
    %c0_i32 = arith.constant 0 : i32
    %c0_i32_0 = arith.constant 0 : i32
    %c0_i32_1 = arith.constant 0 : i32
    return %c0_i32, %c0_i32_0 : i32, i32
  }
  func.func @transform_9(%arg0: i32, %arg1: i32) -> (i32, i32) {
    %c0_i32 = arith.constant 0 : i32
    %c0_i32_0 = arith.constant 0 : i32
    %c0_i32_1 = arith.constant 0 : i32
    return %c0_i32, %c0_i32_0 : i32, i32
  }
  func.func @transform_10(%arg0: i32, %arg1: i32) -> (i32, i32) {
    %c0_i32 = arith.constant 0 : i32
    %c0_i32_0 = arith.constant 0 : i32
    %c0_i32_1 = arith.constant 0 : i32
    return %c0_i32, %c0_i32_0 : i32, i32
  }
  func.func @transform_11(%arg0: i32, %arg1: i32) -> (i32, i32) {
    %c0_i32 = arith.constant 0 : i32
    %c0_i32_0 = arith.constant 0 : i32
    %c0_i32_1 = arith.constant 0 : i32
    return %c0_i32, %c0_i32_0 : i32, i32
  }
  func.func @transform_12(%arg0: i32, %arg1: i32) -> (i32, i32) {
    %c0_i32 = arith.constant 0 : i32
    %c0_i32_0 = arith.constant 0 : i32
    %c0_i32_1 = arith.constant 0 : i32
    return %c0_i32, %c0_i32_0 : i32, i32
  }
  func.func @transform_13(%arg0: i32, %arg1: i32) -> (i32, i32) {
    %c0_i32 = arith.constant 0 : i32
    %c0_i32_0 = arith.constant 0 : i32
    %c0_i32_1 = arith.constant 0 : i32
    return %c0_i32, %c0_i32_0 : i32, i32
  }
  func.func @transform_14(%arg0: i32, %arg1: i32) -> (i32, i32) {
    %c0_i32 = arith.constant 0 : i32
    %c0_i32_0 = arith.constant 0 : i32
    %c0_i32_1 = arith.constant 0 : i32
    return %c0_i32, %c0_i32_0 : i32, i32
  }
  func.func @transform_15(%arg0: i32, %arg1: i32) -> (i32, i32) {
    %c0_i32 = arith.constant 0 : i32
    %c0_i32_0 = arith.constant 0 : i32
    %c0_i32_1 = arith.constant 0 : i32
    return %c0_i32, %c0_i32_0 : i32, i32
  }
  func.func @transform_16(%arg0: i32, %arg1: i32) -> (i32, i32, i32) {
    %c0_i32 = arith.constant 0 : i32
    %c0_i32_0 = arith.constant 0 : i32
    return %arg0, %arg1, %c0_i32 : i32, i32, i32
  }
}

</mosaic_0001>

<bundles_post_ra>
// kernel: tpu_custom_call.1
= control target key start
LH: loop header
LB: loop body
LE: loop exit
PB: predicated region body
PF: predicated region fallthrough
CT: control target
= control target key end

     0   :  { %s4663_s0 = inlined_call_operand.hbm [shape: f32[2,64,128], index: 0, kind: input, shape index: {}]   ;;  %s4664_s1 = inlined_call_operand.hbm [shape: f32[2,64,128], index: 1, kind: input, shape index: {}]   ;;  %s4665_s2 = inlined_call_operand.hbm [shape: bf16[128,128], index: 2, kind: input, shape index: {}]   ;;  %s4666_s3 = inlined_call_operand.vmem [shape: f32[1,128], index: 3, kind: input, shape index: {}]   ;;  %s4667_s4 = inlined_call_operand.hbm [shape: bf16[128,256], index: 4, kind: input, shape index: {}]   ;;  %s4668_s5 = inlined_call_operand.vmem [shape: f32[1,256], index: 5, kind: input, shape index: {}]   ;;  %s4669_s6 = inlined_call_operand.hbm [shape: bf16[128,128], index: 6, kind: input, shape index: {}]   ;;  %s4670_s7 = inlined_call_operand.vmem [shape: f32[1,128], index: 7, kind: input, shape index: {}]   ;;  %s4671_s8 = inlined_call_operand.vmem [shape: f32[1,128], index: 8, kind: input, shape index: {}]   ;;  %s4672_s9 = inlined_call_operand.vmem [shape: f32[1,128], index: 9, kind: input, shape index: {}]   ;;  %s4673_s10 = inlined_call_operand.hbm [shape: bf16[128,256], index: 10, kind: input, shape index: {}]   ;;  %s4674_s11 = inlined_call_operand.vmem [shape: f32[1,256], index: 11, kind: input, shape index: {}]   ;;  %s4675_s12 = inlined_call_operand.hbm [shape: bf16[256,128], index: 12, kind: input, shape index: {}]   ;;  %s4676_s13 = inlined_call_operand.vmem [shape: f32[1,128], index: 13, kind: input, shape index: {}]   ;;  %s4677_s14 = inlined_call_operand.vmem [shape: f32[1,128], index: 14, kind: input, shape index: {}]   ;;  %s4678_s15 = inlined_call_operand.vmem [shape: f32[1,128], index: 15, kind: input, shape index: {}]   ;;  %s4679_s16 = inlined_call_operand.hbm [shape: bf16[2,64,128], index: 16, kind: output, shape index: {}]  }
   0x1   :  { %4693 = sst [smem:[#allocation32_spill]] %s4663_s0 }
   0x2   :  { %4694 = sst [smem:[#allocation33_spill]] %s4664_s1 }
   0x3   :  { %4695 = sst [smem:[#allocation34_spill]] %s4665_s2 }
   0x4   :  { %4696 = sst [smem:[#allocation35_spill]] %s4666_s3 }
   0x5   :  { %4697 = sst [smem:[#allocation36_spill]] %s4667_s4 }
   0x6   :  { %4698 = sst [smem:[#allocation37_spill]] %s4668_s5 }
   0x7   :  { %4699 = sst [smem:[#allocation38_spill]] %s4669_s6 }
   0x8   :  { %4700 = sst [smem:[#allocation39_spill]] %s4670_s7 }
   0x9   :  { %4701 = sst [smem:[#allocation40_spill]] %s4671_s8 }
   0xa   :  { %4702 = sst [smem:[#allocation41_spill]] %s4672_s9 }
   0xb   :  { %4703 = sst [smem:[#allocation42_spill]] %s4673_s10 }
   0xc   :  { %4704 = sst [smem:[#allocation43_spill]] %s4674_s11 }
   0xd   :  { %4705 = sst [smem:[#allocation44_spill]] %s4676_s13 }
   0xe   :  { %4706 = sst [smem:[#allocation45_spill]] %s4677_s14 }
   0xf   :  { %4707 = sst [smem:[#allocation46_spill]] %s4678_s15 }
  0x10   :  { %4708 = sst [smem:[#allocation47_spill]] %s4679_s16 }
  0x11   :  { %21 = vsyncpa [#allocation8], 0 }
  0x12   :  { %23 = vsyncpa [#allocation8 + $0x1], 0 }
  0x13   :  { %24 = vsyncpa [#allocation11], 0 }
  0x14   :  { %25 = vsyncpa [#allocation14], 0 }
  0x15   :  { %26 = vsyncpa [#allocation17], 0 }
  0x16   :  { %27 = vsyncpa [#allocation9], 0 }
  0x17   :  { %29 = vsyncpa [#allocation9 + $0x1], 0  ;;  %s3957_s21 = smov 0   ;;  %s3959_s22 = smov 0  }
  0x18   :  { %s3961_s23 = smov 0   ;;  %s3963_s24 = smov 0  }
  0x19   :  { %s3965_s25 = smov 0   ;;  %s3967_s26 = smov 0  }
  0x1a   :  { %s3969_s27 = smov 0   ;;  %s3971_s28 = smov 0  }
  0x1b LB: > { %s4681_s29 = sadd.s32 4294967295, %s3851_s28   ;;  %p2785_p0 = scmp.ge.s32.totalorder %s3851_s28, 1  ;;  %s3851_s28 = sphi %s3971_s28, %s35_s28   ;;  %s3847_s27 = sphi %s3969_s27, %s4751_s27   ;;  %s3843_s26 = sphi %s3967_s26, %s4750_s26   ;;  %s3839_s25 = sphi %s3965_s25, %s4749_s25   ;;  %s3835_s24 = sphi %s3963_s24, %s4748_s24   ;;  %s3831_s23 = sphi %s3961_s23, %s4747_s23   ;;  %s3827_s22 = sphi %s3959_s22, %s4746_s22   ;;  %s3823_s21 = sphi %s3957_s21, %s4745_s21  }
  0x1c   : > { %p4001_p1 = scmp.eq.s32.totalorder %s4681_s29, 0  ;;  %p402_p2 = scmp.lt.s32.totalorder %s3851_s28, 5 }
  0x1d   : > { %s3853_s17 = smov [#allocation10]   ;;  %s3854_s20 = smov [#allocation13]  }
  0x1e   : > { %s4709_s30 = scalar_select %p4001_p1, 1, 0 }
  0x1f   : > { %p4006_p3 = pnand %p2785_p0, %p402_p2  ;;  %s414_s18 = sshll.u32 %s3853_s17, 4  ;;  %s4010_s18 = int_to_ptr.vmem [resolvable:$true] %s414_s18 }
  0x20   : > { %s446_s29 = sshll.u32 %s3854_s20, 4  ;;  %s3855_s16 = smov [#allocation12]   ;;  %s4020_s29 = int_to_ptr.vmem [resolvable:$true] %s446_s29 }
  0x21   : > { %s4710_s0 = scalar_select %p4006_p3, 1, 0 }
  0x22   : > { %p3213_p4 = pneg %p4006_p3  ;;  %s4022_s15 = sshll.u32 %s3855_s16, 4  ;;  %s431_s15 = int_to_ptr.vmem [resolvable:$true] %s4022_s15 }
  0x23   : > { %s4712_s2 = sld [smem:[#allocation34_spill]] }
  0x24   : > { %p4016_p5 = pnand %p3213_p4, %p4001_p1 }
  0x26   : > { %p4032_p7 = pneg %p4016_p5 }
  0x29   : > { %s3518_s17 = scalar_lea.hbm %s4712_s2, 1024 }
  0x2a   : > { %p3519_p6 = scmp.ne.s32.totalorder %s4712_s2, %s3518_s17  ;;  %p3525_p10 = scmp.lt.u32.totalorder %s3518_s17, %s4712_s2 }
  0x2c   : > { %p3521_p8 = pnand %p4032_p7, %p3519_p6 }
  0x2e   : > { %p3522_p9 = pneg %p3521_p8 }
  0x30   : > { %p3527_p11 = pnand %p3525_p10, %p3522_p9 }
  0x32   : > { %3530 = shalt.err (!%p3527_p11)
}
  0x33   : > { %s3531_s9 = scalar_lea.vmem %s4010_s18, 1024  ;;  %p3539_p2 = scmp.lt.s32.totalorder %s4010_s18, %s4010_s18 }
  0x34   : > { %p3532_p12 = scmp.ne.s32.totalorder %s4010_s18, %s3531_s9  ;;  %p3540_p4 = scmp.lt.s32.totalorder %s3531_s9, %s3531_s9 }
  0x36   : > { %p3534_p13 = pnand %p3532_p12, %p4032_p7  ;;  %p3541_p6 = por %p3540_p4, %p3539_p2 }
  0x38   : > { %p3535_p0 = pneg %p3534_p13 }
  0x3a   : > { %p3542_p8 = pnand %p3541_p6, %p3535_p0 }
  0x3c   : > { %3545 = shalt.err (!%p3542_p8)
}
  0x3d   : > { %s4688_s11 = smov 64   ;;  %s4689_s13 = smov 4  }
  0x3e   : > { %3216 = dma.hbm_to_vmem [thread:$0]  (!%p4016_p5), %s4712_s2, 1024, %s4010_s18, [#allocation11], %s4688_s11, %s4688_s11, %s4689_s13  }
  0x3f   : > { %s4714_s6 = sld [smem:[#allocation38_spill]] }
  0x45   : > { %s3546_s9 = scalar_lea.hbm %s4714_s6, 1024 }
  0x46   : > { %p3547_p9 = scmp.ne.s32.totalorder %s4714_s6, %s3546_s9  ;;  %p3553_p12 = scmp.lt.u32.totalorder %s3546_s9, %s4714_s6 }
  0x48   : > { %p3549_p10 = pnand %p3547_p9, %p4032_p7 }
  0x4a   : > { %p3550_p11 = pneg %p3549_p10 }
  0x4c   : > { %p3555_p13 = pnand %p3553_p12, %p3550_p11 }
  0x4e   : > { %3558 = shalt.err (!%p3555_p13)
}
  0x4f   : > { %s3559_s18 = scalar_lea.vmem %s4020_s29, 1024  ;;  %p3567_p6 = scmp.lt.s32.totalorder %s4020_s29, %s4020_s29 }
  0x50   : > { %p3560_p0 = scmp.ne.s32.totalorder %s4020_s29, %s3559_s18  ;;  %p3568_p8 = scmp.lt.s32.totalorder %s3559_s18, %s3559_s18 }
  0x52   : > { %p3562_p2 = pnand %p3560_p0, %p4032_p7  ;;  %p3569_p9 = por %p3568_p8, %p3567_p6 }
  0x54   : > { %p3563_p4 = pneg %p3562_p2 }
  0x56   : > { %p3570_p10 = pnand %p3569_p9, %p3563_p4 }
  0x58   : > { %3573 = shalt.err (!%p3570_p10)
}
  0x59   : > { %3222 = dma.hbm_to_vmem [thread:$0]  (!%p4016_p5), %s4714_s6, 1024, %s4020_s29, [#allocation14], %s4688_s11, %s4688_s11, %s4689_s13  }
  0x5a   : > { %s4715_s4 = sld [smem:[#allocation36_spill]] }
  0x60   : > { %s3574_s14 = scalar_lea.hbm %s4715_s4, 2048 }
  0x61   : > { %p3575_p11 = scmp.ne.s32.totalorder %s4715_s4, %s3574_s14  ;;  %p3581_p0 = scmp.lt.u32.totalorder %s3574_s14, %s4715_s4 }
  0x63   : > { %p3577_p12 = pnand %p3575_p11, %p4032_p7 }
  0x65   : > { %p3578_p13 = pneg %p3577_p12 }
  0x67   : > { %p3583_p2 = pnand %p3581_p0, %p3578_p13 }
  0x69   : > { %3586 = shalt.err (!%p3583_p2)
}
  0x6a   : > { %s3587_s18 = scalar_lea.vmem %s431_s15, 2048  ;;  %p3595_p9 = scmp.lt.s32.totalorder %s431_s15, %s431_s15 }
  0x6b   : > { %p3588_p4 = scmp.ne.s32.totalorder %s431_s15, %s3587_s18  ;;  %p3596_p10 = scmp.lt.s32.totalorder %s3587_s18, %s3587_s18 }
  0x6d   : > { %p3590_p6 = pnand %p3588_p4, %p4032_p7  ;;  %p3597_p3 = por %p3596_p10, %p3595_p9 }
  0x6f   : > { %p3591_p8 = pneg %p3590_p6 }
  0x71   : > { %p3598_p1 = pnand %p3597_p3, %p3591_p8 }
  0x73   : > { %3601 = shalt.err (!%p3598_p1)
}
  0x74   : > { %s4690_s29 = smov 128   ;;  %s4691_s1 = smov 8  }
  0x75   : > { %3219 = dma.hbm_to_vmem [thread:$0]  (!%p4016_p5), %s4715_s4, 2048, %s431_s15, [#allocation11], %s4690_s29, %s4690_s29, %s4691_s1  }
  0x76   : > { %s3860_s7 = smov [#allocation15]   ;;  %s3861_s17 = smov [#allocation16]  }
  0x77   : > { %s468_s14 = sshll.u32 %s3860_s7, 4  ;;  %s484_s20 = sshll.u32 %s3861_s17, 4  ;;  %s469_s14 = int_to_ptr.vmem [resolvable:$true] %s468_s14  ;;  %s485_s20 = int_to_ptr.vmem [resolvable:$true] %s484_s20 }
  0x78   : > { %s4716_s10 = sld [smem:[#allocation42_spill]] }
  0x7e   : > { %s3602_s18 = scalar_lea.hbm %s4716_s10, 2048 }
  0x7f   : > { %p3603_p1 = scmp.ne.s32.totalorder %s4716_s10, %s3602_s18  ;;  %p3609_p12 = scmp.lt.u32.totalorder %s3602_s18, %s4716_s10 }
  0x81   : > { %p3605_p3 = pnand %p3603_p1, %p4032_p7 }
  0x83   : > { %p3606_p11 = pneg %p3605_p3 }
  0x85   : > { %p3611_p13 = pnand %p3609_p12, %p3606_p11 }
  0x87   : > { %3614 = shalt.err (!%p3611_p13)
}
  0x88   : > { %s3615_s15 = scalar_lea.vmem %s469_s14, 2048  ;;  %p3623_p6 = scmp.lt.s32.totalorder %s469_s14, %s469_s14 }
  0x89   : > { %p3616_p0 = scmp.ne.s32.totalorder %s469_s14, %s3615_s15  ;;  %p3624_p8 = scmp.lt.s32.totalorder %s3615_s15, %s3615_s15 }
  0x8b   : > { %p3618_p2 = pnand %p3616_p0, %p4032_p7  ;;  %p3625_p9 = por %p3624_p8, %p3623_p6 }
  0x8d   : > { %p3619_p4 = pneg %p3618_p2 }
  0x8f   : > { %p3626_p10 = pnand %p3625_p9, %p3619_p4 }
  0x91   : > { %3629 = shalt.err (!%p3626_p10)
}
  0x92   : > { %3225 = dma.hbm_to_vmem [thread:$0]  (!%p4016_p5), %s4716_s10, 2048, %s469_s14, [#allocation14], %s4690_s29, %s4690_s29, %s4691_s1  }
  0x93   : > { %s3630_s3 = scalar_lea.hbm %s4675_s12, 2048 }
  0x94   : > { %p3631_p1 = scmp.ne.s32.totalorder %s4675_s12, %s3630_s3  ;;  %p3637_p12 = scmp.lt.u32.totalorder %s3630_s3, %s4675_s12 }
  0x96   : > { %p3633_p3 = pnand %p3631_p1, %p4032_p7 }
  0x98   : > { %p3634_p11 = pneg %p3633_p3 }
  0x9a   : > { %p3639_p13 = pnand %p3637_p12, %p3634_p11 }
  0x9c   : > { %3642 = shalt.err (!%p3639_p13)
}
  0x9d   : > { %s3643_s9 = scalar_lea.vmem %s485_s20, 2048  ;;  %p3651_p6 = scmp.lt.s32.totalorder %s485_s20, %s485_s20 }
  0x9e   : > { %p3644_p0 = scmp.ne.s32.totalorder %s485_s20, %s3643_s9  ;;  %p3652_p8 = scmp.lt.s32.totalorder %s3643_s9, %s3643_s9 }
  0xa0   : > { %p3646_p2 = pnand %p3644_p0, %p4032_p7  ;;  %p3653_p9 = por %p3652_p8, %p3651_p6 }
  0xa2   : > { %p3647_p4 = pneg %p3646_p2 }
  0xa4   : > { %p3654_p10 = pnand %p3653_p9, %p3647_p4 }
  0xa6   : > { %3657 = shalt.err (!%p3654_p10)
}
  0xa7   : > { %s4717_s14 = smov 4   ;;  %s4718_s18 = smov 64  }
  0xa8   : > { %3228 = dma.hbm_to_vmem [thread:$0]  (!%p4016_p5), %s4675_s12, 2048, %s485_s20, [#allocation17], %s4718_s18, %s4718_s18, %s4717_s14  }
  0xa9   : > { %s2784_s8 = sadd.s32 4294967294, %s3851_s28   ;;  %s44_s19 = sadd.s32 1, %s3843_s26 }
  0xaa   : > { %s47_s6 = sadd.s32 1, %s3847_s27  ;;  %p45_p7 = scmp.ge.s32.totalorder %s44_s19, 2 }
  0xab   : > { %s56_s11 = sadd.s32 1, %s3831_s23  ;;  %p63_p1 = scmp.ne.s32.totalorder %s3831_s23, %s3827_s22 }
  0xac   : > { %p64_p3 = scmp.eq.s32.totalorder %s3851_s28, 0  ;;  %s4753_s19 = smov (%p45_p7, %s44_s19), 0 }
  0xad   : > { %s4755_s6 = smov (!%p45_p7, %s47_s6), %s3847_s27  ;;  %s52_s13 = ssub.s32 %s3843_s26, %s4753_s19 }
  0xae   : > { %p4158_p11 = por %p64_p3, %p63_p1  ;;  %p49_p5 = scmp.ge.s32.totalorder %s4755_s6, 2 }
  0xaf   : > { %p69_p12 = scmp.ne.s32.totalorder %s3827_s22, %s3823_s21  ;;  %s4720_s20 = sadd.s32 4294967295, %s3851_s28  }
  0xb0   : > { %p389_p13 = scmp.eq.s32.totalorder %s4720_s20, 3  ;;  %p395_p0 = scmp.eq.s32.totalorder %s2784_s8, 3 }
  0xb1   : > { %s4757_s6 = smov (%p49_p5, %s4755_s6), 0  ;;  %p4721_p2 = scmp.ne.s32.totalorder %s4709_s30, 0 }
  0xb2   : > { %p4174_p6 = por %p389_p13, %p63_p1  ;;  %s51_s17 = ssub.s32 %s3847_s27, %s4757_s6 }
  0xb3   : > { %p4170_p4 = por %p4721_p2, %p69_p12  ;;  %p4180_p8 = por %p395_p0, %p69_p12 }
  0xb4   : > { %s4723_s7 = scalar_select %p4174_p6, 1, 0 }
  0xb5   : > { %s4724_s16 = scalar_select %p4180_p8, 1, 0 }
  0xb6   : > { %s53_s9 = sor.u32 %s52_s13, %s51_s17  ;;  %p3242_p9 = scmp.lt.s32.totalorder %s3851_s28, 4 }
  0xb7   : > { %p54_p10 = scmp.eq.s32.totalorder %s53_s9, 0  ;;  %s507_s14 = sand.u32 1, %s3831_s23  }
  0xb8   : > { %s2792_s18 = sshll.u32 %s507_s14, 5  ;;  %s2793_s2 = sshll.u32 %s3843_s26, 2 }
  0xb9   : > { %s4187_s15 = scalar_select %p54_p10, %s3831_s23, %s56_s11  }
  0xba   : > { %s2794_s8 = sshll.u32 %s3847_s27, 3  ;;  %s511_s20 = scalar_lea.vmem [#allocation7], %s2792_s18 }
  0xbb   : > { %s520_s29 = sshll.u32 %s511_s20, 4  ;;  %s517_s1 = sadd.s32 %s2794_s8, %s2793_s2  ;;  %s4191_s29 = int_to_ptr.vmem [resolvable:$true] %s520_s29 }
  0xbc   : > { %s2795_s4 = sshll.u32 %s517_s1, 7  ;;  %p4195_p7 = pnand %p3242_p9, %p4158_p11 }
  0xbd   : > { %s4726_s9 = sld [smem:[#allocation32_spill]]  ;;  %s4204_s18 = scalar_lea.sflag [#allocation8], %s507_s14 }
  0xbe   : > { %p3660_p3 = pneg %p4195_p7 }
  0xc3   : > { %s4202_s11 = scalar_lea.hbm %s4726_s9, %s2795_s4  ;;  %s3663_s8 = scalar_lea.hbm %s4726_s9, 2048 }
  0xc4   : > { %s3658_s2 = scalar_lea.hbm %s4202_s11, 512  ;;  %p3664_p12 = scmp.lt.u32.totalorder %s4202_s11, %s4726_s9 }
  0xc5   : > { %p3659_p1 = scmp.ne.s32.totalorder %s4202_s11, %s3658_s2  ;;  %p3665_p13 = scmp.lt.u32.totalorder %s3663_s8, %s3658_s2 }
  0xc6   : > { %p3667_p2 = scmp.lt.u32.totalorder %s3658_s2, %s4202_s11 }
  0xc7   : > { %p3661_p11 = pnand %p3660_p3, %p3659_p1  ;;  %p3666_p0 = por %p3665_p13, %p3664_p12 }
  0xc9   : > { %p3662_p5 = pneg %p3661_p11  ;;  %p3668_p9 = por %p3667_p2, %p3666_p0 }
  0xcb   : > { %p3669_p10 = pnand %p3668_p9, %p3662_p5 }
  0xcd   : > { %3672 = shalt.err (!%p3669_p10)
}
  0xce   : > { %s3673_s14 = scalar_lea.vmem %s4191_s29, 512  ;;  %s3862_s13 = smov [#allocation7]  }
  0xcf   : > { %p3674_p1 = scmp.ne.s32.totalorder %s4191_s29, %s3673_s14  ;;  %s3678_s17 = sshll.u32 %s3862_s13, 4  ;;  %s3679_s17 = int_to_ptr.vmem [resolvable:$false] %s3678_s17 }
  0xd0   : > { %s3680_s1 = scalar_lea.vmem %s3679_s17, 1024  ;;  %p3681_p6 = scmp.lt.s32.totalorder %s4191_s29, %s3679_s17 }
  0xd1   : > { %p3676_p11 = pnand %p3674_p1, %p3660_p3  ;;  %p3682_p12 = scmp.lt.s32.totalorder %s3680_s1, %s3673_s14 }
  0xd3   : > { %p3677_p8 = pneg %p3676_p11  ;;  %p3683_p13 = por %p3682_p12, %p3681_p6 }
  0xd5   : > { %p3684_p0 = pnand %p3683_p13, %p3677_p8 }
  0xd7   : > { %3687 = shalt.err (!%p3684_p0)
}
  0xd8   : > { %s4727_s2 = smov 8   ;;  %s4728_s3 = smov 128  }
  0xd9   : > { %3232 = dma.hbm_to_vmem [thread:$0]  (!%p4195_p7), %s4202_s11, 512, %s4191_s29, %s4204_s18, %s4728_s3, %s4728_s3, %s4727_s2  }
  0xda   : > { %p4729_p3 = scmp.ne.s32.totalorder %s4710_s0, 0 }
  0xdb   : > { %s4238_s8 = sand.u32 (!%p4729_p3), 1, %s3827_s22  }
  0xdc   : > { %532 = sbr.rel (%p4729_p3) target bundleno = 4972 (0x136c), region = 80  ;;  %s2797_s4 = sshll.u32 (!%p4729_p3), %s4238_s8, 5 }
  0xdd   : > { %s535_s20 = scalar_lea.sflag (!%p4729_p3), [#allocation8], %s4238_s8  ;;  %s4242_s14 = scalar_lea.vmem (!%p4729_p3), [#allocation7], %s2797_s4 }
  0xe3   : > { %3798 = dma.done.wait (%p4170_p4), %s535_s20, 512  }
  0xe4   : > { %3800 = vsyncadd (%p4170_p4), %s535_s20, 4294966784  ;;  %p4730_p6 = scmp.ne.s32.totalorder %s4709_s30, 0 }
  0xe6   : > { %3802 = dma.done.wait (%p4730_p6), [#allocation11], 3072  }
  0xe7   : > { %3804 = vsyncadd (%p4730_p6), [#allocation11], 4294964224 }
  0xe8   : > { %3806 = dma.done.wait (%p4730_p6), [#allocation14], 3072  }
  0xe9   : > { %3808 = vsyncadd (%p4730_p6), [#allocation14], 4294964224 }
  0xea   : > { %3810 = dma.done.wait (%p4730_p6), [#allocation17], 2048  }
  0xeb   : > { %3812 = vsyncadd (%p4730_p6), [#allocation17], 4294965248  ;;  %s2803_s10 = sshll.u32 %s4238_s8, 4  ;;  %p2804_p4 = scmp.ne.s32.totalorder %s3835_s24, 0 }
  0xec   : > { %s4261_s0 = scalar_lea.vmem [#allocation18], %s2803_s10  ;;  %s2924_s29 = sshll.u32 (!%p2804_p4), %s3839_s25, 10 }
  0xed   : > { %611 = sbr.rel (%p2804_p4) target bundleno = 808 (0x328), region = 108  ;;  %s4731_s18 = sld [smem:[#allocation33_spill]] (!%p2804_p4) }
  0xee   : > { %s3863_s17 = smov (!%p2804_p4), [#allocation5]  }
  0xef   : > { %s622_s1 = sshll.u32 (!%p2804_p4), %s3863_s17, 4  ;;  %s4268_s1 = int_to_ptr.vmem [resolvable:$true] %s622_s1 }
  0xf3   : > { %s614_s13 = scalar_lea.hbm (!%p2804_p4), %s4731_s18, %s2924_s29  ;;  %s3690_s4 = scalar_lea.hbm (!%p2804_p4), %s4731_s18, 2048 }
  0xf4   : > { %s4270_s2 = scalar_lea.hbm %s614_s13, 512  ;;  %p3691_p7 = scmp.lt.u32.totalorder %s614_s13, %s4731_s18 }
  0xf5   : > { %p3689_p8 = scmp.ne.s32.totalorder %s614_s13, %s4270_s2  ;;  %p3692_p5 = scmp.lt.u32.totalorder %s3690_s4, %s4270_s2 }
  0xf6   : > { %p3694_p9 = scmp.lt.u32.totalorder %s4270_s2, %s614_s13 }
  0xf7   : > { %p3693_p2 = por %p3692_p5, %p3691_p7 }
  0xf9   : > { %p3695_p10 = por %p3694_p9, %p3693_p2 }
  0xfb   : > { %p3696_p1 = pnand %p3695_p10, %p3689_p8 }
  0xfd   : > { %3699 = shalt.err (!%p3696_p1)  }
  0xfe   : > { %s3700_s29 = scalar_lea.vmem %s4268_s1, 512  ;;  %s3704_s5 = scalar_lea.vmem %s4268_s1, 1024 }
  0xff   : > { %p3701_p11 = scmp.ne.s32.totalorder %s4268_s1, %s3700_s29  ;;  %p3705_p12 = scmp.lt.s32.totalorder %s4268_s1, %s4268_s1 }
 0x100   : > { %p3706_p13 = scmp.lt.s32.totalorder %s3704_s5, %s3700_s29 }
 0x102   : > { %p3707_p0 = por %p3706_p13, %p3705_p12 }
 0x104   : > { %p3708_p3 = pnand %p3707_p0, %p3701_p11 }
 0x106   : > { %3711 = shalt.err (!%p3708_p3)  }
 0x107   : > { %625 = dma.hbm_to_vmem [thread:$0]  %s614_s13, 512, %s4268_s1, [#allocation6] }
 0x108   : > { %s3864_s11 = smov [#allocation5 + $0x20]   ;;  %s3736_s30 = scalar_lea.hbm %s614_s13, 1024 }
 0x109   : > { %s638_s17 = sshll.u32 %s3864_s11, 4  ;;  %p3713_p6 = scmp.ne.s32.totalorder %s4270_s2, %s3736_s30  ;;  %s639_s17 = int_to_ptr.vmem [resolvable:$true] %s638_s17 }
 0x10a   : > { %p3715_p4 = scmp.lt.u32.totalorder %s4270_s2, %s4731_s18  ;;  %p3716_p8 = scmp.lt.u32.totalorder %s3690_s4, %s3736_s30 }
 0x10b   : > { %p3718_p5 = scmp.lt.u32.totalorder %s3736_s30, %s4270_s2 }
 0x10c   : > { %p3717_p7 = por %p3716_p8, %p3715_p4 }
 0x10e   : > { %p3719_p2 = por %p3718_p5, %p3717_p7 }
 0x110   : > { %p3720_p9 = pnand %p3719_p2, %p3713_p6 }
 0x112   : > { %3723 = shalt.err (!%p3720_p9)  }
 0x113   : > { %s3724_s10 = scalar_lea.vmem %s639_s17, 512  ;;  %p3729_p1 = scmp.lt.s32.totalorder %s639_s17, %s4268_s1 }
 0x114   : > { %p3725_p10 = scmp.ne.s32.totalorder %s639_s17, %s3724_s10  ;;  %p3730_p11 = scmp.lt.s32.totalorder %s3704_s5, %s3724_s10 }
 0x116   : > { %p3731_p12 = por %p3730_p11, %p3729_p1 }
 0x118   : > { %p3732_p13 = pnand %p3731_p12, %p3725_p10 }
 0x11a   : > { %3735 = shalt.err (!%p3732_p13)  }
 0x11b   : > { %641 = dma.hbm_to_vmem [thread:$0]  %s4270_s2, 512, %s639_s17, [#allocation6 + $0x1] }
 0x11c   : > { %3813 = dma.done.wait [#allocation6], 512 }
 0x11d   : > { %3814 = vsyncadd [#allocation6], 4294966784  ;;  %v3865_v0 = vmov 0   ;;  %v3330_v1 = vld [vmem:[#allocation12 + $0x4] ss:$8 sps:$4 sm:$0xff]   ;;  %v647_v20 = vld [vmem:[#allocation5 + $0x10] sm:$0xff]  ;;  %v669_v23 = vlaneseq }
 0x11e   : > { %791 = vmatprep.mubr.bf16.mxu0 %v3865_v0  ;;  %v3332_v2 = vld [vmem:[#allocation12] ss:$8 sps:$4 sm:$0xff]   ;;  %759 = vmatprep.subr.bf16.mxu0 %v3330_v1  ;;  %v3333_v3 = vld [vmem:[#allocation12 + $0x14] ss:$8 sps:$4 sm:$0xff]   ;;  %v3335_v4 = vld [vmem:[#allocation12 + $0x10] ss:$8 sps:$4 sm:$0xff]  }
 0x11f   : > { %760 = vmatpush1.bf16.msra.mxu0 %v3332_v2  ;;  %v3336_v5 = vld [vmem:[#allocation12 + $0x24] ss:$8 sps:$4 sm:$0xff]   ;;  %v3338_v6 = vld [vmem:[#allocation12 + $0x20] ss:$8 sps:$4 sm:$0xff]   ;;  %v3339_v7 = vld [vmem:[#allocation12 + $0x34] ss:$8 sps:$4 sm:$0xff]  }
 0x120   : > { %761 = vmatprep.subr.bf16.mxu0 %v3333_v3  ;;  %v3341_v8 = vld [vmem:[#allocation12 + $0x30] ss:$8 sps:$4 sm:$0xff]   ;;  %v3342_v9 = vld [vmem:[#allocation12 + $0x44] ss:$8 sps:$4 sm:$0xff]   ;;  %v3344_v10 = vld [vmem:[#allocation12 + $0x40] ss:$8 sps:$4 sm:$0xff]  }
 0x121   : > { %v3345_v11 = vld [vmem:[#allocation12 + $0x54] ss:$8 sps:$4 sm:$0xff]   ;;  %v3347_v12 = vld [vmem:[#allocation12 + $0x50] ss:$8 sps:$4 sm:$0xff]   ;;  %v3348_v13 = vld [vmem:[#allocation12 + $0x64] ss:$8 sps:$4 sm:$0xff]  }
 0x122   : > { %v3350_v14 = vld [vmem:[#allocation12 + $0x60] ss:$8 sps:$4 sm:$0xff]   ;;  %v3351_v15 = vld [vmem:[#allocation12 + $0x74] ss:$8 sps:$4 sm:$0xff]   ;;  %v3353_v16 = vld [vmem:[#allocation12 + $0x70] ss:$8 sps:$4 sm:$0xff]  }
 0x123   : > { %762 = vmatpush1.bf16.msra.mxu0 %v3335_v4  ;;  %v645_v17 = vld [vmem:[#allocation5] sm:$0xff]  ;;  %v646_v18 = vld [vmem:[#allocation5 + $0x8] sm:$0xff]  ;;  %v648_v21 = vld [vmem:[#allocation5 + $0x18] sm:$0xff]  ;;  %v4297_v24 = vshrl.u32 %v669_v23, 7  ;;  %s4732_s2 = sld [smem:[#allocation37_spill]] }
 0x124   : > { %763 = vmatprep.subr.bf16.mxu0 %v3336_v5  ;;  %v649_v19 = vpack.c.bf16 %v646_v18, %v645_v17  ;;  %v650_v22 = vpack.c.bf16 %v648_v21, %v647_v20 }
 0x125   : > { %v671_v25 = vsub.s32 0, %v4297_v24  ;;  %v675_v27 = vsub.s32 1, %v4297_v24 }
 0x127   : > { %764 = vmatpush1.bf16.msra.mxu0 %v3338_v6 }
 0x128   : > { %765 = vmatprep.subr.bf16.mxu0 %v3339_v7 }
 0x129   : > { %v667_v26 = vld [vmem:[%s4732_s2] sm:$0x3] }
 0x12a   : > { %v672_v28 = vrot.slane %v667_v26, %v671_v25  ;;  %v676_v30 = vrot.slane %v667_v26, %v675_v27 }
 0x12b   : > { %766 = vmatpush1.bf16.msra.mxu0 %v3341_v8 }
 0x12c   : > { %767 = vmatprep.subr.bf16.mxu0 %v3342_v9 }
 0x12f   : > { %768 = vmatpush1.bf16.msra.mxu0 %v3344_v10 }
 0x130   : > { %769 = vmatprep.subr.bf16.mxu0 %v3345_v11 }
 0x133   : > { %770 = vmatpush1.bf16.msra.mxu0 %v3347_v12 }
 0x134   : > { %771 = vmatprep.subr.bf16.mxu0 %v3348_v13 }
 0x137   : > { %772 = vmatpush1.bf16.msra.mxu0 %v3350_v14 }
 0x138   : > { %773 = vmatprep.subr.bf16.mxu0 %v3351_v15 }
 0x13b   : > { %774 = vmatpush1.bf16.msra.mxu0 %v3353_v16 }
 0x13e   : > { %792 = vmatmul.mubr.bf16.vlgmr.msra.gmra.mrb[0].mxu0 %v649_v19 }
 0x13f   : > { %801 = vmatprep.mubr.bf16.mxu0 %v3865_v0 }
 0x146   : > { %802 = vmatmul.mubr.bf16.gmra.mrb[4].mxu0 %v650_v22 }
 0x211   : > { %v793_v29 = vpop.f32.mrb[0].mxu0 }
 0x212   : > { %v795_v31 = vpop.f32.mrb[1].mxu0  ;;  %v794_v33 = vadd.f32 %v793_v29, %v672_v28 }
 0x213   : > { %v797_v32 = vpop.f32.mrb[2].mxu0  ;;  %v796_v36 = vadd.f32 %v795_v31, %v676_v30 }
 0x214   : > { %v798_v34 = vadd.f32 %v797_v32, %v672_v28  ;;  %v799_v35 = vpop.f32.mrb[3].mxu0 }
 0x215   : > { %v800_v37 = vadd.f32 %v799_v35, %v676_v30 }
 0x216   : > { %v812_v38 = vpack.c.bf16 %v798_v34, %v794_v33 }
 0x217   : > { %v816_v39 = vpack.c.bf16 %v800_v37, %v796_v36 }
 0x218   : > { %814 = vst [vmem:[#allocation2] sm:$0xff] %v812_v38 }
 0x219   : > { %818 = vst [vmem:[#allocation3] sm:$0xff] %v816_v39  ;;  %v803_v40 = vpop.f32.mrb[4].mxu0 }
 0x21a   : > { %v805_v41 = vpop.f32.mrb[5].mxu0  ;;  %v804_v43 = vadd.f32 %v803_v40, %v672_v28 }
 0x21b   : > { %v807_v42 = vpop.f32.mrb[6].mxu0  ;;  %v806_v46 = vadd.f32 %v805_v41, %v676_v30 }
 0x21c   : > { %v808_v44 = vadd.f32 %v807_v42, %v672_v28  ;;  %v809_v45 = vpop.f32.mrb[7].mxu0 }
 0x21d   : > { %v810_v47 = vadd.f32 %v809_v45, %v676_v30 }
 0x21e   : > { %v813_v48 = vpack.c.bf16 %v808_v44, %v804_v43 }
 0x21f   : > { %v817_v49 = vpack.c.bf16 %v810_v47, %v806_v46 }
 0x220   : > { %815 = vst [vmem:[#allocation2 + $0x8] sm:$0xff] %v813_v48 }
 0x221   : > { %819 = vst [vmem:[#allocation3 + $0x8] sm:$0xff] %v817_v49 }
 0x222   : > { %3815 = dma.done.wait [#allocation6 + $0x1], 512 }
 0x223   : > { %3816 = vsyncadd [#allocation6 + $0x1], 4294966784  ;;  %968 = vmatprep.mubr.bf16.mxu1 %v3865_v0  ;;  %v3354_v50 = vld [vmem:[#allocation12 + $0x4] ss:$8 sps:$4 sm:$0xff]   ;;  %v3356_v51 = vld [vmem:[#allocation12] ss:$8 sps:$4 sm:$0xff]  }
 0x224   : > { %936 = vmatprep.subr.bf16.mxu1 %v3354_v50  ;;  %v3357_v52 = vld [vmem:[#allocation12 + $0x14] ss:$8 sps:$4 sm:$0xff]   ;;  %v3359_v53 = vld [vmem:[#allocation12 + $0x10] ss:$8 sps:$4 sm:$0xff]   ;;  %v3360_v54 = vld [vmem:[#allocation12 + $0x24] ss:$8 sps:$4 sm:$0xff]  }
 0x225   : > { %937 = vmatpush1.bf16.msra.mxu1 %v3356_v51  ;;  %v3362_v55 = vld [vmem:[#allocation12 + $0x20] ss:$8 sps:$4 sm:$0xff]   ;;  %v3363_v56 = vld [vmem:[#allocation12 + $0x34] ss:$8 sps:$4 sm:$0xff]   ;;  %v3365_v57 = vld [vmem:[#allocation12 + $0x30] ss:$8 sps:$4 sm:$0xff]  }
 0x226   : > { %938 = vmatprep.subr.bf16.mxu1 %v3357_v52  ;;  %v3366_v58 = vld [vmem:[#allocation12 + $0x44] ss:$8 sps:$4 sm:$0xff]   ;;  %v3368_v59 = vld [vmem:[#allocation12 + $0x40] ss:$8 sps:$4 sm:$0xff]   ;;  %v3369_v60 = vld [vmem:[#allocation12 + $0x54] ss:$8 sps:$4 sm:$0xff]  }
 0x227   : > { %v3371_v61 = vld [vmem:[#allocation12 + $0x50] ss:$8 sps:$4 sm:$0xff]   ;;  %v3372_v62 = vld [vmem:[#allocation12 + $0x64] ss:$8 sps:$4 sm:$0xff]   ;;  %v3374_v63 = vld [vmem:[#allocation12 + $0x60] ss:$8 sps:$4 sm:$0xff]  }
 0x228   : > { %v3375_v1 = vld [vmem:[#allocation12 + $0x74] ss:$8 sps:$4 sm:$0xff]   ;;  %v3377_v2 = vld [vmem:[#allocation12 + $0x70] ss:$8 sps:$4 sm:$0xff]   ;;  %v822_v3 = vld [vmem:[#allocation5 + $0x20] sm:$0xff] }
 0x229   : > { %939 = vmatpush1.bf16.msra.mxu1 %v3359_v53  ;;  %v823_v4 = vld [vmem:[#allocation5 + $0x28] sm:$0xff]  ;;  %v824_v6 = vld [vmem:[#allocation5 + $0x30] sm:$0xff]  ;;  %v825_v7 = vld [vmem:[#allocation5 + $0x38] sm:$0xff] }
 0x22a   : > { %940 = vmatprep.subr.bf16.mxu1 %v3360_v54  ;;  %v826_v5 = vpack.c.bf16 %v823_v4, %v822_v3  ;;  %v827_v8 = vpack.c.bf16 %v825_v7, %v824_v6  ;;  %v844_v9 = vld [vmem:[%s4732_s2] sm:$0x3] }
 0x22b   : > { %v849_v10 = vrot.slane %v844_v9, %v671_v25  ;;  %v853_v12 = vrot.slane %v844_v9, %v675_v27 }
 0x22d   : > { %941 = vmatpush1.bf16.msra.mxu1 %v3362_v55 }
 0x22e   : > { %942 = vmatprep.subr.bf16.mxu1 %v3363_v56 }
 0x231   : > { %943 = vmatpush1.bf16.msra.mxu1 %v3365_v57 }
 0x232   : > { %944 = vmatprep.subr.bf16.mxu1 %v3366_v58 }
 0x235   : > { %945 = vmatpush1.bf16.msra.mxu1 %v3368_v59 }
 0x236   : > { %946 = vmatprep.subr.bf16.mxu1 %v3369_v60 }
 0x239   : > { %947 = vmatpush1.bf16.msra.mxu1 %v3371_v61 }
 0x23a   : > { %948 = vmatprep.subr.bf16.mxu1 %v3372_v62 }
 0x23d   : > { %949 = vmatpush1.bf16.msra.mxu1 %v3374_v63 }
 0x23e   : > { %950 = vmatprep.subr.bf16.mxu1 %v3375_v1 }
 0x241   : > { %951 = vmatpush1.bf16.msra.mxu1 %v3377_v2 }
 0x244   : > { %969 = vmatmul.mubr.bf16.vlgmr.msra.gmra.mrb[0].mxu1 %v826_v5 }
 0x245   : > { %978 = vmatprep.mubr.bf16.mxu1 %v3865_v0 }
 0x24c   : > { %979 = vmatmul.mubr.bf16.gmra.mrb[4].mxu1 %v827_v8 }
 0x317   : > { %v970_v11 = vpop.f32.mrb[0].mxu1 }
 0x318   : > { %v972_v13 = vpop.f32.mrb[1].mxu1  ;;  %v971_v15 = vadd.f32 %v970_v11, %v849_v10 }
 0x319   : > { %v974_v14 = vpop.f32.mrb[2].mxu1  ;;  %v973_v17 = vadd.f32 %v972_v13, %v853_v12 }
 0x31a   : > { %v975_v16 = vadd.f32 %v974_v14, %v849_v10  ;;  %v976_v0 = vpop.f32.mrb[3].mxu1 }
 0x31b   : > { %v977_v18 = vadd.f32 %v976_v0, %v853_v12 }
 0x31c   : > { %v989_v19 = vpack.c.bf16 %v975_v16, %v971_v15 }
 0x31d   : > { %v993_v20 = vpack.c.bf16 %v977_v18, %v973_v17 }
 0x31e   : > { %991 = vst [vmem:[#allocation2 + $0x10] sm:$0xff] %v989_v19 }
 0x31f   : > { %995 = vst [vmem:[#allocation3 + $0x10] sm:$0xff] %v993_v20  ;;  %v980_v21 = vpop.f32.mrb[4].mxu1 }
 0x320   : > { %v982_v22 = vpop.f32.mrb[5].mxu1  ;;  %v981_v26 = vadd.f32 %v980_v21, %v849_v10 }
 0x321   : > { %v984_v23 = vpop.f32.mrb[6].mxu1  ;;  %v983_v29 = vadd.f32 %v982_v22, %v853_v12 }
 0x322   : > { %v985_v25 = vadd.f32 %v984_v23, %v849_v10  ;;  %v986_v28 = vpop.f32.mrb[7].mxu1 }
 0x323   : > { %v987_v24 = vadd.f32 %v986_v28, %v853_v12 }
 0x324   : > { %v990_v27 = vpack.c.bf16 %v985_v25, %v981_v26 }
 0x325   : > { %v994_v30 = vpack.c.bf16 %v987_v24, %v983_v29 }
 0x326   : > { %992 = vst [vmem:[#allocation2 + $0x18] sm:$0xff] %v990_v27 }
 0x327   : > { %996 = vst [vmem:[#allocation3 + $0x18] sm:$0xff] %v994_v30 }
 0x328 PF: > { %v3378_v31 = vld [vmem:[#allocation10] sm:$0xff]   ;;  %v3379_v32 = vld [vmem:[#allocation10 + $0x8] sm:$0xff]   ;;  %v3380_v33 = vld [vmem:[#allocation10 + $0x10] sm:$0xff]   ;;  %vm1129_vm0 = vcmask 261120   ;;  %s4733_s17 = sld [smem:[#allocation35_spill]]  ;;  %vm1197_vm1 = vcmask 523264  }
 0x329   : > { %3037 = vmatprep.subr.bf16.mxu0 %v3378_v31  ;;  %v3381_v34 = vld [vmem:[#allocation10 + $0x18] sm:$0xff]   ;;  %v997_v35 = vld [vmem:[%s4242_s14] sm:$0xff]  ;;  %v998_v36 = vld [vmem:[%s4242_s14 + $0x8] sm:$0xff]  ;;  %s3866_s30 = smov 96   ;;  %s3867_s3 = smov 64   ;;  %vm1527_vm2 = vcmask 523520  }
 0x32a   : > { %3038 = vmatpush3.bf16.msra.mxu0 %v3378_v31  ;;  %v1001_v37 = vpack.c.bf16 %v998_v36, %v997_v35  ;;  %v4319_v38 = vld [vmem:[#allocation2] sm:$0xff]  ;;  %v3382_v39 = vld [vmem:[#allocation10 + $0x20] sm:$0xff]   ;;  %v4325_v41 = vld [vmem:[#allocation2 + $0x8] sm:$0xff]  ;;  %s3868_s20 = smov 32   ;;  %vm1748_vm3 = vcmask 785920   ;;  %vm1969_vm4 = vcmask 1048320  }
 0x32b   : > { %3039 = vmatprep.subr.bf16.mxu0 %v3379_v32  ;;  %3173 = vmatprep.subr.msk.bf16.mxu1 %vm1129_vm0, %v4319_v38  ;;  %v1137_v40 = vsel %vm1129_vm0, %v4319_v38, 0  ;;  %v3383_v42 = vld [vmem:[#allocation10 + $0x28] sm:$0xff]   ;;  %v4329_v43 = vld [vmem:[#allocation2 + $0x10] sm:$0xff]  ;;  %v1140_v44 = vsel %vm1129_vm0, %v4325_v41, 0  ;;  %v3384_v45 = vld [vmem:[#allocation10 + $0x30] sm:$0xff]   ;;  %s4734_s1 = sld [smem:[#allocation39_spill]] }
 0x32c   : > { %3053 = vmatprep.mubr.bf16.mxu0 %v1001_v37  ;;  %3058 = vmatpush3.bf16.xpose.msra.mxu1 %v1137_v40  ;;  %v1143_v46 = vsel %vm1129_vm0, %v4329_v43, 0  ;;  %v3385_v47 = vld [vmem:[#allocation10 + $0x38] sm:$0xff]   ;;  %v999_v48 = vld [vmem:[%s4242_s14 + $0x10] sm:$0xff]  ;;  %v4372_v30 = vld [vmem:[#allocation3 + $0x10] sm:$0xff]  ;;  %s4735_s29 = sld [smem:[#allocation40_spill]]  ;;  %s4737_s10 = sld [smem:[#allocation43_spill]] }
 0x32d   : > { %3174 = vmatprep.subr.msk.bf16.mxu1 %vm1129_vm0, %v4325_v41  ;;  %v1000_v49 = vld [vmem:[%s4242_s14 + $0x18] sm:$0xff]  ;;  %v4339_v51 = vld [vmem:[#allocation2 + $0x18] sm:$0xff]  ;;  %v4364_v24 = vld [vmem:[#allocation3] sm:$0xff]  ;;  %s4739_s5 = sld [smem:[#allocation45_spill]]  ;;  %s2611_s11 = scalar_lea.sflag [#allocation9], %s4238_s8 }
 0x32e   : > { %3040 = vmatpush3.bf16.msra.mxu0 %v3379_v32  ;;  %v1002_v50 = vpack.c.bf16 %v1000_v49, %v999_v48  ;;  %v1146_v52 = vsel %vm1129_vm0, %v4339_v51, 0  ;;  %v2841_v54 = vld [vmem:[%s4733_s17] ss:$0 sm:$0xff]  ;;  %v4368_v27 = vld [vmem:[#allocation3 + $0x8] sm:$0xff]  ;;  %v4380_v31 = vld [vmem:[#allocation3 + $0x18] sm:$0xff]  ;;  %s4736_s17 = sld [smem:[#allocation41_spill]] }
 0x32f   : > { %3041 = vmatprep.subr.bf16.mxu0 %v3380_v33  ;;  %p4743_p3 = scmp.ne.s32.totalorder %s4723_s7, 0 }
 0x332   : > { %3042 = vmatpush3.bf16.msra.mxu0 %v3380_v33 }
 0x333   : > { %3043 = vmatprep.subr.bf16.mxu0 %v3381_v34 }
 0x334   : > { %3060 = vmatpush3.bf16.xpose.msra.mxu1 %v1140_v44 }
 0x335   : > { %3175 = vmatprep.subr.msk.bf16.mxu1 %vm1129_vm0, %v4329_v43 }
 0x336   : > { %3044 = vmatpush3.bf16.msra.mxu0 %v3381_v34 }
 0x337   : > { %3045 = vmatprep.subr.bf16.mxu0 %v3382_v39 }
 0x33a   : > { %3046 = vmatpush3.bf16.msra.mxu0 %v3382_v39 }
 0x33b   : > { %3047 = vmatprep.subr.bf16.mxu0 %v3383_v42 }
 0x33c   : > { %3062 = vmatpush3.bf16.xpose.msra.mxu1 %v1143_v46 }
 0x33d   : > { %3176 = vmatprep.subr.msk.bf16.mxu1 %vm1129_vm0, %v4339_v51 }
 0x33e   : > { %3048 = vmatpush3.bf16.msra.mxu0 %v3383_v42 }
 0x33f   : > { %3049 = vmatprep.subr.bf16.mxu0 %v3384_v45 }
 0x342   : > { %3050 = vmatpush3.bf16.msra.mxu0 %v3384_v45 }
 0x343   : > { %3051 = vmatprep.subr.bf16.mxu0 %v3385_v47 }
 0x344   : > { %3064 = vmatpush3.bf16.xpose.msra.mxu1 %v1146_v52 }
 0x345   : > { %3069 = vmatprep.subr.bf16.mxu1 %v4364_v24 }
 0x346   : > { %3052 = vmatpush3.bf16.msra.mxu0 %v3385_v47 }
 0x349   : > { %3054 = vmatmul.mubr.bf16.vlgmr.msra.gmra.mrb[0].mxu0 %v1002_v50 }
 0x41c   : > { %v3055_v53 = vpop.f32.mrb[0].mxu0 }
 0x41d   : > { %v1108_v55 = vpop.f32.mrb[1].mxu0  ;;  %v1117_v57 = vadd.f32 %v3055_v53, %v2841_v54 }
 0x41e   : > { %v3056_v56 = vpop.f32.mrb[2].mxu0  ;;  %v1109_v60 = vadd.f32 %v2841_v54, %v1108_v55 }
 0x41f   : > { %v1120_v58 = vadd.f32 %v3056_v56, %v2841_v54  ;;  %v1111_v59 = vpop.f32.mrb[3].mxu0 }
 0x420   : > { %v1112_v61 = vadd.f32 %v2841_v54, %v1111_v59 }
 0x421   : > { %v4348_v62 = vpack.c.bf16 %v1120_v58, %v1117_v57 }
 0x422   : > { %v4350_v63 = vpack.c.bf16 %v1112_v61, %v1109_v60 }
 0x424   : > { %3065 = vmatprep.mubr.msk.bf16.mxu1 %vm1129_vm0, %v4350_v63 }
 0x425   : > { %3066 = vmatmul.mubr.msk.bf16.vlgmr.msra.gmra.mrb[0].mxu1 %vm1129_vm0, %v4348_v62 }
 0x426   : > { %3070 = vmatpush3.bf16.msra.mxu1 %v4364_v24 }
 0x427   : > { %3071 = vmatprep.subr.bf16.mxu1 %v4368_v27 }
 0x42a   : > { %3072 = vmatpush3.bf16.msra.mxu1 %v4368_v27 }
 0x42b   : > { %3073 = vmatprep.subr.bf16.mxu1 %v4372_v30 }
 0x42e   : > { %3074 = vmatpush3.bf16.msra.mxu1 %v4372_v30 }
 0x42f   : > { %3075 = vmatprep.subr.bf16.mxu1 %v4380_v31 }
 0x432   : > { %3076 = vmatpush3.bf16.msra.mxu1 %v4380_v31 }
 0x4f8   : > { %v3067_v1 = vpop.f32.mrb[0].mxu1 }
 0x4f9   : > { %v1182_v2 = vpop.f32.mrb[1].mxu1  ;;  %v1204_v3 = vsel %vm1197_vm1, %v3067_v1, -inf }
 0x4fa   : > { %1205 = vmax.xlane.f32.xlu1 %v1204_v3  ;;  %v3068_v4 = vpop.f32.mrb[2].mxu1  ;;  %v1198_v5 = vsel %vm1197_vm1, %v1182_v2, -inf }
 0x4fb   : > { %1199 = vmax.xlane.f32.xlu0 %v1198_v5  ;;  %v1185_v6 = vpop.f32.mrb[3].mxu1  ;;  %v1207_v7 = vsel %vm1197_vm1, %v3068_v4, -inf }
 0x4fc   : > { %v1201_v8 = vsel %vm1197_vm1, %v1185_v6, -inf }
 0x4fe   : > { %1208 = vmax.xlane.f32.xlu1 %v1207_v7 }
 0x4ff   : > { %1202 = vmax.xlane.f32.xlu0 %v1201_v8 }
 0x587   : > { %v1206_v9 = vpop.xlane.xlu1 %1205 }
 0x588   : > { %v1212_v10 = vsub.f32 %v3067_v1, %v1206_v9  ;;  %v1200_v11 = vpop.xlane.xlu0 %1199 }
 0x589   : > { %v1210_v12 = vsub.f32 %v1182_v2, %v1200_v11 }
 0x58a   : > { %v1218_v13 = vmul.f32 1.442695, %v1212_v10 }
 0x58b   : > { %v1214_v14 = vmul.f32 1.442695, %v1210_v12  ;;  %v1209_v15 = vpop.xlane.xlu1 %1208 }
 0x58c   : > { %3434 = vpow2.f32 %v1218_v13  ;;  %v1213_v16 = vsub.f32 %v3068_v4, %v1209_v15  ;;  %v1203_v0 = vpop.xlane.xlu0 %1202 }
 0x58d   : > { %v1211_v17 = vsub.f32 %v1185_v6, %v1203_v0  ;;  %3436 = vpow2.f32 %v1214_v14 }
 0x58e   : > { %v1220_v18 = vmul.f32 1.442695, %v1213_v16 }
 0x58f   : > { %v1216_v19 = vmul.f32 1.442695, %v1211_v17 }
 0x591   : > { %3438 = vpow2.f32 %v1216_v19 }
 0x592   : > { %3440 = vpow2.f32 %v1220_v18 }
 0x596   : > { %v3435_v20 = vpop.eup %3434 }
 0x597   : > { %v1228_v21 = vsel %vm1197_vm1, %v3435_v20, 0.0  ;;  %v3437_v22 = vpop.eup %3436 }
 0x598   : > { %1229 = vadd.xlane.f32.xlu0 %v1228_v21  ;;  %v1222_v26 = vsel %vm1197_vm1, %v3437_v22, 0.0 }
 0x59b   : > { %v3439_v23 = vpop.eup %3438 }
 0x59c   : > { %1223 = vadd.xlane.f32.xlu0 %v1222_v26  ;;  %v1225_v25 = vsel %vm1197_vm1, %v3439_v23, 0.0  ;;  %v3441_v28 = vpop.eup %3440 }
 0x59d   : > { %1226 = vadd.xlane.f32.xlu1 %v1225_v25  ;;  %v1231_v29 = vsel %vm1197_vm1, %v3441_v28, 0.0 }
 0x5a1   : > { %1232 = vadd.xlane.f32.xlu1 %v1231_v29 }
 0x5b2   : > { %1321 = vrot.lane.b32.xlu0 %v4319_v38, %s3866_s30  ;;  %1323 = vrot.lane.b32.xlu1 %v4325_v41, %s3866_s30 }
 0x5b6   : > { %1313 = vrot.lane.b32.xlu0 %v4350_v63, %s3866_s30  ;;  %1325 = vrot.lane.b32.xlu1 %v4329_v43, %s3866_s30 }
 0x5ba   : > { %1327 = vrot.lane.b32.xlu1 %v4339_v51, %s3866_s30 }
 0x5be   : > { %1315 = vrot.lane.b32.xlu1 %v4348_v62, %s3866_s30 }
 0x625   : > { %v1230_v32 = vpop.xlane.xlu0 %1229 }
 0x629   : > { %v1224_v33 = vpop.xlane.xlu0 %1223 }
 0x62a   : > { %3442 = vrcp.f32 %v1224_v33  ;;  %v1227_v34 = vpop.xlane.xlu1 %1226 }
 0x62b   : > { %3444 = vrcp.f32 %v1227_v34 }
 0x62c   : > { %3446 = vrcp.f32 %v1230_v32 }
 0x62d   : > { %v1322_v35 = vpop.permute.xlu0 %1321 }
 0x62e   : > { %v1233_v36 = vpop.xlane.xlu1 %1232  ;;  %3177 = vmatprep.subr.msk.bf16.mxu1 %vm1129_vm0, %v1322_v35  ;;  %v1336_v49 = vsel %vm1129_vm0, %v1322_v35, 0 }
 0x62f   : > { %3448 = vrcp.f32 %v1233_v36 }
 0x631   : > { %v1314_v52 = vpop.permute.xlu0 %1313 }
 0x632   : > { %v1324_v53 = vpop.permute.xlu1 %1323 }
 0x633   : > { %v1339_v54 = vsel %vm1129_vm0, %v1324_v53, 0 }
 0x634   : > { %v3443_v37 = vpop.eup %3442 }
 0x635   : > { %v3445_v39 = vpop.eup %3444  ;;  %v1238_v40 = vmul.f32 %v3443_v37, %v3437_v22 }
 0x636   : > { %v1239_v42 = vmul.f32 %v3445_v39, %v3439_v23  ;;  %v3447_v44 = vpop.eup %3446  ;;  %v1326_v55 = vpop.permute.xlu1 %1325 }
 0x637   : > { %v1240_v47 = vmul.f32 %v3447_v44, %v3435_v20  ;;  %v1342_v56 = vsel %vm1129_vm0, %v1326_v55, 0 }
 0x638   : > { %v1242_v45 = vpack.c.bf16 %v1239_v42, %v1238_v40 }
 0x639   : > { %v3449_v46 = vpop.eup %3448 }
 0x63a   : > { %v1241_v48 = vmul.f32 %v3449_v46, %v3441_v28  ;;  %3077 = vmatprep.mubr.msk.bf16.mxu1 %vm1197_vm1, %v1242_v45  ;;  %v1328_v57 = vpop.permute.xlu1 %1327 }
 0x63b   : > { %v1345_v58 = vsel %vm1129_vm0, %v1328_v57, 0 }
 0x63c   : > { %v1243_v50 = vpack.c.bf16 %v1241_v48, %v1240_v47 }
 0x63e   : > { %3078 = vmatmul.mubr.msk.bf16.vlgmr.msra.gmra.mrb[4].mxu1 %vm1197_vm1, %v1243_v50  ;;  %v1316_v59 = vpop.permute.xlu1 %1315 }
 0x63f   : > { %3082 = vmatpush3.bf16.xpose.msra.mxu1 %v1336_v49  ;;  %3089 = vmatprep.mubr.msk.bf16.mxu1 %vm1129_vm0, %v1314_v52 }
 0x640   : > { %3178 = vmatprep.subr.msk.bf16.mxu1 %vm1129_vm0, %v1324_v53 }
 0x647   : > { %3084 = vmatpush3.bf16.xpose.msra.mxu1 %v1339_v54 }
 0x648   : > { %3179 = vmatprep.subr.msk.bf16.mxu1 %vm1129_vm0, %v1326_v55 }
 0x64f   : > { %3086 = vmatpush3.bf16.xpose.msra.mxu1 %v1342_v56 }
 0x650   : > { %3180 = vmatprep.subr.msk.bf16.mxu1 %vm1129_vm0, %v1328_v57 }
 0x657   : > { %3088 = vmatpush3.bf16.xpose.msra.mxu1 %v1345_v58 }
 0x65e   : > { %3090 = vmatmul.mubr.msk.bf16.vlgmr.msra.gmra.mrb[8].mxu1 %vm1129_vm0, %v1316_v59 }
 0x711   : > { %v3079_v60 = vpop.f32.mrb[4].mxu1 }
 0x712   : > { %v1288_v61 = vpop.f32.mrb[5].mxu1 }
 0x713   : > { %v3080_v1 = vpop.f32.mrb[6].mxu1 }
 0x714   : > { %v1304_v2 = vpack.c.bf16 %v3080_v1, %v3079_v60  ;;  %v1291_v3 = vpop.f32.mrb[7].mxu1 }
 0x715   : > { %v1303_v4 = vpack.c.bf16 %v1291_v3, %v1288_v61 }
 0x716   : > { %1306 = vst.msk [vmem:[#allocation4 + $0x8] sm:$0xff] %vm1129_vm0, %v1304_v2 }
 0x717   : > { %1305 = vst.msk [vmem:[#allocation4] sm:$0xff] %vm1129_vm0, %v1303_v4 }
 0x731   : > { %v3091_v5 = vpop.f32.mrb[8].mxu1 }
 0x732   : > { %v1381_v6 = vpop.f32.mrb[9].mxu1  ;;  %v1402_v11 = vsel %vm1197_vm1, %v3091_v5, -inf }
 0x733   : > { %v3092_v7 = vpop.f32.mrb[10].mxu1  ;;  %v1396_v8 = vsel %vm1197_vm1, %v1381_v6, -inf }
 0x734   : > { %1397 = vmax.xlane.f32.xlu0 %v1396_v8  ;;  %v1384_v9 = vpop.f32.mrb[11].mxu1  ;;  %v1405_v12 = vsel %vm1197_vm1, %v3092_v7, -inf }
 0x735   : > { %v1399_v10 = vsel %vm1197_vm1, %v1384_v9, -inf }
 0x736   : > { %1400 = vmax.xlane.f32.xlu1 %v1399_v10 }
 0x738   : > { %1403 = vmax.xlane.f32.xlu0 %v1402_v11 }
 0x73c   : > { %1406 = vmax.xlane.f32.xlu0 %v1405_v12 }
 0x747   : > { %1452 = vrot.lane.b32.xlu1 %v4368_v27, %s3866_s30 }
 0x74b   : > { %1454 = vrot.lane.b32.xlu1 %v4372_v30, %s3866_s30 }
 0x752   : > { %1450 = vrot.lane.b32.xlu0 %v4364_v24, %s3866_s30 }
 0x7c1   : > { %v1398_v13 = vpop.xlane.xlu0 %1397 }
 0x7c2   : > { %v1408_v14 = vsub.f32 %v1381_v6, %v1398_v13 }
 0x7c3   : > { %v1401_v15 = vpop.xlane.xlu1 %1400 }
 0x7c4   : > { %v1412_v17 = vmul.f32 1.442695, %v1408_v14  ;;  %v1409_v18 = vsub.f32 %v1384_v9, %v1401_v15 }
 0x7c5   : > { %v1404_v16 = vpop.xlane.xlu0 %1403 }
 0x7c6   : > { %v1410_v0 = vsub.f32 %v3091_v5, %v1404_v16  ;;  %v1414_v23 = vmul.f32 1.442695, %v1409_v18 }
 0x7c7   : > { %v1453_v22 = vpop.permute.xlu1 %1452 }
 0x7c8   : > { %v1416_v19 = vmul.f32 1.442695, %v1410_v0 }
 0x7c9   : > { %v1407_v20 = vpop.xlane.xlu0 %1406 }
 0x7ca   : > { %3450 = vpow2.f32 %v1416_v19  ;;  %v1411_v21 = vsub.f32 %v3092_v7, %v1407_v20 }
 0x7cb   : > { %3452 = vpow2.f32 %v1412_v17  ;;  %v1455_v28 = vpop.permute.xlu1 %1454 }
 0x7cc   : > { %v1418_v26 = vmul.f32 1.442695, %v1411_v21 }
 0x7cd   : > { %v1451_v25 = vpop.permute.xlu0 %1450 }
 0x7ce   : > { %3454 = vpow2.f32 %v1418_v26  ;;  %3093 = vmatprep.subr.bf16.mxu0 %v1451_v25 }
 0x7cf   : > { %3094 = vmatpush3.bf16.msra.mxu0 %v1451_v25  ;;  %3456 = vpow2.f32 %v1414_v23 }
 0x7d0   : > { %3095 = vmatprep.subr.bf16.mxu0 %v1453_v22 }
 0x7d3   : > { %3096 = vmatpush3.bf16.msra.mxu0 %v1453_v22 }
 0x7d4   : > { %v3451_v29 = vpop.eup %3450  ;;  %3097 = vmatprep.subr.bf16.mxu0 %v1455_v28 }
 0x7d5   : > { %v1426_v32 = vsel %vm1197_vm1, %v3451_v29, 0.0  ;;  %v3453_v33 = vpop.eup %3452 }
 0x7d6   : > { %1427 = vadd.xlane.f32.xlu0 %v1426_v32  ;;  %v1420_v35 = vsel %vm1197_vm1, %v3453_v33, 0.0 }
 0x7d7   : > { %3098 = vmatpush3.bf16.msra.mxu0 %v1455_v28 }
 0x7d8   : > { %v3455_v34 = vpop.eup %3454 }
 0x7d9   : > { %v1429_v36 = vsel %vm1197_vm1, %v3455_v34, 0.0  ;;  %v3457_v37 = vpop.eup %3456 }
 0x7da   : > { %1421 = vadd.xlane.f32.xlu0 %v1420_v35  ;;  %1430 = vadd.xlane.f32.xlu1 %v1429_v36  ;;  %v1423_v39 = vsel %vm1197_vm1, %v3457_v37, 0.0 }
 0x7de   : > { %1424 = vadd.xlane.f32.xlu1 %v1423_v39 }
 0x7ef   : > { %1456 = vrot.lane.b32.xlu1 %v4380_v31, %s3866_s30 }
 0x7f0   : > { %1542 = vrot.lane.b32.xlu0 %v4319_v38, %s3867_s3 }
 0x7f3   : > { %1544 = vrot.lane.b32.xlu1 %v4325_v41, %s3867_s3 }
 0x7f4   : > { %1546 = vrot.lane.b32.xlu0 %v4329_v43, %s3867_s3 }
 0x7f7   : > { %1548 = vrot.lane.b32.xlu1 %v4339_v51, %s3867_s3 }
 0x7f8   : > { %1534 = vrot.lane.b32.xlu0 %v4350_v63, %s3867_s3 }
 0x7fb   : > { %1536 = vrot.lane.b32.xlu1 %v4348_v62, %s3867_s3 }
 0x863   : > { %v1428_v40 = vpop.xlane.xlu0 %1427 }
 0x867   : > { %v1422_v42 = vpop.xlane.xlu0 %1421  ;;  %v1431_v44 = vpop.xlane.xlu1 %1430 }
 0x868   : > { %3458 = vrcp.f32 %v1431_v44 }
 0x869   : > { %3460 = vrcp.f32 %v1422_v42 }
 0x86a   : > { %3462 = vrcp.f32 %v1428_v40 }
 0x86b   : > { %v1425_v45 = vpop.xlane.xlu1 %1424  ;;  %v1543_v47 = vpop.permute.xlu0 %1542 }
 0x86c   : > { %3464 = vrcp.f32 %v1425_v45  ;;  %v1557_v59 = vsel %vm1129_vm0, %v1543_v47, 0 }
 0x86f   : > { %v1457_v46 = vpop.permute.xlu1 %1456  ;;  %v1547_v54 = vpop.permute.xlu0 %1546 }
 0x870   : > { %3099 = vmatprep.subr.bf16.mxu0 %v1457_v46  ;;  %v1563_v3 = vsel %vm1129_vm0, %v1547_v54, 0 }
 0x871   : > { %3100 = vmatpush3.bf16.msra.mxu0 %v1457_v46 }
 0x872   : > { %3181 = vmatprep.subr.msk.bf16.mxu0 %vm1129_vm0, %v1543_v47  ;;  %v3459_v48 = vpop.eup %3458 }
 0x873   : > { %v3461_v49 = vpop.eup %3460  ;;  %v1439_v53 = vmul.f32 %v3459_v48, %v3455_v34  ;;  %v1535_v61 = vpop.permute.xlu0 %1534 }
 0x874   : > { %v3463_v50 = vpop.eup %3462  ;;  %v1436_v55 = vmul.f32 %v3461_v49, %v3453_v33  ;;  %v1545_v1 = vpop.permute.xlu1 %1544 }
 0x875   : > { %v1438_v57 = vmul.f32 %v3463_v50, %v3451_v29  ;;  %v1560_v2 = vsel %vm1129_vm0, %v1545_v1, 0 }
 0x876   : > { %v3465_v52 = vpop.eup %3464 }
 0x877   : > { %v1437_v56 = vmul.f32 %v3465_v52, %v3457_v37  ;;  %v1441_v60 = vpack.c.bf16 %v1439_v53, %v1438_v57 }
 0x878   : > { %v1549_v4 = vpop.permute.xlu1 %1548 }
 0x879   : > { %v1440_v58 = vpack.c.bf16 %v1437_v56, %v1436_v55  ;;  %v1566_v5 = vsel %vm1129_vm0, %v1549_v4, 0 }
 0x87b   : > { %3101 = vmatprep.mubr.msk.bf16.mxu0 %vm1197_vm1, %v1440_v58 }
 0x87c   : > { %3102 = vmatmul.mubr.msk.bf16.vlgmr.msra.gmra.mrb[4].mxu0 %vm1197_vm1, %v1441_v60  ;;  %v1537_v6 = vpop.permute.xlu1 %1536 }
 0x87d   : > { %3106 = vmatpush3.bf16.xpose.msra.mxu0 %v1557_v59  ;;  %3113 = vmatprep.mubr.msk.bf16.mxu0 %vm1129_vm0, %v1535_v61 }
 0x87e   : > { %3182 = vmatprep.subr.msk.bf16.mxu0 %vm1129_vm0, %v1545_v1 }
 0x885   : > { %3108 = vmatpush3.bf16.xpose.msra.mxu0 %v1560_v2 }
 0x886   : > { %3183 = vmatprep.subr.msk.bf16.mxu0 %vm1129_vm0, %v1547_v54 }
 0x88d   : > { %3110 = vmatpush3.bf16.xpose.msra.mxu0 %v1563_v3 }
 0x88e   : > { %3184 = vmatprep.subr.msk.bf16.mxu0 %vm1129_vm0, %v1549_v4 }
 0x895   : > { %3112 = vmatpush3.bf16.xpose.msra.mxu0 %v1566_v5 }
 0x89c   : > { %3114 = vmatmul.mubr.msk.bf16.vlgmr.msra.gmra.mrb[8].mxu0 %vm1129_vm0, %v1537_v6 }
 0x94f   : > { %v4446_v7 = vpop.f32.mrb[4].mxu0 }
 0x950   : > { %v4448_v8 = vpop.f32.mrb[5].mxu0 }
 0x951   : > { %v4450_v9 = vpop.f32.mrb[6].mxu0 }
 0x952   : > { %v1518_v10 = vpack.c.bf16 %v4450_v9, %v4446_v7  ;;  %v4454_v11 = vpop.f32.mrb[7].mxu0 }
 0x953   : > { %v1517_v12 = vpack.c.bf16 %v4454_v11, %v4448_v8 }
 0x96f   : > { %v3115_v13 = vpop.f32.mrb[8].mxu0 }
 0x970   : > { %v1602_v14 = vpop.f32.mrb[9].mxu0  ;;  %v1623_v18 = vsel %vm1197_vm1, %v3115_v13, -inf }
 0x971   : > { %v3116_v15 = vpop.f32.mrb[10].mxu0  ;;  %v1617_v16 = vsel %vm1197_vm1, %v1602_v14, -inf }
 0x972   : > { %1618 = vmax.xlane.f32.xlu0 %v1617_v16  ;;  %v1605_v0 = vpop.f32.mrb[11].mxu0  ;;  %v1626_v19 = vsel %vm1197_vm1, %v3116_v15, -inf }
 0x973   : > { %v1620_v17 = vsel %vm1197_vm1, %v1605_v0, -inf }
 0x974   : > { %1621 = vmax.xlane.f32.xlu1 %v1620_v17 }
 0x976   : > { %1624 = vmax.xlane.f32.xlu0 %v1623_v18 }
 0x97a   : > { %1627 = vmax.xlane.f32.xlu0 %v1626_v19 }
 0x985   : > { %1673 = vrot.lane.b32.xlu1 %v4368_v27, %s3867_s3 }
 0x989   : > { %1675 = vrot.lane.b32.xlu1 %v4372_v30, %s3867_s3 }
 0x990   : > { %1671 = vrot.lane.b32.xlu0 %v4364_v24, %s3867_s3 }
 0x9ff   : > { %v1619_v20 = vpop.xlane.xlu0 %1618 }
 0xa00   : > { %v1629_v21 = vsub.f32 %v1602_v14, %v1619_v20 }
 0xa01   : > { %v1622_v22 = vpop.xlane.xlu1 %1621 }
 0xa02   : > { %v1633_v25 = vmul.f32 1.442695, %v1629_v21  ;;  %v1630_v28 = vsub.f32 %v1605_v0, %v1622_v22 }
 0xa03   : > { %v1625_v23 = vpop.xlane.xlu0 %1624 }
 0xa04   : > { %v1631_v26 = vsub.f32 %v3115_v13, %v1625_v23  ;;  %v1635_v35 = vmul.f32 1.442695, %v1630_v28 }
 0xa05   : > { %v1674_v34 = vpop.permute.xlu1 %1673 }
 0xa06   : > { %v1637_v29 = vmul.f32 1.442695, %v1631_v26 }
 0xa07   : > { %v1628_v32 = vpop.xlane.xlu0 %1627 }
 0xa08   : > { %3466 = vpow2.f32 %v1637_v29  ;;  %v1632_v33 = vsub.f32 %v3116_v15, %v1628_v32 }
 0xa09   : > { %3468 = vpow2.f32 %v1633_v25  ;;  %v1676_v39 = vpop.permute.xlu1 %1675 }
 0xa0a   : > { %v1639_v36 = vmul.f32 1.442695, %v1632_v33 }
 0xa0b   : > { %v1672_v37 = vpop.permute.xlu0 %1671 }
 0xa0c   : > { %3470 = vpow2.f32 %v1639_v36  ;;  %3117 = vmatprep.subr.bf16.mxu1 %v1672_v37 }
 0xa0d   : > { %3118 = vmatpush3.bf16.msra.mxu1 %v1672_v37  ;;  %3472 = vpow2.f32 %v1635_v35 }
 0xa0e   : > { %3119 = vmatprep.subr.bf16.mxu1 %v1674_v34 }
 0xa11   : > { %3120 = vmatpush3.bf16.msra.mxu1 %v1674_v34 }
 0xa12   : > { %v3467_v40 = vpop.eup %3466  ;;  %3121 = vmatprep.subr.bf16.mxu1 %v1676_v39 }
 0xa13   : > { %v1647_v42 = vsel %vm1197_vm1, %v3467_v40, 0.0  ;;  %v3469_v44 = vpop.eup %3468 }
 0xa14   : > { %1648 = vadd.xlane.f32.xlu0 %v1647_v42  ;;  %v1641_v46 = vsel %vm1197_vm1, %v3469_v44, 0.0 }
 0xa15   : > { %3122 = vmatpush3.bf16.msra.mxu1 %v1676_v39 }
 0xa16   : > { %v3471_v45 = vpop.eup %3470 }
 0xa17   : > { %v1650_v47 = vsel %vm1197_vm1, %v3471_v45, 0.0  ;;  %v3473_v48 = vpop.eup %3472 }
 0xa18   : > { %1642 = vadd.xlane.f32.xlu0 %v1641_v46  ;;  %1651 = vadd.xlane.f32.xlu1 %v1650_v47  ;;  %v1644_v49 = vsel %vm1197_vm1, %v3473_v48, 0.0 }
 0xa1c   : > { %1645 = vadd.xlane.f32.xlu1 %v1644_v49 }
 0xa2d   : > { %1677 = vrot.lane.b32.xlu1 %v4380_v31, %s3867_s3 }
 0xa2e   : > { %1763 = vrot.lane.b32.xlu0 %v4319_v38, %s3868_s20 }
 0xa31   : > { %1765 = vrot.lane.b32.xlu1 %v4325_v41, %s3868_s20 }
 0xa32   : > { %1767 = vrot.lane.b32.xlu0 %v4329_v43, %s3868_s20 }
 0xa35   : > { %1769 = vrot.lane.b32.xlu1 %v4339_v51, %s3868_s20 }
 0xa36   : > { %1755 = vrot.lane.b32.xlu0 %v4350_v63, %s3868_s20 }
 0xa39   : > { %1757 = vrot.lane.b32.xlu1 %v4348_v62, %s3868_s20 }
 0xaa1   : > { %v1649_v50 = vpop.xlane.xlu0 %1648 }
 0xaa5   : > { %v1643_v52 = vpop.xlane.xlu0 %1642  ;;  %v1652_v53 = vpop.xlane.xlu1 %1651 }
 0xaa6   : > { %3474 = vrcp.f32 %v1652_v53 }
 0xaa7   : > { %3476 = vrcp.f32 %v1643_v52 }
 0xaa8   : > { %3478 = vrcp.f32 %v1649_v50 }
 0xaa9   : > { %v1646_v38 = vpop.xlane.xlu1 %1645  ;;  %v1764_v54 = vpop.permute.xlu0 %1763 }
 0xaaa   : > { %3480 = vrcp.f32 %v1646_v38  ;;  %v1778_v61 = vsel %vm1129_vm0, %v1764_v54, 0 }
 0xaad   : > { %v1678_v41 = vpop.permute.xlu1 %1677  ;;  %v1768_v62 = vpop.permute.xlu0 %1767 }
 0xaae   : > { %3123 = vmatprep.subr.bf16.mxu1 %v1678_v41  ;;  %v1784_v5 = vsel %vm1129_vm0, %v1768_v62, 0 }
 0xaaf   : > { %3124 = vmatpush3.bf16.msra.mxu1 %v1678_v41 }
 0xab0   : > { %3185 = vmatprep.subr.msk.bf16.mxu1 %vm1129_vm0, %v1764_v54  ;;  %v3475_v43 = vpop.eup %3474 }
 0xab1   : > { %v3477_v51 = vpop.eup %3476  ;;  %v1660_v56 = vmul.f32 %v3475_v43, %v3471_v45  ;;  %v1756_v2 = vpop.permute.xlu0 %1755 }
 0xab2   : > { %v3479_v63 = vpop.eup %3478  ;;  %v1657_v57 = vmul.f32 %v3477_v51, %v3469_v44  ;;  %v1766_v3 = vpop.permute.xlu1 %1765 }
 0xab3   : > { %v1659_v59 = vmul.f32 %v3479_v63, %v3467_v40  ;;  %v1781_v4 = vsel %vm1129_vm0, %v1766_v3, 0 }
 0xab4   : > { %v3481_v55 = vpop.eup %3480 }
 0xab5   : > { %v1658_v58 = vmul.f32 %v3481_v55, %v3473_v48  ;;  %v1662_v1 = vpack.c.bf16 %v1660_v56, %v1659_v59 }
 0xab6   : > { %v1770_v6 = vpop.permute.xlu1 %1769 }
 0xab7   : > { %v1661_v60 = vpack.c.bf16 %v1658_v58, %v1657_v57  ;;  %v1787_v13 = vsel %vm1129_vm0, %v1770_v6, 0 }
 0xab9   : > { %3125 = vmatprep.mubr.msk.bf16.mxu1 %vm1197_vm1, %v1661_v60 }
 0xaba   : > { %3126 = vmatmul.mubr.msk.bf16.vlgmr.msra.gmra.mrb[12].mxu1 %vm1197_vm1, %v1662_v1  ;;  %v1758_v14 = vpop.permute.xlu1 %1757  ;;  %v3386_v1 = vld [vmem:[#allocation13] sm:$0xff]  }
 0xabb   : > { %3130 = vmatpush3.bf16.xpose.msra.mxu1 %v1778_v61  ;;  %3137 = vmatprep.mubr.msk.bf16.mxu1 %vm1129_vm0, %v1756_v2  ;;  %v3387_v2 = vld [vmem:[#allocation13 + $0x8] sm:$0xff]  }
 0xabc   : > { %3186 = vmatprep.subr.msk.bf16.mxu1 %vm1129_vm0, %v1766_v3  ;;  %v3388_v3 = vld [vmem:[#allocation13 + $0x10] sm:$0xff]  }
 0xac3   : > { %3132 = vmatpush3.bf16.xpose.msra.mxu1 %v1781_v4  ;;  %v3389_v4 = vld [vmem:[#allocation13 + $0x18] sm:$0xff]  }
 0xac4   : > { %3187 = vmatprep.subr.msk.bf16.mxu1 %vm1129_vm0, %v1768_v62 }
 0xacb   : > { %3134 = vmatpush3.bf16.xpose.msra.mxu1 %v1784_v5  ;;  %v3390_v5 = vld [vmem:[#allocation13 + $0x20] sm:$0xff]  }
 0xacc   : > { %3188 = vmatprep.subr.msk.bf16.mxu1 %vm1129_vm0, %v1770_v6  ;;  %v3391_v6 = vld [vmem:[#allocation13 + $0x28] sm:$0xff]  }
 0xad3   : > { %3136 = vmatpush3.bf16.xpose.msra.mxu1 %v1787_v13  ;;  %v3392_v13 = vld [vmem:[#allocation13 + $0x30] sm:$0xff]  }
 0xada   : > { %3138 = vmatmul.mubr.msk.bf16.vlgmr.msra.gmra.mrb[16].mxu1 %vm1129_vm0, %v1758_v14  ;;  %v3393_v14 = vld [vmem:[#allocation13 + $0x38] sm:$0xff]  }
 0xb8d   : > { %v3127_v15 = vpop.f32.mrb[12].mxu1 }
 0xb8e   : > { %v1723_v16 = vpop.f32.mrb[13].mxu1 }
 0xb8f   : > { %v3128_v0 = vpop.f32.mrb[14].mxu1 }
 0xb90   : > { %v1739_v17 = vpack.c.bf16 %v3128_v0, %v3127_v15  ;;  %v1726_v18 = vpop.f32.mrb[15].mxu1 }
 0xb91   : > { %v1738_v19 = vpack.c.bf16 %v1726_v18, %v1723_v16 }
 0xbad   : > { %v3139_v20 = vpop.f32.mrb[16].mxu1 }
 0xbae   : > { %v1823_v21 = vpop.f32.mrb[17].mxu1  ;;  %v1844_v28 = vsel %vm1197_vm1, %v3139_v20, -inf }
 0xbaf   : > { %v3140_v22 = vpop.f32.mrb[18].mxu1  ;;  %v1838_v23 = vsel %vm1197_vm1, %v1823_v21, -inf }
 0xbb0   : > { %1839 = vmax.xlane.f32.xlu0 %v1838_v23  ;;  %v1826_v26 = vpop.f32.mrb[19].mxu1  ;;  %v1847_v29 = vsel %vm1197_vm1, %v3140_v22, -inf }
 0xbb1   : > { %v1841_v25 = vsel %vm1197_vm1, %v1826_v26, -inf }
 0xbb2   : > { %1842 = vmax.xlane.f32.xlu1 %v1841_v25 }
 0xbb4   : > { %1845 = vmax.xlane.f32.xlu0 %v1844_v28 }
 0xbb8   : > { %1848 = vmax.xlane.f32.xlu0 %v1847_v29 }
 0xbc3   : > { %1894 = vrot.lane.b32.xlu1 %v4368_v27, %s3868_s20 }
 0xbc7   : > { %1896 = vrot.lane.b32.xlu1 %v4372_v30, %s3868_s20 }
 0xc3d   : > { %v1840_v32 = vpop.xlane.xlu0 %1839 }
 0xc3e   : > { %v1850_v33 = vsub.f32 %v1823_v21, %v1840_v32 }
 0xc3f   : > { %v1843_v34 = vpop.xlane.xlu1 %1842 }
 0xc40   : > { %v1854_v37 = vmul.f32 1.442695, %v1850_v33  ;;  %v1851_v39 = vsub.f32 %v1826_v26, %v1843_v34  ;;  %v2866_v26 = vld [vmem:[%s4734_s1] ss:$0 sm:$0xff] }
 0xc41   : > { %v1846_v35 = vpop.xlane.xlu0 %1845 }
 0xc42   : > { %v1852_v36 = vsub.f32 %v3139_v20, %v1846_v35  ;;  %v1856_v45 = vmul.f32 1.442695, %v1851_v39  ;;  %v3515_v39 = vld [vmem:[%s4242_s14 + $0x8] sm:$0xff] }
 0xc43   : > { %v1895_v38 = vpop.permute.xlu1 %1894 }
 0xc44   : > { %v1858_v40 = vmul.f32 1.442695, %v1852_v36  ;;  %v3514_v36 = vld [vmem:[%s4242_s14] sm:$0xff] }
 0xc45   : > { %v1849_v42 = vpop.xlane.xlu0 %1848 }
 0xc46   : > { %3482 = vpow2.f32 %v1858_v40  ;;  %v1853_v44 = vsub.f32 %v3140_v22, %v1849_v42 }
 0xc47   : > { %3484 = vpow2.f32 %v1854_v37  ;;  %v1897_v41 = vpop.permute.xlu1 %1896 }
 0xc48   : > { %v1860_v46 = vmul.f32 1.442695, %v1853_v44  ;;  %v3516_v44 = vld [vmem:[%s4242_s14 + $0x10] sm:$0xff] }
 0xc4a   : > { %3486 = vpow2.f32 %v1860_v46  ;;  %v3517_v46 = vld [vmem:[%s4242_s14 + $0x18] sm:$0xff]  ;;  %s4738_s14 = sld [smem:[#allocation44_spill]] }
 0xc4b   : > { %3488 = vpow2.f32 %v1856_v45 }
 0xc50   : > { %v3483_v27 = vpop.eup %3482 }
 0xc51   : > { %v1868_v47 = vsel %vm1197_vm1, %v3483_v27, 0.0  ;;  %v3485_v30 = vpop.eup %3484 }
 0xc52   : > { %1869 = vadd.xlane.f32.xlu0 %v1868_v47  ;;  %v1862_v49 = vsel %vm1197_vm1, %v3485_v30, 0.0  ;;  %v3394_v47 = vld [vmem:[#allocation15] ss:$8 sps:$4 sm:$0xff]  }
 0xc54   : > { %v3487_v48 = vpop.eup %3486 }
 0xc55   : > { %v1871_v50 = vsel %vm1197_vm1, %v3487_v48, 0.0  ;;  %v3489_v52 = vpop.eup %3488 }
 0xc56   : > { %1863 = vadd.xlane.f32.xlu0 %v1862_v49  ;;  %1872 = vadd.xlane.f32.xlu1 %v1871_v50  ;;  %v1865_v53 = vsel %vm1197_vm1, %v3489_v52, 0.0  ;;  %v3397_v49 = vld [vmem:[#allocation15 + $0x10] ss:$8 sps:$4 sm:$0xff]  }
 0xc5a   : > { %1866 = vadd.xlane.f32.xlu1 %v1865_v53 }
 0xc6b   : > { %1898 = vrot.lane.b32.xlu1 %v4380_v31, %s3868_s20 }
 0xc6c   : > { %1892 = vrot.lane.b32.xlu0 %v4364_v24, %s3868_s20 }
 0xc6f   : > { %1523 = vrot.lane.b32.xlu1 %v1518_v10, %s3868_s20 }
 0xc70   : > { %1521 = vrot.lane.b32.xlu0 %v1517_v12, %s3868_s20  ;;  %s2917_s20 = sshll.u32 %s3835_s24, 2  ;;  %s4741_s24 = sld [smem:[#allocation47_spill]] }
 0xc73   : > { %1744 = vrot.lane.b32.xlu1 %v1739_v17, %s3867_s3 }
 0xc74   : > { %1742 = vrot.lane.b32.xlu0 %v1738_v19, %s3867_s3 }
 0xcdf   : > { %v1870_v31 = vpop.xlane.xlu0 %1869 }
 0xce3   : > { %v1864_v54 = vpop.xlane.xlu0 %1863  ;;  %v1873_v43 = vpop.xlane.xlu1 %1872 }
 0xce4   : > { %3490 = vrcp.f32 %v1873_v43 }
 0xce5   : > { %3492 = vrcp.f32 %v1864_v54 }
 0xce6   : > { %3494 = vrcp.f32 %v1870_v31 }
 0xce7   : > { %v1893_v24 = vpop.permute.xlu0 %1892  ;;  %v1867_v7 = vpop.xlane.xlu1 %1866 }
 0xce8   : > { %3496 = vrcp.f32 %v1867_v7  ;;  %3141 = vmatprep.subr.bf16.mxu0 %v1893_v24 }
 0xce9   : > { %3142 = vmatpush3.bf16.msra.mxu0 %v1893_v24 }
 0xcea   : > { %3143 = vmatprep.subr.bf16.mxu0 %v1895_v38 }
 0xceb   : > { %v1522_v8 = vpop.permute.xlu0 %1521  ;;  %v1899_v9 = vpop.permute.xlu1 %1898 }
 0xcec   : > { %1528 = vst.msk [vmem:[#allocation4] sm:$0xff] %vm1527_vm2, %v1522_v8 }
 0xced   : > { %3144 = vmatpush3.bf16.msra.mxu0 %v1895_v38 }
 0xcee   : > { %3145 = vmatprep.subr.bf16.mxu0 %v1897_v41  ;;  %v3491_v10 = vpop.eup %3490 }
 0xcef   : > { %v1743_v11 = vpop.permute.xlu0 %1742  ;;  %v1524_v12 = vpop.permute.xlu1 %1523  ;;  %v1881_v56 = vmul.f32 %v3491_v10, %v3487_v48  ;;  %v3399_v48 = vld [vmem:[#allocation15 + $0x14] ss:$8 sps:$4 sm:$0xff]  }
 0xcf0   : > { %v3493_v51 = vpop.eup %3492  ;;  %1749 = vst.msk [vmem:[#allocation4] sm:$0xff] %vm1748_vm3, %v1743_v11 }
 0xcf1   : > { %1529 = vst.msk [vmem:[#allocation4 + $0x8] sm:$0xff] %vm1527_vm2, %v1524_v12  ;;  %v3495_v63 = vpop.eup %3494  ;;  %3146 = vmatpush3.bf16.msra.mxu0 %v1897_v41  ;;  %v1878_v57 = vmul.f32 %v3493_v51, %v3485_v30  ;;  %v3396_v30 = vld [vmem:[#allocation15 + $0x4] ss:$8 sps:$4 sm:$0xff]  }
 0xcf2   : > { %v3497_v55 = vpop.eup %3496  ;;  %3147 = vmatprep.subr.bf16.mxu0 %v1899_v9  ;;  %v1880_v59 = vmul.f32 %v3495_v63, %v3483_v27  ;;  %2275 = vmatprep.subr.bf16.mxu1 %v3396_v30  ;;  %v3402_v63 = vld [vmem:[#allocation15 + $0x24] ss:$8 sps:$4 sm:$0xff]  }
 0xcf3   : > { %v1745_v62 = vpop.permute.xlu1 %1744  ;;  %v1879_v58 = vmul.f32 %v3497_v55, %v3489_v52  ;;  %2276 = vmatpush1.bf16.msra.mxu1 %v3394_v47  ;;  %v3400_v55 = vld [vmem:[#allocation15 + $0x20] ss:$8 sps:$4 sm:$0xff]  }
 0xcf4   : > { %1750 = vst.msk [vmem:[#allocation4 + $0x8] sm:$0xff] %vm1748_vm3, %v1745_v62  ;;  %v1883_v61 = vpack.c.bf16 %v1881_v56, %v1880_v59  ;;  %2277 = vmatprep.subr.bf16.mxu1 %v3399_v48  ;;  %v3405_v56 = vld [vmem:[#allocation15 + $0x34] ss:$8 sps:$4 sm:$0xff]   ;;  %v3403_v62 = vld [vmem:[#allocation15 + $0x30] ss:$8 sps:$4 sm:$0xff]  }
 0xcf5   : > { %3148 = vmatpush3.bf16.msra.mxu0 %v1899_v9  ;;  %v1882_v60 = vpack.c.bf16 %v1879_v58, %v1878_v57  ;;  %v3408_v57 = vld [vmem:[#allocation15 + $0x44] ss:$8 sps:$4 sm:$0xff]   ;;  %v3406_v58 = vld [vmem:[#allocation15 + $0x40] ss:$8 sps:$4 sm:$0xff]   ;;  %v3411_v59 = vld [vmem:[#allocation15 + $0x54] ss:$8 sps:$4 sm:$0xff]  }
 0xcf6   : > { %3153 = vmatprep.subr.bf16.mxu0 %v3386_v1 }
 0xcf7   : > { %3149 = vmatprep.mubr.msk.bf16.mxu0 %vm1197_vm1, %v1882_v60  ;;  %2278 = vmatpush1.bf16.msra.mxu1 %v3397_v49  ;;  %v3409_v60 = vld [vmem:[#allocation15 + $0x50] ss:$8 sps:$4 sm:$0xff]  }
 0xcf8   : > { %3150 = vmatmul.mubr.msk.bf16.vlgmr.msra.gmra.mrb[12].mxu0 %vm1197_vm1, %v1883_v61  ;;  %2279 = vmatprep.subr.bf16.mxu1 %v3402_v63  ;;  %v3414_v61 = vld [vmem:[#allocation15 + $0x64] ss:$8 sps:$4 sm:$0xff]   ;;  %v2183_v63 = vld [vmem:[%s4737_s10] sm:$0x3]  ;;  %s2918_s10 = sshll.u32 %s3839_s25, 3 }
 0xcf9   : > { %3154 = vmatpush3.bf16.msra.mxu0 %v3386_v1  ;;  %v3412_v1 = vld [vmem:[#allocation15 + $0x60] ss:$8 sps:$4 sm:$0xff]   ;;  %s2623_s13 = sadd.s32 %s2918_s10, %s2917_s20 }
 0xcfa   : > { %3155 = vmatprep.subr.bf16.mxu0 %v3387_v2  ;;  %s2919_s1 = sshll.u32 %s2623_s13, 6 }
 0xcfb   : > { %2280 = vmatpush1.bf16.msra.mxu1 %v3400_v55  ;;  %s4604_s25 = scalar_lea.hbm %s4741_s24, %s2919_s1 }
 0xcfc   : > { %2281 = vmatprep.subr.bf16.mxu1 %v3405_v56 }
 0xcfd   : > { %3156 = vmatpush3.bf16.msra.mxu0 %v3387_v2  ;;  %v3417_v2 = vld [vmem:[#allocation15 + $0x74] ss:$8 sps:$4 sm:$0xff]  }
 0xcfe   : > { %3157 = vmatprep.subr.bf16.mxu0 %v3388_v3 }
 0xcff   : > { %2282 = vmatpush1.bf16.msra.mxu1 %v3403_v62 }
 0xd00   : > { %2283 = vmatprep.subr.bf16.mxu1 %v3408_v57 }
 0xd01   : > { %3158 = vmatpush3.bf16.msra.mxu0 %v3388_v3  ;;  %v3415_v3 = vld [vmem:[#allocation15 + $0x70] ss:$8 sps:$4 sm:$0xff]  }
 0xd02   : > { %3159 = vmatprep.subr.bf16.mxu0 %v3389_v4 }
 0xd03   : > { %2284 = vmatpush1.bf16.msra.mxu1 %v3406_v58 }
 0xd04   : > { %2285 = vmatprep.subr.bf16.mxu1 %v3411_v59 }
 0xd05   : > { %3160 = vmatpush3.bf16.msra.mxu0 %v3389_v4  ;;  %v3869_v4 = vmov 0  }
 0xd06   : > { %3161 = vmatprep.subr.bf16.mxu0 %v3390_v5  ;;  %2307 = vmatprep.mubr.bf16.mxu1 %v3869_v4 }
 0xd07   : > { %2286 = vmatpush1.bf16.msra.mxu1 %v3409_v60 }
 0xd08   : > { %2287 = vmatprep.subr.bf16.mxu1 %v3414_v61 }
 0xd09   : > { %3162 = vmatpush3.bf16.msra.mxu0 %v3390_v5  ;;  %v3418_v5 = vld [vmem:[#allocation16 + $0x40] sm:$0xff]  }
 0xd0a   : > { %3163 = vmatprep.subr.bf16.mxu0 %v3391_v6 }
 0xd0b   : > { %2288 = vmatpush1.bf16.msra.mxu1 %v3412_v1 }
 0xd0c   : > { %2289 = vmatprep.subr.bf16.mxu1 %v3417_v2 }
 0xd0d   : > { %3164 = vmatpush3.bf16.msra.mxu0 %v3391_v6  ;;  %v3419_v6 = vld [vmem:[#allocation16] sm:$0xff]  }
 0xd0e   : > { %3165 = vmatprep.subr.bf16.mxu0 %v3392_v13 }
 0xd0f   : > { %2290 = vmatpush1.bf16.msra.mxu1 %v3415_v3 }
 0xd11   : > { %3166 = vmatpush3.bf16.msra.mxu0 %v3392_v13  ;;  %v3420_v13 = vld [vmem:[#allocation16 + $0x48] sm:$0xff]  }
 0xd12   : > { %3167 = vmatprep.subr.bf16.mxu0 %v3393_v14 }
 0xd15   : > { %3168 = vmatpush3.bf16.msra.mxu0 %v3393_v14  ;;  %v3421_v14 = vld [vmem:[#allocation16 + $0x8] sm:$0xff]  }
 0xd16   : > { %3009 = vmatprep.subr.bf16.mxu0 %v3418_v5 }
 0xdcb   : > { %v3151_v15 = vpop.f32.mrb[12].mxu0 }
 0xdcc   : > { %v1944_v16 = vpop.f32.mrb[13].mxu0 }
 0xdcd   : > { %v3152_v0 = vpop.f32.mrb[14].mxu0 }
 0xdce   : > { %v1960_v17 = vpack.c.bf16 %v3152_v0, %v3151_v15  ;;  %v1947_v18 = vpop.f32.mrb[15].mxu0  ;;  %v3422_v15 = vld [vmem:[#allocation16 + $0x50] sm:$0xff]   ;;  %v3424_v0 = vld [vmem:[#allocation16 + $0x58] sm:$0xff]  }
 0xdcf   : > { %v1959_v19 = vpack.c.bf16 %v1947_v18, %v1944_v16  ;;  %v3423_v16 = vld [vmem:[#allocation16 + $0x10] sm:$0xff]   ;;  %v3426_v18 = vld [vmem:[#allocation16 + $0x60] sm:$0xff]  }
 0xdd0   : > { %1965 = vrot.lane.b32.xlu1 %v1960_v17, %s3866_s30  ;;  %v3425_v17 = vld [vmem:[#allocation16 + $0x18] sm:$0xff]  }
 0xdd1   : > { %1963 = vrot.lane.b32.xlu0 %v1959_v19, %s3866_s30  ;;  %v3427_v19 = vld [vmem:[#allocation16 + $0x20] sm:$0xff]   ;;  %s4740_s30 = sld [smem:[#allocation46_spill]] }
 0xe42   : > { %v1966_v20 = vpop.permute.xlu1 %1965 }
 0xe43   : > { %1971 = vst.msk [vmem:[#allocation4 + $0x8] sm:$0xff] %vm1969_vm4, %v1966_v20  ;;  %v1964_v21 = vpop.permute.xlu0 %1963  ;;  %v3428_v20 = vld [vmem:[#allocation16 + $0x68] sm:$0xff]  }
 0xe44   : > { %1970 = vst.msk [vmem:[#allocation4] sm:$0xff] %vm1969_vm4, %v1964_v21 }
 0xe4a   : > { %v1973_v23 = vld [vmem:[#allocation4 + $0x8] sm:$0xff] }
 0xe4b   : > { %v1972_v22 = vld [vmem:[#allocation4] sm:$0xff] }
 0xe4c   : > { %3169 = vmatprep.mubr.bf16.mxu0 %v1972_v22 }
 0xe4d   : > { %3170 = vmatmul.mubr.bf16.vlgmr.msra.gmra.mrb[16].mxu0 %v1973_v23 }
 0xe4e   : > { %3010 = vmatpush3.bf16.msra.mxu0 %v3419_v6 }
 0xe4f   : > { %3011 = vmatprep.subr.bf16.mxu0 %v3420_v13 }
 0xe52   : > { %3012 = vmatpush3.bf16.msra.mxu0 %v3421_v14 }
 0xe53   : > { %3013 = vmatprep.subr.bf16.mxu0 %v3422_v15 }
 0xe56   : > { %3014 = vmatpush3.bf16.msra.mxu0 %v3423_v16 }
 0xe57   : > { %3015 = vmatprep.subr.bf16.mxu0 %v3424_v0 }
 0xe5a   : > { %3016 = vmatpush3.bf16.msra.mxu0 %v3425_v17 }
 0xe5b   : > { %3017 = vmatprep.subr.bf16.mxu0 %v3426_v18 }
 0xe5e   : > { %3018 = vmatpush3.bf16.msra.mxu0 %v3427_v19 }
 0xe5f   : > { %3019 = vmatprep.subr.bf16.mxu0 %v3428_v20 }
 0xf20   : > { %v3171_v25 = vpop.f32.mrb[16].mxu0 }
 0xf21   : > { %v2079_v28 = vpop.f32.mrb[17].mxu0  ;;  %v2088_v34 = vadd.f32 %v3171_v25, %v2866_v26 }
 0xf22   : > { %v2080_v29 = vadd.f32 %v2866_v26, %v2079_v28  ;;  %v3172_v32 = vpop.f32.mrb[18].mxu0 }
 0xf23   : > { %v2082_v33 = vpop.f32.mrb[19].mxu0  ;;  %v2091_v42 = vadd.f32 %v3172_v32, %v2866_v26  ;;  %v2096_v45 = vadd.f32 %v3516_v44, %v2088_v34 }
 0xf24   : > { %v2083_v35 = vadd.f32 %v2866_v26, %v2082_v33  ;;  %v2094_v37 = vadd.f32 %v3514_v36, %v2080_v29 }
 0xf25   : > { %v2097_v27 = vadd.f32 %v3517_v46, %v2091_v42 }
 0xf26   : > { %2100 = vadd.xlane.f32.xlu0 %v2094_v37  ;;  %v2095_v40 = vadd.f32 %v3515_v39, %v2083_v35  ;;  %v2875_v39 = vld [vmem:[%s4735_s29] ss:$0 sm:$0xff] }
 0xf28   : > { %2102 = vadd.xlane.f32.xlu1 %v2095_v40 }
 0xf2a   : > { %2104 = vadd.xlane.f32.xlu0 %v2096_v45 }
 0xf2e   : > { %2106 = vadd.xlane.f32.xlu0 %v2097_v27 }
 0xfb3   : > { %v2101_v50 = vpop.xlane.xlu0 %2100 }
 0xfb4   : > { %v2109_v52 = vmul.f32 0.0078125, %v2101_v50 }
 0xfb5   : > { %v2103_v53 = vpop.xlane.xlu1 %2102 }
 0xfb6   : > { %v4537_v38 = vsub.f32 %v2094_v37, %v2109_v52  ;;  %v2110_v41 = vmul.f32 0.0078125, %v2103_v53 }
 0xfb7   : > { %v2105_v31 = vpop.xlane.xlu0 %2104 }
 0xfb8   : > { %v4539_v54 = vsub.f32 %v2095_v40, %v2110_v41  ;;  %v2111_v43 = vmul.f32 0.0078125, %v2105_v31  ;;  %v2117_v24 = vmul.f32 %v4537_v38, %v4537_v38 }
 0xfba   : > { %v4543_v7 = vsub.f32 %v2096_v45, %v2111_v43  ;;  %2121 = vadd.xlane.f32.xlu0 %v2117_v24  ;;  %v2118_v8 = vmul.f32 %v4539_v54, %v4539_v54  ;;  %v3429_v24 = vld [vmem:[#allocation16 + $0x28] sm:$0xff]  }
 0xfbb   : > { %v2107_v9 = vpop.xlane.xlu0 %2106  ;;  %3020 = vmatpush3.bf16.msra.mxu0 %v3429_v24 }
 0xfbc   : > { %v2112_v10 = vmul.f32 0.0078125, %v2107_v9  ;;  %2123 = vadd.xlane.f32.xlu1 %v2118_v8  ;;  %v2119_v11 = vmul.f32 %v4543_v7, %v4543_v7  ;;  %v3431_v8 = vld [vmem:[#allocation16 + $0x30] sm:$0xff]   ;;  %v3432_v9 = vld [vmem:[#allocation16 + $0x78] sm:$0xff]  }
 0xfbe   : > { %v4549_v12 = vsub.f32 %v2097_v27, %v2112_v10  ;;  %2125 = vadd.xlane.f32.xlu0 %v2119_v11  ;;  %v2876_v27 = vld [vmem:[%s4736_s17] ss:$0 sm:$0xff]  ;;  %v3433_v10 = vld [vmem:[#allocation16 + $0x38] sm:$0xff]   ;;  %v2185_v11 = vlaneseq }
 0xfc0   : > { %v2120_v51 = vmul.f32 %v4549_v12, %v4549_v12 }
 0xfc2   : > { %2127 = vadd.xlane.f32.xlu1 %v2120_v51 }
0x1047   : > { %v2122_v21 = vpop.xlane.xlu0 %2121 }
0x1048   : > { %v2129_v22 = vmul.f32 0.0078125, %v2122_v21 }
0x1049   : > { %v2124_v23 = vpop.xlane.xlu1 %2123 }
0x104a   : > { %v2133_v26 = vadd.f32 1e-05, %v2129_v22  ;;  %v2130_v25 = vmul.f32 0.0078125, %v2124_v23 }
0x104b   : > { %v2126_v28 = vpop.xlane.xlu0 %2125 }
0x104c   : > { %3498 = vrsqrt.f32 %v2133_v26  ;;  %v2134_v29 = vadd.f32 1e-05, %v2130_v25  ;;  %v2131_v32 = vmul.f32 0.0078125, %v2126_v28 }
0x104e   : > { %3500 = vrsqrt.f32 %v2134_v29  ;;  %v2135_v33 = vadd.f32 1e-05, %v2131_v32  ;;  %v2893_v29 = vld [vmem:[%s4738_s14] ss:$0 sm:$0xff]  ;;  %s2626_s14 = sshll.u32 %s4261_s0, 4  ;;  %s4606_s14 = int_to_ptr.vmem [resolvable:$true] %s2626_s14 }
0x104f   : > { %v2128_v34 = vpop.xlane.xlu1 %2127  ;;  %s3737_s17 = scalar_lea.vmem %s4606_s14, 256 }
0x1050   : > { %3502 = vrsqrt.f32 %v2135_v33  ;;  %v2132_v35 = vmul.f32 0.0078125, %v2128_v34  ;;  %p3738_p0 = scmp.ne.s32.totalorder %s4606_s14, %s3737_s17 }
0x1052   : > { %v2136_v36 = vadd.f32 1e-05, %v2132_v35  ;;  %p3739_p6 = pnand %p3738_p0, %p4743_p3 }
0x1054   : > { %3504 = vrsqrt.f32 %v2136_v36  ;;  %p3740_p4 = pneg %p3739_p6 }
0x1056   : > { %v3499_v37 = vpop.eup %3498 }
0x1057   : > { %v2141_v40 = vmul.f32 %v3499_v37, %v4537_v38 }
0x1058   : > { %v3501_v42 = vpop.eup %3500 }
0x1059   : > { %v2142_v44 = vmul.f32 %v3501_v42, %v4539_v54  ;;  %v2151_v45 = vmul.f32 %v2875_v39, %v2141_v40 }
0x105a   : > { %v3503_v46 = vpop.eup %3502 }
0x105b   : > { %v2152_v47 = vmul.f32 %v2875_v39, %v2142_v44  ;;  %v4562_v30 = vadd.f32 %v2876_v27, %v2151_v45  ;;  %v2143_v49 = vmul.f32 %v3503_v46, %v4543_v7  ;;  %v3430_v7 = vld [vmem:[#allocation16 + $0x70] sm:$0xff]  }
0x105c   : > { %3021 = vmatprep.subr.bf16.mxu0 %v3430_v7 }
0x105d   : > { %v4564_v48 = vadd.f32 %v2876_v27, %v2152_v47  ;;  %v2153_v38 = vmul.f32 %v2875_v39, %v2143_v49  ;;  %3022 = vmatpush3.bf16.msra.mxu0 %v3431_v8 }
0x105e   : > { %v3505_v50 = vpop.eup %3504  ;;  %3023 = vmatprep.subr.bf16.mxu0 %v3432_v9 }
0x105f   : > { %v2165_v52 = vpack.c.bf16 %v4564_v48, %v4562_v30  ;;  %v2144_v53 = vmul.f32 %v3505_v50, %v4549_v12  ;;  %v4573_v54 = vadd.f32 %v2876_v27, %v2153_v38  ;;  %v2186_v12 = vshrl.u32 %v2185_v11, 7 }
0x1061   : > { %2308 = vmatmul.mubr.bf16.vlgmr.msra.gmra.mrb[20].mxu1 %v2165_v52  ;;  %v2154_v41 = vmul.f32 %v2875_v39, %v2144_v53  ;;  %3024 = vmatpush3.bf16.msra.mxu0 %v3433_v10  ;;  %v2187_v51 = vsub.s32 0, %v2186_v12  ;;  %v2191_v55 = vsub.s32 1, %v2186_v12 }
0x1062   : > { %2317 = vmatprep.mubr.bf16.mxu1 %v3869_v4 }
0x1063   : > { %v4571_v31 = vadd.f32 %v2876_v27, %v2154_v41  ;;  %v2188_v56 = vrot.slane %v2183_v63, %v2187_v51  ;;  %v2192_v57 = vrot.slane %v2183_v63, %v2191_v55 }
0x1065   : > { %v2166_v43 = vpack.c.bf16 %v4571_v31, %v4573_v54 }
0x1069   : > { %2318 = vmatmul.mubr.bf16.gmra.mrb[24].mxu1 %v2166_v43 }
0x1134   : > { %v2309_v62 = vpop.f32.mrb[20].mxu1 }
0x1135   : > { %v2311_v58 = vpop.f32.mrb[21].mxu1  ;;  %v2310_v60 = vadd.f32 %v2309_v62, %v2188_v56 }
0x1136   : > { %v2313_v59 = vpop.f32.mrb[22].mxu1  ;;  %v2312_v2 = vadd.f32 %v2311_v58, %v2192_v57 }
0x1137   : > { %v2314_v61 = vadd.f32 %v2313_v59, %v2188_v56  ;;  %v2315_v1 = vpop.f32.mrb[23].mxu1 }
0x1138   : > { %v2316_v3 = vadd.f32 %v2315_v1, %v2192_v57 }
0x1139   : > { %v2328_v5 = vpack.c.bf16 %v2314_v61, %v2310_v60 }
0x113a   : > { %v2329_v6 = vpack.c.bf16 %v2316_v3, %v2312_v2 }
0x113b   : > { %v2332_v15 = vmax.bf16 %v3869_v4, %v2328_v5 }
0x113c   : > { %v2319_v13 = vpop.f32.mrb[24].mxu1  ;;  %v2333_v14 = vmax.bf16 %v3869_v4, %v2329_v6 }
0x113d   : > { %v2321_v16 = vpop.f32.mrb[25].mxu1  ;;  %v2320_v17 = vadd.f32 %v2319_v13, %v2188_v56  ;;  %v2910_v13 = vld [vmem:[%s4739_s5] ss:$0 sm:$0xff]  ;;  %s4742_s5 = smov %s4741_s24 }
0x113e   : > { %v2323_v0 = vpop.f32.mrb[26].mxu1  ;;  %2503 = vmatprep.mubr.bf16.mxu0 %v2333_v14  ;;  %v2322_v20 = vadd.f32 %v2321_v16, %v2192_v57 }
0x113f   : > { %v2324_v18 = vadd.f32 %v2323_v0, %v2188_v56  ;;  %v2325_v19 = vpop.f32.mrb[27].mxu1  ;;  %2504 = vmatmul.mubr.bf16.vlgmr.msra.gmra.mrb[20].mxu0 %v2332_v15 }
0x1140   : > { %v2326_v21 = vadd.f32 %v2325_v19, %v2192_v57 }
0x1141   : > { %v2330_v22 = vpack.c.bf16 %v2324_v18, %v2320_v17  ;;  %v2911_v17 = vld [vmem:[%s4740_s30] ss:$0 sm:$0xff]  ;;  %s3870_s30 = smov [#allocation18]  }
0x1142   : > { %v2331_v23 = vpack.c.bf16 %v2326_v21, %v2322_v20  ;;  %s3741_s20 = sshll.u32 %s3870_s30, 4  ;;  %s3742_s20 = int_to_ptr.vmem [resolvable:$false] %s3741_s20 }
0x1143   : > { %v2334_v25 = vmax.bf16 %v3869_v4, %v2330_v22  ;;  %s3743_s10 = scalar_lea.vmem %s3742_s20, 512  ;;  %p3744_p8 = scmp.lt.s32.totalorder %s4606_s14, %s3742_s20 }
0x1144   : > { %v2335_v26 = vmax.bf16 %v3869_v4, %v2331_v23  ;;  %p3745_p7 = scmp.lt.s32.totalorder %s3743_s10, %s3737_s17 }
0x1146   : > { %2511 = vmatprep.mubr.bf16.mxu0 %v2335_v26  ;;  %p3746_p5 = por %p3745_p7, %p3744_p8 }
0x1147   : > { %2512 = vmatmul.mubr.bf16.gmra.mrb[24].mxu0 %v2334_v25 }
0x1148   : > { %p3747_p2 = pnand %p3746_p5, %p3740_p4 }
0x1212   : > { %v3025_v28 = vpop.f32.mrb[20].mxu0 }
0x1213   : > { %v3026_v32 = vpop.f32.mrb[21].mxu0 }
0x1214   : > { %v3027_v33 = vadd.f32 %v3026_v32, %v3025_v28  ;;  %v3028_v34 = vpop.f32.mrb[22].mxu0 }
0x1215   : > { %v3029_v35 = vpop.f32.mrb[23].mxu0 }
0x1216   : > { %v2506_v36 = vadd.f32 %v3027_v33, %v2893_v29  ;;  %v3030_v37 = vadd.f32 %v3029_v35, %v3028_v34 }
0x1218   : > { %v2509_v39 = vadd.f32 %v3030_v37, %v2893_v29  ;;  %v2520_v40 = vadd.f32 %v2506_v36, %v4562_v30 }
0x121a   : > { %2526 = vadd.xlane.f32.xlu0 %v2520_v40  ;;  %v3031_v42 = vpop.f32.mrb[24].mxu0  ;;  %v2521_v4 = vadd.f32 %v2509_v39, %v4564_v48 }
0x121b   : > { %v3032_v44 = vpop.f32.mrb[25].mxu0 }
0x121c   : > { %v3033_v45 = vadd.f32 %v3032_v44, %v3031_v42  ;;  %2528 = vadd.xlane.f32.xlu1 %v2521_v4  ;;  %v3034_v46 = vpop.f32.mrb[26].mxu0 }
0x121d   : > { %v3035_v27 = vpop.f32.mrb[27].mxu0 }
0x121e   : > { %v2514_v47 = vadd.f32 %v3033_v45, %v2893_v29  ;;  %v3036_v49 = vadd.f32 %v3035_v27, %v3034_v46 }
0x1220   : > { %v2517_v50 = vadd.f32 %v3036_v49, %v2893_v29  ;;  %v2522_v52 = vadd.f32 %v2514_v47, %v4573_v54 }
0x1222   : > { %2530 = vadd.xlane.f32.xlu0 %v2522_v52  ;;  %v2523_v53 = vadd.f32 %v2517_v50, %v4571_v31 }
0x1224   : > { %2532 = vadd.xlane.f32.xlu1 %v2523_v53 }
0x12a7   : > { %v2527_v38 = vpop.xlane.xlu0 %2526 }
0x12a8   : > { %v2534_v30 = vmul.f32 0.0078125, %v2527_v38 }
0x12a9   : > { %v2529_v41 = vpop.xlane.xlu1 %2528 }
0x12aa   : > { %v2538_v43 = vsub.f32 %v2520_v40, %v2534_v30  ;;  %v2535_v24 = vmul.f32 0.0078125, %v2529_v41 }
0x12ac   : > { %v2539_v48 = vsub.f32 %v2521_v4, %v2535_v24  ;;  %v2542_v7 = vmul.f32 %v2538_v43, %v2538_v43 }
0x12ae   : > { %2546 = vadd.xlane.f32.xlu0 %v2542_v7  ;;  %v2543_v8 = vmul.f32 %v2539_v48, %v2539_v48 }
0x12af   : > { %v2531_v9 = vpop.xlane.xlu0 %2530 }
0x12b0   : > { %v2536_v10 = vmul.f32 0.0078125, %v2531_v9  ;;  %2548 = vadd.xlane.f32.xlu1 %v2543_v8 }
0x12b1   : > { %v2533_v11 = vpop.xlane.xlu1 %2532 }
0x12b2   : > { %v2540_v12 = vsub.f32 %v2522_v52, %v2536_v10  ;;  %v2537_v51 = vmul.f32 0.0078125, %v2533_v11 }
0x12b4   : > { %v2541_v54 = vsub.f32 %v2523_v53, %v2537_v51  ;;  %v2544_v63 = vmul.f32 %v2540_v12, %v2540_v12 }
0x12b6   : > { %2550 = vadd.xlane.f32.xlu0 %v2544_v63  ;;  %v2545_v31 = vmul.f32 %v2541_v54, %v2541_v54 }
0x12b8   : > { %2552 = vadd.xlane.f32.xlu1 %v2545_v31 }
0x133b   : > { %v2547_v55 = vpop.xlane.xlu0 %2546 }
0x133c   : > { %v2554_v56 = vmul.f32 0.0078125, %v2547_v55 }
0x133d   : > { %v2549_v62 = vpop.xlane.xlu1 %2548 }
0x133e   : > { %v2558_v57 = vadd.f32 1e-05, %v2554_v56  ;;  %v2555_v58 = vmul.f32 0.0078125, %v2549_v62 }
0x1340   : > { %3506 = vrsqrt.f32 %v2558_v57  ;;  %v2559_v59 = vadd.f32 1e-05, %v2555_v58 }
0x1342   : > { %3508 = vrsqrt.f32 %v2559_v59 }
0x1343   : > { %v2551_v60 = vpop.xlane.xlu0 %2550 }
0x1344   : > { %v2556_v61 = vmul.f32 0.0078125, %v2551_v60 }
0x1345   : > { %v2553_v1 = vpop.xlane.xlu1 %2552 }
0x1346   : > { %v2560_v2 = vadd.f32 1e-05, %v2556_v61  ;;  %v2557_v3 = vmul.f32 0.0078125, %v2553_v1 }
0x1348   : > { %3510 = vrsqrt.f32 %v2560_v2  ;;  %v2561_v5 = vadd.f32 1e-05, %v2557_v3 }
0x134a   : > { %v3507_v6 = vpop.eup %3506  ;;  %3512 = vrsqrt.f32 %v2561_v5 }
0x134b   : > { %v2566_v14 = vmul.f32 %v3507_v6, %v2538_v43 }
0x134c   : > { %v3509_v15 = vpop.eup %3508 }
0x134d   : > { %v2576_v16 = vmul.f32 %v2910_v13, %v2566_v14  ;;  %v2567_v0 = vmul.f32 %v3509_v15, %v2539_v48 }
0x134f   : > { %v2577_v18 = vmul.f32 %v2910_v13, %v2567_v0  ;;  %v2586_v19 = vadd.f32 %v2911_v17, %v2576_v16 }
0x1351   : > { %v2587_v20 = vadd.f32 %v2911_v17, %v2577_v18 }
0x1352   : > { %v3511_v21 = vpop.eup %3510 }
0x1353   : > { %v2568_v22 = vmul.f32 %v3511_v21, %v2540_v12  ;;  %v2933_v23 = vpack.c.bf16 %v2587_v20, %v2586_v19 }
0x1354   : > { %v3513_v26 = vpop.eup %3512 }
0x1355   : > { %v2578_v25 = vmul.f32 %v2910_v13, %v2568_v22  ;;  %v2569_v28 = vmul.f32 %v3513_v26, %v2541_v54  ;;  %2934 = vst [vmem:[%s4261_s0] sm:$0xff] %v2933_v23  }
0x1357   : > { %v2579_v29 = vmul.f32 %v2910_v13, %v2569_v28  ;;  %v2588_v32 = vadd.f32 %v2911_v17, %v2578_v25 }
0x1359   : > { %v2589_v33 = vadd.f32 %v2911_v17, %v2579_v29 }
0x135b   : > { %v2938_v34 = vpack.c.bf16 %v2589_v33, %v2588_v32 }
0x135d   : > { %2940 = vst [vmem:[%s4261_s0 + $0x8] sm:$0xff] %v2938_v34  }
0x135e   : > { %3750 = shalt.err (!%p3747_p2)
}
0x135f   : > { %s3751_s0 = scalar_lea.hbm %s4604_s25, 256  ;;  %s3755_s4 = scalar_lea.hbm %s4742_s5, 1024 }
0x1360   : > { %p3752_p9 = scmp.ne.s32.totalorder %s4604_s25, %s3751_s0  ;;  %p3756_p11 = scmp.lt.u32.totalorder %s4604_s25, %s4742_s5 }
0x1361   : > { %p3757_p12 = scmp.lt.u32.totalorder %s3755_s4, %s3751_s0  ;;  %p3759_p0 = scmp.lt.u32.totalorder %s3751_s0, %s4604_s25 }
0x1362   : > { %p3753_p10 = pnand %p3752_p9, %p4743_p3 }
0x1363   : > { %p3758_p13 = por %p3757_p12, %p3756_p11 }
0x1364   : > { %p3754_p1 = pneg %p3753_p10 }
0x1365   : > { %p3760_p6 = por %p3759_p0, %p3758_p13 }
0x1367   : > { %p3761_p4 = pnand %p3760_p6, %p3754_p1 }
0x1369   : > { %3764 = shalt.err (!%p3761_p4)
}
0x136a   : > { %s3871_s17 = smov 4  }
0x136b   : > { %3211 = dma.vmem_to_hbm [thread:$0]  (%p4743_p3), %s4606_s14, 256, %s4604_s25, %s2611_s11, %s3867_s3, %s3867_s3, %s3871_s17  }
0x136c PF: > { %p3248_p8 = scmp.ge.s32.totalorder %s3851_s28, 2  ;;  %s2641_s30 = sand.u32 1, %s3823_s21  }
0x136d   : > { %p4744_p7 = scmp.ne.s32.totalorder %s4724_s16, 0  ;;  %s2642_s20 = scalar_lea.sflag [#allocation9], %s2641_s30 }
0x136f   : > { %p3234_p5 = pnand %p3248_p8, %p4744_p7 }
0x1371   : > { %3818 = dma.done.wait (!%p3234_p5), %s2642_s20, 256  }
0x1372   : > { %3820 = vsyncadd (!%p3234_p5), %s2642_s20, 4294967040  ;;  %s35_s28 = sadd.s32 1, %s3851_s28   ;;  %s4745_s21 = smov %s3827_s22 }
0x1373   : > { %p32_p2 = scmp.ge.s32.totalorder %s35_s28, 6   ;;  %s4746_s22 = smov %s3831_s23 }
0x1374   : > { %s4747_s23 = smov %s4187_s15  ;;  %s4748_s24 = smov %s3843_s26 }
0x1375   : > { %s4749_s25 = smov %s3847_s27  ;;  %s4750_s26 = smov %s4753_s19 }
0x1376   : > { %s4751_s27 = smov %s4757_s6  ;;  %34 = sbr.rel (!%p32_p2) target bundleno = 27 (0x1b), region = 162 }
0x137d   :  { %2647 = vsyncpa [#allocation8], 1 }
0x137e   :  { %2649 = vsyncpa [#allocation8 + $0x1], 1 }
0x137f   :  { %2650 = vsyncpa [#allocation11], 1 }
0x1380   :  { %2651 = vsyncpa [#allocation14], 1 }
0x1381   :  { %2652 = vsyncpa [#allocation17], 1 }
0x1382   :  { %2653 = vsyncpa [#allocation9], 1 }
0x1383   :  { %2655 = vsyncpa [#allocation9 + $0x1], 1 }
0x1384   :  { %2656 = vsyncmov [#allocation6] }
0x1387   :  { %s2657_s7 = vpop.sfrf %2656 }
0x1388   :  { %p2922_p3 = scmp.ne.s32.totalorder %s2657_s7, 0 }
0x138a   :  { %2661 = shalt.err (%p2922_p3)  }
0x138b   :  { %2663 = vsyncmov [#allocation6 + $0x1] }
0x138e   :  { %s2664_s16 = vpop.sfrf %2663 }
0x138f   :  { %p2923_p9 = scmp.ne.s32.totalorder %s2664_s16, 0 }
0x1391   :  { %2668 = shalt.err (%p2923_p9)  }

// kernel: tpu_custom_call.1
= control target key start
LH: loop header
LB: loop body
LE: loop exit
PB: predicated region body
PF: predicated region fallthrough
CT: control target
= control target key end

     0   :  { %s4663_s0 = inlined_call_operand.hbm [shape: f32[2,64,128], index: 0, kind: input, shape index: {}]   ;;  %s4664_s1 = inlined_call_operand.hbm [shape: f32[2,64,128], index: 1, kind: input, shape index: {}]   ;;  %s4665_s2 = inlined_call_operand.hbm [shape: bf16[128,128], index: 2, kind: input, shape index: {}]   ;;  %s4666_s3 = inlined_call_operand.vmem [shape: f32[1,128], index: 3, kind: input, shape index: {}]   ;;  %s4667_s4 = inlined_call_operand.hbm [shape: bf16[128,256], index: 4, kind: input, shape index: {}]   ;;  %s4668_s5 = inlined_call_operand.vmem [shape: f32[1,256], index: 5, kind: input, shape index: {}]   ;;  %s4669_s6 = inlined_call_operand.hbm [shape: bf16[128,128], index: 6, kind: input, shape index: {}]   ;;  %s4670_s7 = inlined_call_operand.vmem [shape: f32[1,128], index: 7, kind: input, shape index: {}]   ;;  %s4671_s8 = inlined_call_operand.vmem [shape: f32[1,128], index: 8, kind: input, shape index: {}]   ;;  %s4672_s9 = inlined_call_operand.vmem [shape: f32[1,128], index: 9, kind: input, shape index: {}]   ;;  %s4673_s10 = inlined_call_operand.hbm [shape: bf16[128,256], index: 10, kind: input, shape index: {}]   ;;  %s4674_s11 = inlined_call_operand.vmem [shape: f32[1,256], index: 11, kind: input, shape index: {}]   ;;  %s4675_s12 = inlined_call_operand.hbm [shape: bf16[256,128], index: 12, kind: input, shape index: {}]   ;;  %s4676_s13 = inlined_call_operand.vmem [shape: f32[1,128], index: 13, kind: input, shape index: {}]   ;;  %s4677_s14 = inlined_call_operand.vmem [shape: f32[1,128], index: 14, kind: input, shape index: {}]   ;;  %s4678_s15 = inlined_call_operand.vmem [shape: f32[1,128], index: 15, kind: input, shape index: {}]   ;;  %s4679_s16 = inlined_call_operand.hbm [shape: bf16[2,64,128], index: 16, kind: output, shape index: {}]  }
   0x1   :  { %4693 = sst [smem:[#allocation32_spill]] %s4663_s0 }
   0x2   :  { %4694 = sst [smem:[#allocation33_spill]] %s4664_s1 }
   0x3   :  { %4695 = sst [smem:[#allocation34_spill]] %s4665_s2 }
   0x4   :  { %4696 = sst [smem:[#allocation35_spill]] %s4666_s3 }
   0x5   :  { %4697 = sst [smem:[#allocation36_spill]] %s4667_s4 }
   0x6   :  { %4698 = sst [smem:[#allocation37_spill]] %s4668_s5 }
   0x7   :  { %4699 = sst [smem:[#allocation38_spill]] %s4669_s6 }
   0x8   :  { %4700 = sst [smem:[#allocation39_spill]] %s4670_s7 }
   0x9   :  { %4701 = sst [smem:[#allocation40_spill]] %s4671_s8 }
   0xa   :  { %4702 = sst [smem:[#allocation41_spill]] %s4672_s9 }
   0xb   :  { %4703 = sst [smem:[#allocation42_spill]] %s4673_s10 }
   0xc   :  { %4704 = sst [smem:[#allocation43_spill]] %s4674_s11 }
   0xd   :  { %4705 = sst [smem:[#allocation44_spill]] %s4676_s13 }
   0xe   :  { %4706 = sst [smem:[#allocation45_spill]] %s4677_s14 }
   0xf   :  { %4707 = sst [smem:[#allocation46_spill]] %s4678_s15 }
  0x10   :  { %4708 = sst [smem:[#allocation47_spill]] %s4679_s16 }
  0x11   :  { %21 = vsyncpa [#allocation8], 0 }
  0x12   :  { %23 = vsyncpa [#allocation8 + $0x1], 0 }
  0x13   :  { %24 = vsyncpa [#allocation11], 0 }
  0x14   :  { %25 = vsyncpa [#allocation14], 0 }
  0x15   :  { %26 = vsyncpa [#allocation17], 0 }
  0x16   :  { %27 = vsyncpa [#allocation9], 0 }
  0x17   :  { %29 = vsyncpa [#allocation9 + $0x1], 0  ;;  %s3957_s21 = smov 0   ;;  %s3959_s22 = smov 0  }
  0x18   :  { %s3961_s23 = smov 0   ;;  %s3963_s24 = smov 0  }
  0x19   :  { %s3965_s25 = smov 0   ;;  %s3967_s26 = smov 0  }
  0x1a   :  { %s3969_s27 = smov 0   ;;  %s3971_s28 = smov 0  }
  0x1b LB: > { %s4681_s29 = sadd.s32 4294967295, %s3851_s28   ;;  %p2785_p0 = scmp.ge.s32.totalorder %s3851_s28, 1  ;;  %s3851_s28 = sphi %s3971_s28, %s35_s28   ;;  %s3847_s27 = sphi %s3969_s27, %s4751_s27   ;;  %s3843_s26 = sphi %s3967_s26, %s4750_s26   ;;  %s3839_s25 = sphi %s3965_s25, %s4749_s25   ;;  %s3835_s24 = sphi %s3963_s24, %s4748_s24   ;;  %s3831_s23 = sphi %s3961_s23, %s4747_s23   ;;  %s3827_s22 = sphi %s3959_s22, %s4746_s22   ;;  %s3823_s21 = sphi %s3957_s21, %s4745_s21  }
  0x1c   : > { %p4001_p1 = scmp.eq.s32.totalorder %s4681_s29, 0  ;;  %p402_p2 = scmp.lt.s32.totalorder %s3851_s28, 5 }
  0x1d   : > { %s3853_s17 = smov [#allocation10]   ;;  %s3854_s20 = smov [#allocation13]  }
  0x1e   : > { %s4709_s30 = scalar_select %p4001_p1, 1, 0 }
  0x1f   : > { %p4006_p3 = pnand %p2785_p0, %p402_p2  ;;  %s414_s18 = sshll.u32 %s3853_s17, 4  ;;  %s4010_s18 = int_to_ptr.vmem [resolvable:$true] %s414_s18 }
  0x20   : > { %s446_s29 = sshll.u32 %s3854_s20, 4  ;;  %s3855_s16 = smov [#allocation12]   ;;  %s4020_s29 = int_to_ptr.vmem [resolvable:$true] %s446_s29 }
  0x21   : > { %s4710_s0 = scalar_select %p4006_p3, 1, 0 }
  0x22   : > { %p3213_p4 = pneg %p4006_p3  ;;  %s4022_s15 = sshll.u32 %s3855_s16, 4  ;;  %s431_s15 = int_to_ptr.vmem [resolvable:$true] %s4022_s15 }
  0x23   : > { %s4712_s2 = sld [smem:[#allocation34_spill]] }
  0x24   : > { %p4016_p5 = pnand %p3213_p4, %p4001_p1 }
  0x26   : > { %p4032_p7 = pneg %p4016_p5 }
  0x29   : > { %s3518_s17 = scalar_lea.hbm %s4712_s2, 1024 }
  0x2a   : > { %p3519_p6 = scmp.ne.s32.totalorder %s4712_s2, %s3518_s17  ;;  %p3525_p10 = scmp.lt.u32.totalorder %s3518_s17, %s4712_s2 }
  0x2c   : > { %p3521_p8 = pnand %p4032_p7, %p3519_p6 }
  0x2e   : > { %p3522_p9 = pneg %p3521_p8 }
  0x30   : > { %p3527_p11 = pnand %p3525_p10, %p3522_p9 }
  0x32   : > { %3530 = shalt.err (!%p3527_p11)
}
  0x33   : > { %s3531_s9 = scalar_lea.vmem %s4010_s18, 1024  ;;  %p3539_p2 = scmp.lt.s32.totalorder %s4010_s18, %s4010_s18 }
  0x34   : > { %p3532_p12 = scmp.ne.s32.totalorder %s4010_s18, %s3531_s9  ;;  %p3540_p4 = scmp.lt.s32.totalorder %s3531_s9, %s3531_s9 }
  0x36   : > { %p3534_p13 = pnand %p3532_p12, %p4032_p7  ;;  %p3541_p6 = por %p3540_p4, %p3539_p2 }
  0x38   : > { %p3535_p0 = pneg %p3534_p13 }
  0x3a   : > { %p3542_p8 = pnand %p3541_p6, %p3535_p0 }
  0x3c   : > { %3545 = shalt.err (!%p3542_p8)
}
  0x3d   : > { %s4688_s11 = smov 64   ;;  %s4689_s13 = smov 4  }
  0x3e   : > { %3216 = dma.hbm_to_vmem [thread:$0]  (!%p4016_p5), %s4712_s2, 1024, %s4010_s18, [#allocation11], %s4688_s11, %s4688_s11, %s4689_s13  }
  0x3f   : > { %s4714_s6 = sld [smem:[#allocation38_spill]] }
  0x45   : > { %s3546_s9 = scalar_lea.hbm %s4714_s6, 1024 }
  0x46   : > { %p3547_p9 = scmp.ne.s32.totalorder %s4714_s6, %s3546_s9  ;;  %p3553_p12 = scmp.lt.u32.totalorder %s3546_s9, %s4714_s6 }
  0x48   : > { %p3549_p10 = pnand %p3547_p9, %p4032_p7 }
  0x4a   : > { %p3550_p11 = pneg %p3549_p10 }
  0x4c   : > { %p3555_p13 = pnand %p3553_p12, %p3550_p11 }
  0x4e   : > { %3558 = shalt.err (!%p3555_p13)
}
  0x4f   : > { %s3559_s18 = scalar_lea.vmem %s4020_s29, 1024  ;;  %p3567_p6 = scmp.lt.s32.totalorder %s4020_s29, %s4020_s29 }
  0x50   : > { %p3560_p0 = scmp.ne.s32.totalorder %s4020_s29, %s3559_s18  ;;  %p3568_p8 = scmp.lt.s32.totalorder %s3559_s18, %s3559_s18 }
  0x52   : > { %p3562_p2 = pnand %p3560_p0, %p4032_p7  ;;  %p3569_p9 = por %p3568_p8, %p3567_p6 }
  0x54   : > { %p3563_p4 = pneg %p3562_p2 }
  0x56   : > { %p3570_p10 = pnand %p3569_p9, %p3563_p4 }
  0x58   : > { %3573 = shalt.err (!%p3570_p10)
}
  0x59   : > { %3222 = dma.hbm_to_vmem [thread:$0]  (!%p4016_p5), %s4714_s6, 1024, %s4020_s29, [#allocation14], %s4688_s11, %s4688_s11, %s4689_s13  }
  0x5a   : > { %s4715_s4 = sld [smem:[#allocation36_spill]] }
  0x60   : > { %s3574_s14 = scalar_lea.hbm %s4715_s4, 2048 }
  0x61   : > { %p3575_p11 = scmp.ne.s32.totalorder %s4715_s4, %s3574_s14  ;;  %p3581_p0 = scmp.lt.u32.totalorder %s3574_s14, %s4715_s4 }
  0x63   : > { %p3577_p12 = pnand %p3575_p11, %p4032_p7 }
  0x65   : > { %p3578_p13 = pneg %p3577_p12 }
  0x67   : > { %p3583_p2 = pnand %p3581_p0, %p3578_p13 }
  0x69   : > { %3586 = shalt.err (!%p3583_p2)
}
  0x6a   : > { %s3587_s18 = scalar_lea.vmem %s431_s15, 2048  ;;  %p3595_p9 = scmp.lt.s32.totalorder %s431_s15, %s431_s15 }
  0x6b   : > { %p3588_p4 = scmp.ne.s32.totalorder %s431_s15, %s3587_s18  ;;  %p3596_p10 = scmp.lt.s32.totalorder %s3587_s18, %s3587_s18 }
  0x6d   : > { %p3590_p6 = pnand %p3588_p4, %p4032_p7  ;;  %p3597_p3 = por %p3596_p10, %p3595_p9 }
  0x6f   : > { %p3591_p8 = pneg %p3590_p6 }
  0x71   : > { %p3598_p1 = pnand %p3597_p3, %p3591_p8 }
  0x73   : > { %3601 = shalt.err (!%p3598_p1)
}
  0x74   : > { %s4690_s29 = smov 128   ;;  %s4691_s1 = smov 8  }
  0x75   : > { %3219 = dma.hbm_to_vmem [thread:$0]  (!%p4016_p5), %s4715_s4, 2048, %s431_s15, [#allocation11], %s4690_s29, %s4690_s29, %s4691_s1  }
  0x76   : > { %s3860_s7 = smov [#allocation15]   ;;  %s3861_s17 = smov [#allocation16]  }
  0x77   : > { %s468_s14 = sshll.u32 %s3860_s7, 4  ;;  %s484_s20 = sshll.u32 %s3861_s17, 4  ;;  %s469_s14 = int_to_ptr.vmem [resolvable:$true] %s468_s14  ;;  %s485_s20 = int_to_ptr.vmem [resolvable:$true] %s484_s20 }
  0x78   : > { %s4716_s10 = sld [smem:[#allocation42_spill]] }
  0x7e   : > { %s3602_s18 = scalar_lea.hbm %s4716_s10, 2048 }
  0x7f   : > { %p3603_p1 = scmp.ne.s32.totalorder %s4716_s10, %s3602_s18  ;;  %p3609_p12 = scmp.lt.u32.totalorder %s3602_s18, %s4716_s10 }
  0x81   : > { %p3605_p3 = pnand %p3603_p1, %p4032_p7 }
  0x83   : > { %p3606_p11 = pneg %p3605_p3 }
  0x85   : > { %p3611_p13 = pnand %p3609_p12, %p3606_p11 }
  0x87   : > { %3614 = shalt.err (!%p3611_p13)
}
  0x88   : > { %s3615_s15 = scalar_lea.vmem %s469_s14, 2048  ;;  %p3623_p6 = scmp.lt.s32.totalorder %s469_s14, %s469_s14 }
  0x89   : > { %p3616_p0 = scmp.ne.s32.totalorder %s469_s14, %s3615_s15  ;;  %p3624_p8 = scmp.lt.s32.totalorder %s3615_s15, %s3615_s15 }
  0x8b   : > { %p3618_p2 = pnand %p3616_p0, %p4032_p7  ;;  %p3625_p9 = por %p3624_p8, %p3623_p6 }
  0x8d   : > { %p3619_p4 = pneg %p3618_p2 }
  0x8f   : > { %p3626_p10 = pnand %p3625_p9, %p3619_p4 }
  0x91   : > { %3629 = shalt.err (!%p3626_p10)
}
  0x92   : > { %3225 = dma.hbm_to_vmem [thread:$0]  (!%p4016_p5), %s4716_s10, 2048, %s469_s14, [#allocation14], %s4690_s29, %s4690_s29, %s4691_s1  }
  0x93   : > { %s3630_s3 = scalar_lea.hbm %s4675_s12, 2048 }
  0x94   : > { %p3631_p1 = scmp.ne.s32.totalorder %s4675_s12, %s3630_s3  ;;  %p3637_p12 = scmp.lt.u32.totalorder %s3630_s3, %s4675_s12 }
  0x96   : > { %p3633_p3 = pnand %p3631_p1, %p4032_p7 }
  0x98   : > { %p3634_p11 = pneg %p3633_p3 }
  0x9a   : > { %p3639_p13 = pnand %p3637_p12, %p3634_p11 }
  0x9c   : > { %3642 = shalt.err (!%p3639_p13)
}
  0x9d   : > { %s3643_s9 = scalar_lea.vmem %s485_s20, 2048  ;;  %p3651_p6 = scmp.lt.s32.totalorder %s485_s20, %s485_s20 }
  0x9e   : > { %p3644_p0 = scmp.ne.s32.totalorder %s485_s20, %s3643_s9  ;;  %p3652_p8 = scmp.lt.s32.totalorder %s3643_s9, %s3643_s9 }
  0xa0   : > { %p3646_p2 = pnand %p3644_p0, %p4032_p7  ;;  %p3653_p9 = por %p3652_p8, %p3651_p6 }
  0xa2   : > { %p3647_p4 = pneg %p3646_p2 }
  0xa4   : > { %p3654_p10 = pnand %p3653_p9, %p3647_p4 }
  0xa6   : > { %3657 = shalt.err (!%p3654_p10)
}
  0xa7   : > { %s4717_s14 = smov 4   ;;  %s4718_s18 = smov 64  }
  0xa8   : > { %3228 = dma.hbm_to_vmem [thread:$0]  (!%p4016_p5), %s4675_s12, 2048, %s485_s20, [#allocation17], %s4718_s18, %s4718_s18, %s4717_s14  }
  0xa9   : > { %s2784_s8 = sadd.s32 4294967294, %s3851_s28   ;;  %s44_s19 = sadd.s32 1, %s3843_s26 }
  0xaa   : > { %s47_s6 = sadd.s32 1, %s3847_s27  ;;  %p45_p7 = scmp.ge.s32.totalorder %s44_s19, 2 }
  0xab   : > { %s56_s11 = sadd.s32 1, %s3831_s23  ;;  %p63_p1 = scmp.ne.s32.totalorder %s3831_s23, %s3827_s22 }
  0xac   : > { %p64_p3 = scmp.eq.s32.totalorder %s3851_s28, 0  ;;  %s4753_s19 = smov (%p45_p7, %s44_s19), 0 }
  0xad   : > { %s4755_s6 = smov (!%p45_p7, %s47_s6), %s3847_s27  ;;  %s52_s13 = ssub.s32 %s3843_s26, %s4753_s19 }
  0xae   : > { %p4158_p11 = por %p64_p3, %p63_p1  ;;  %p49_p5 = scmp.ge.s32.totalorder %s4755_s6, 2 }
  0xaf   : > { %p69_p12 = scmp.ne.s32.totalorder %s3827_s22, %s3823_s21  ;;  %s4720_s20 = sadd.s32 4294967295, %s3851_s28  }
  0xb0   : > { %p389_p13 = scmp.eq.s32.totalorder %s4720_s20, 3  ;;  %p395_p0 = scmp.eq.s32.totalorder %s2784_s8, 3 }
  0xb1   : > { %s4757_s6 = smov (%p49_p5, %s4755_s6), 0  ;;  %p4721_p2 = scmp.ne.s32.totalorder %s4709_s30, 0 }
  0xb2   : > { %p4174_p6 = por %p389_p13, %p63_p1  ;;  %s51_s17 = ssub.s32 %s3847_s27, %s4757_s6 }
  0xb3   : > { %p4170_p4 = por %p4721_p2, %p69_p12  ;;  %p4180_p8 = por %p395_p0, %p69_p12 }
  0xb4   : > { %s4723_s7 = scalar_select %p4174_p6, 1, 0 }
  0xb5   : > { %s4724_s16 = scalar_select %p4180_p8, 1, 0 }
  0xb6   : > { %s53_s9 = sor.u32 %s52_s13, %s51_s17  ;;  %p3242_p9 = scmp.lt.s32.totalorder %s3851_s28, 4 }
  0xb7   : > { %p54_p10 = scmp.eq.s32.totalorder %s53_s9, 0  ;;  %s507_s14 = sand.u32 1, %s3831_s23  }
  0xb8   : > { %s2792_s18 = sshll.u32 %s507_s14, 5  ;;  %s2793_s2 = sshll.u32 %s3843_s26, 2 }
  0xb9   : > { %s4187_s15 = scalar_select %p54_p10, %s3831_s23, %s56_s11  }
  0xba   : > { %s2794_s8 = sshll.u32 %s3847_s27, 3  ;;  %s511_s20 = scalar_lea.vmem [#allocation7], %s2792_s18 }
  0xbb   : > { %s520_s29 = sshll.u32 %s511_s20, 4  ;;  %s517_s1 = sadd.s32 %s2794_s8, %s2793_s2  ;;  %s4191_s29 = int_to_ptr.vmem [resolvable:$true] %s520_s29 }
  0xbc   : > { %s2795_s4 = sshll.u32 %s517_s1, 7  ;;  %p4195_p7 = pnand %p3242_p9, %p4158_p11 }
  0xbd   : > { %s4726_s9 = sld [smem:[#allocation32_spill]]  ;;  %s4204_s18 = scalar_lea.sflag [#allocation8], %s507_s14 }
  0xbe   : > { %p3660_p3 = pneg %p4195_p7 }
  0xc3   : > { %s4202_s11 = scalar_lea.hbm %s4726_s9, %s2795_s4  ;;  %s3663_s8 = scalar_lea.hbm %s4726_s9, 2048 }
  0xc4   : > { %s3658_s2 = scalar_lea.hbm %s4202_s11, 512  ;;  %p3664_p12 = scmp.lt.u32.totalorder %s4202_s11, %s4726_s9 }
  0xc5   : > { %p3659_p1 = scmp.ne.s32.totalorder %s4202_s11, %s3658_s2  ;;  %p3665_p13 = scmp.lt.u32.totalorder %s3663_s8, %s3658_s2 }
  0xc6   : > { %p3667_p2 = scmp.lt.u32.totalorder %s3658_s2, %s4202_s11 }
  0xc7   : > { %p3661_p11 = pnand %p3660_p3, %p3659_p1  ;;  %p3666_p0 = por %p3665_p13, %p3664_p12 }
  0xc9   : > { %p3662_p5 = pneg %p3661_p11  ;;  %p3668_p9 = por %p3667_p2, %p3666_p0 }
  0xcb   : > { %p3669_p10 = pnand %p3668_p9, %p3662_p5 }
  0xcd   : > { %3672 = shalt.err (!%p3669_p10)
}
  0xce   : > { %s3673_s14 = scalar_lea.vmem %s4191_s29, 512  ;;  %s3862_s13 = smov [#allocation7]  }
  0xcf   : > { %p3674_p1 = scmp.ne.s32.totalorder %s4191_s29, %s3673_s14  ;;  %s3678_s17 = sshll.u32 %s3862_s13, 4  ;;  %s3679_s17 = int_to_ptr.vmem [resolvable:$false] %s3678_s17 }
  0xd0   : > { %s3680_s1 = scalar_lea.vmem %s3679_s17, 1024  ;;  %p3681_p6 = scmp.lt.s32.totalorder %s4191_s29, %s3679_s17 }
  0xd1   : > { %p3676_p11 = pnand %p3674_p1, %p3660_p3  ;;  %p3682_p12 = scmp.lt.s32.totalorder %s3680_s1, %s3673_s14 }
  0xd3   : > { %p3677_p8 = pneg %p3676_p11  ;;  %p3683_p13 = por %p3682_p12, %p3681_p6 }
  0xd5   : > { %p3684_p0 = pnand %p3683_p13, %p3677_p8 }
  0xd7   : > { %3687 = shalt.err (!%p3684_p0)
}
  0xd8   : > { %s4727_s2 = smov 8   ;;  %s4728_s3 = smov 128  }
  0xd9   : > { %3232 = dma.hbm_to_vmem [thread:$0]  (!%p4195_p7), %s4202_s11, 512, %s4191_s29, %s4204_s18, %s4728_s3, %s4728_s3, %s4727_s2  }
  0xda   : > { %p4729_p3 = scmp.ne.s32.totalorder %s4710_s0, 0 }
  0xdb   : > { %s4238_s8 = sand.u32 (!%p4729_p3), 1, %s3827_s22  }
  0xdc   : > { %532 = sbr.rel (%p4729_p3) target bundleno = 4972 (0x136c), region = 80  ;;  %s2797_s4 = sshll.u32 (!%p4729_p3), %s4238_s8, 5 }
  0xdd   : > { %s535_s20 = scalar_lea.sflag (!%p4729_p3), [#allocation8], %s4238_s8  ;;  %s4242_s14 = scalar_lea.vmem (!%p4729_p3), [#allocation7], %s2797_s4 }
  0xe3   : > { %3798 = dma.done.wait (%p4170_p4), %s535_s20, 512  }
  0xe4   : > { %3800 = vsyncadd (%p4170_p4), %s535_s20, 4294966784  ;;  %p4730_p6 = scmp.ne.s32.totalorder %s4709_s30, 0 }
  0xe6   : > { %3802 = dma.done.wait (%p4730_p6), [#allocation11], 3072  }
  0xe7   : > { %3804 = vsyncadd (%p4730_p6), [#allocation11], 4294964224 }
  0xe8   : > { %3806 = dma.done.wait (%p4730_p6), [#allocation14], 3072  }
  0xe9   : > { %3808 = vsyncadd (%p4730_p6), [#allocation14], 4294964224 }
  0xea   : > { %3810 = dma.done.wait (%p4730_p6), [#allocation17], 2048  }
  0xeb   : > { %3812 = vsyncadd (%p4730_p6), [#allocation17], 4294965248  ;;  %s2803_s10 = sshll.u32 %s4238_s8, 4  ;;  %p2804_p4 = scmp.ne.s32.totalorder %s3835_s24, 0 }
  0xec   : > { %s4261_s0 = scalar_lea.vmem [#allocation18], %s2803_s10  ;;  %s2924_s29 = sshll.u32 (!%p2804_p4), %s3839_s25, 10 }
  0xed   : > { %611 = sbr.rel (%p2804_p4) target bundleno = 808 (0x328), region = 108  ;;  %s4731_s18 = sld [smem:[#allocation33_spill]] (!%p2804_p4) }
  0xee   : > { %s3863_s17 = smov (!%p2804_p4), [#allocation5]  }
  0xef   : > { %s622_s1 = sshll.u32 (!%p2804_p4), %s3863_s17, 4  ;;  %s4268_s1 = int_to_ptr.vmem [resolvable:$true] %s622_s1 }
  0xf3   : > { %s614_s13 = scalar_lea.hbm (!%p2804_p4), %s4731_s18, %s2924_s29  ;;  %s3690_s4 = scalar_lea.hbm (!%p2804_p4), %s4731_s18, 2048 }
  0xf4   : > { %s4270_s2 = scalar_lea.hbm %s614_s13, 512  ;;  %p3691_p7 = scmp.lt.u32.totalorder %s614_s13, %s4731_s18 }
  0xf5   : > { %p3689_p8 = scmp.ne.s32.totalorder %s614_s13, %s4270_s2  ;;  %p3692_p5 = scmp.lt.u32.totalorder %s3690_s4, %s4270_s2 }
  0xf6   : > { %p3694_p9 = scmp.lt.u32.totalorder %s4270_s2, %s614_s13 }
  0xf7   : > { %p3693_p2 = por %p3692_p5, %p3691_p7 }
  0xf9   : > { %p3695_p10 = por %p3694_p9, %p3693_p2 }
  0xfb   : > { %p3696_p1 = pnand %p3695_p10, %p3689_p8 }
  0xfd   : > { %3699 = shalt.err (!%p3696_p1)  }
  0xfe   : > { %s3700_s29 = scalar_lea.vmem %s4268_s1, 512  ;;  %s3704_s5 = scalar_lea.vmem %s4268_s1, 1024 }
  0xff   : > { %p3701_p11 = scmp.ne.s32.totalorder %s4268_s1, %s3700_s29  ;;  %p3705_p12 = scmp.lt.s32.totalorder %s4268_s1, %s4268_s1 }
 0x100   : > { %p3706_p13 = scmp.lt.s32.totalorder %s3704_s5, %s3700_s29 }
 0x102   : > { %p3707_p0 = por %p3706_p13, %p3705_p12 }
 0x104   : > { %p3708_p3 = pnand %p3707_p0, %p3701_p11 }
 0x106   : > { %3711 = shalt.err (!%p3708_p3)  }
 0x107   : > { %625 = dma.hbm_to_vmem [thread:$0]  %s614_s13, 512, %s4268_s1, [#allocation6] }
 0x108   : > { %s3864_s11 = smov [#allocation5 + $0x20]   ;;  %s3736_s30 = scalar_lea.hbm %s614_s13, 1024 }
 0x109   : > { %s638_s17 = sshll.u32 %s3864_s11, 4  ;;  %p3713_p6 = scmp.ne.s32.totalorder %s4270_s2, %s3736_s30  ;;  %s639_s17 = int_to_ptr.vmem [resolvable:$true] %s638_s17 }
 0x10a   : > { %p3715_p4 = scmp.lt.u32.totalorder %s4270_s2, %s4731_s18  ;;  %p3716_p8 = scmp.lt.u32.totalorder %s3690_s4, %s3736_s30 }
 0x10b   : > { %p3718_p5 = scmp.lt.u32.totalorder %s3736_s30, %s4270_s2 }
 0x10c   : > { %p3717_p7 = por %p3716_p8, %p3715_p4 }
 0x10e   : > { %p3719_p2 = por %p3718_p5, %p3717_p7 }
 0x110   : > { %p3720_p9 = pnand %p3719_p2, %p3713_p6 }
 0x112   : > { %3723 = shalt.err (!%p3720_p9)  }
 0x113   : > { %s3724_s10 = scalar_lea.vmem %s639_s17, 512  ;;  %p3729_p1 = scmp.lt.s32.totalorder %s639_s17, %s4268_s1 }
 0x114   : > { %p3725_p10 = scmp.ne.s32.totalorder %s639_s17, %s3724_s10  ;;  %p3730_p11 = scmp.lt.s32.totalorder %s3704_s5, %s3724_s10 }
 0x116   : > { %p3731_p12 = por %p3730_p11, %p3729_p1 }
 0x118   : > { %p3732_p13 = pnand %p3731_p12, %p3725_p10 }
 0x11a   : > { %3735 = shalt.err (!%p3732_p13)  }
 0x11b   : > { %641 = dma.hbm_to_vmem [thread:$0]  %s4270_s2, 512, %s639_s17, [#allocation6 + $0x1] }
 0x11c   : > { %3813 = dma.done.wait [#allocation6], 512 }
 0x11d   : > { %3814 = vsyncadd [#allocation6], 4294966784  ;;  %v3865_v0 = vmov 0   ;;  %v3330_v1 = vld [vmem:[#allocation12 + $0x4] ss:$8 sps:$4 sm:$0xff]   ;;  %v647_v20 = vld [vmem:[#allocation5 + $0x10] sm:$0xff]  ;;  %v669_v23 = vlaneseq }
 0x11e   : > { %791 = vmatprep.mubr.bf16.mxu0 %v3865_v0  ;;  %v3332_v2 = vld [vmem:[#allocation12] ss:$8 sps:$4 sm:$0xff]   ;;  %759 = vmatprep.subr.bf16.mxu0 %v3330_v1  ;;  %v3333_v3 = vld [vmem:[#allocation12 + $0x14] ss:$8 sps:$4 sm:$0xff]   ;;  %v3335_v4 = vld [vmem:[#allocation12 + $0x10] ss:$8 sps:$4 sm:$0xff]  }
 0x11f   : > { %760 = vmatpush1.bf16.msra.mxu0 %v3332_v2  ;;  %v3336_v5 = vld [vmem:[#allocation12 + $0x24] ss:$8 sps:$4 sm:$0xff]   ;;  %v3338_v6 = vld [vmem:[#allocation12 + $0x20] ss:$8 sps:$4 sm:$0xff]   ;;  %v3339_v7 = vld [vmem:[#allocation12 + $0x34] ss:$8 sps:$4 sm:$0xff]  }
 0x120   : > { %761 = vmatprep.subr.bf16.mxu0 %v3333_v3  ;;  %v3341_v8 = vld [vmem:[#allocation12 + $0x30] ss:$8 sps:$4 sm:$0xff]   ;;  %v3342_v9 = vld [vmem:[#allocation12 + $0x44] ss:$8 sps:$4 sm:$0xff]   ;;  %v3344_v10 = vld [vmem:[#allocation12 + $0x40] ss:$8 sps:$4 sm:$0xff]  }
 0x121   : > { %v3345_v11 = vld [vmem:[#allocation12 + $0x54] ss:$8 sps:$4 sm:$0xff]   ;;  %v3347_v12 = vld [vmem:[#allocation12 + $0x50] ss:$8 sps:$4 sm:$0xff]   ;;  %v3348_v13 = vld [vmem:[#allocation12 + $0x64] ss:$8 sps:$4 sm:$0xff]  }
 0x122   : > { %v3350_v14 = vld [vmem:[#allocation12 + $0x60] ss:$8 sps:$4 sm:$0xff]   ;;  %v3351_v15 = vld [vmem:[#allocation12 + $0x74] ss:$8 sps:$4 sm:$0xff]   ;;  %v3353_v16 = vld [vmem:[#allocation12 + $0x70] ss:$8 sps:$4 sm:$0xff]  }
 0x123   : > { %762 = vmatpush1.bf16.msra.mxu0 %v3335_v4  ;;  %v645_v17 = vld [vmem:[#allocation5] sm:$0xff]  ;;  %v646_v18 = vld [vmem:[#allocation5 + $0x8] sm:$0xff]  ;;  %v648_v21 = vld [vmem:[#allocation5 + $0x18] sm:$0xff]  ;;  %v4297_v24 = vshrl.u32 %v669_v23, 7  ;;  %s4732_s2 = sld [smem:[#allocation37_spill]] }
 0x124   : > { %763 = vmatprep.subr.bf16.mxu0 %v3336_v5  ;;  %v649_v19 = vpack.c.bf16 %v646_v18, %v645_v17  ;;  %v650_v22 = vpack.c.bf16 %v648_v21, %v647_v20 }
 0x125   : > { %v671_v25 = vsub.s32 0, %v4297_v24  ;;  %v675_v27 = vsub.s32 1, %v4297_v24 }
 0x127   : > { %764 = vmatpush1.bf16.msra.mxu0 %v3338_v6 }
 0x128   : > { %765 = vmatprep.subr.bf16.mxu0 %v3339_v7 }
 0x129   : > { %v667_v26 = vld [vmem:[%s4732_s2] sm:$0x3] }
 0x12a   : > { %v672_v28 = vrot.slane %v667_v26, %v671_v25  ;;  %v676_v30 = vrot.slane %v667_v26, %v675_v27 }
 0x12b   : > { %766 = vmatpush1.bf16.msra.mxu0 %v3341_v8 }
 0x12c   : > { %767 = vmatprep.subr.bf16.mxu0 %v3342_v9 }
 0x12f   : > { %768 = vmatpush1.bf16.msra.mxu0 %v3344_v10 }
 0x130   : > { %769 = vmatprep.subr.bf16.mxu0 %v3345_v11 }
 0x133   : > { %770 = vmatpush1.bf16.msra.mxu0 %v3347_v12 }
 0x134   : > { %771 = vmatprep.subr.bf16.mxu0 %v3348_v13 }
 0x137   : > { %772 = vmatpush1.bf16.msra.mxu0 %v3350_v14 }
 0x138   : > { %773 = vmatprep.subr.bf16.mxu0 %v3351_v15 }
 0x13b   : > { %774 = vmatpush1.bf16.msra.mxu0 %v3353_v16 }
 0x13e   : > { %792 = vmatmul.mubr.bf16.vlgmr.msra.gmra.mrb[0].mxu0 %v649_v19 }
 0x13f   : > { %801 = vmatprep.mubr.bf16.mxu0 %v3865_v0 }
 0x146   : > { %802 = vmatmul.mubr.bf16.gmra.mrb[4].mxu0 %v650_v22 }
 0x211   : > { %v793_v29 = vpop.f32.mrb[0].mxu0 }
 0x212   : > { %v795_v31 = vpop.f32.mrb[1].mxu0  ;;  %v794_v33 = vadd.f32 %v793_v29, %v672_v28 }
 0x213   : > { %v797_v32 = vpop.f32.mrb[2].mxu0  ;;  %v796_v36 = vadd.f32 %v795_v31, %v676_v30 }
 0x214   : > { %v798_v34 = vadd.f32 %v797_v32, %v672_v28  ;;  %v799_v35 = vpop.f32.mrb[3].mxu0 }
 0x215   : > { %v800_v37 = vadd.f32 %v799_v35, %v676_v30 }
 0x216   : > { %v812_v38 = vpack.c.bf16 %v798_v34, %v794_v33 }
 0x217   : > { %v816_v39 = vpack.c.bf16 %v800_v37, %v796_v36 }
 0x218   : > { %814 = vst [vmem:[#allocation2] sm:$0xff] %v812_v38 }
 0x219   : > { %818 = vst [vmem:[#allocation3] sm:$0xff] %v816_v39  ;;  %v803_v40 = vpop.f32.mrb[4].mxu0 }
 0x21a   : > { %v805_v41 = vpop.f32.mrb[5].mxu0  ;;  %v804_v43 = vadd.f32 %v803_v40, %v672_v28 }
 0x21b   : > { %v807_v42 = vpop.f32.mrb[6].mxu0  ;;  %v806_v46 = vadd.f32 %v805_v41, %v676_v30 }
 0x21c   : > { %v808_v44 = vadd.f32 %v807_v42, %v672_v28  ;;  %v809_v45 = vpop.f32.mrb[7].mxu0 }
 0x21d   : > { %v810_v47 = vadd.f32 %v809_v45, %v676_v30 }
 0x21e   : > { %v813_v48 = vpack.c.bf16 %v808_v44, %v804_v43 }
 0x21f   : > { %v817_v49 = vpack.c.bf16 %v810_v47, %v806_v46 }
 0x220   : > { %815 = vst [vmem:[#allocation2 + $0x8] sm:$0xff] %v813_v48 }
 0x221   : > { %819 = vst [vmem:[#allocation3 + $0x8] sm:$0xff] %v817_v49 }
 0x222   : > { %3815 = dma.done.wait [#allocation6 + $0x1], 512 }
 0x223   : > { %3816 = vsyncadd [#allocation6 + $0x1], 4294966784  ;;  %968 = vmatprep.mubr.bf16.mxu1 %v3865_v0  ;;  %v3354_v50 = vld [vmem:[#allocation12 + $0x4] ss:$8 sps:$4 sm:$0xff]   ;;  %v3356_v51 = vld [vmem:[#allocation12] ss:$8 sps:$4 sm:$0xff]  }
 0x224   : > { %936 = vmatprep.subr.bf16.mxu1 %v3354_v50  ;;  %v3357_v52 = vld [vmem:[#allocation12 + $0x14] ss:$8 sps:$4 sm:$0xff]   ;;  %v3359_v53 = vld [vmem:[#allocation12 + $0x10] ss:$8 sps:$4 sm:$0xff]   ;;  %v3360_v54 = vld [vmem:[#allocation12 + $0x24] ss:$8 sps:$4 sm:$0xff]  }
 0x225   : > { %937 = vmatpush1.bf16.msra.mxu1 %v3356_v51  ;;  %v3362_v55 = vld [vmem:[#allocation12 + $0x20] ss:$8 sps:$4 sm:$0xff]   ;;  %v3363_v56 = vld [vmem:[#allocation12 + $0x34] ss:$8 sps:$4 sm:$0xff]   ;;  %v3365_v57 = vld [vmem:[#allocation12 + $0x30] ss:$8 sps:$4 sm:$0xff]  }
 0x226   : > { %938 = vmatprep.subr.bf16.mxu1 %v3357_v52  ;;  %v3366_v58 = vld [vmem:[#allocation12 + $0x44] ss:$8 sps:$4 sm:$0xff]   ;;  %v3368_v59 = vld [vmem:[#allocation12 + $0x40] ss:$8 sps:$4 sm:$0xff]   ;;  %v3369_v60 = vld [vmem:[#allocation12 + $0x54] ss:$8 sps:$4 sm:$0xff]  }
 0x227   : > { %v3371_v61 = vld [vmem:[#allocation12 + $0x50] ss:$8 sps:$4 sm:$0xff]   ;;  %v3372_v62 = vld [vmem:[#allocation12 + $0x64] ss:$8 sps:$4 sm:$0xff]   ;;  %v3374_v63 = vld [vmem:[#allocation12 + $0x60] ss:$8 sps:$4 sm:$0xff]  }
 0x228   : > { %v3375_v1 = vld [vmem:[#allocation12 + $0x74] ss:$8 sps:$4 sm:$0xff]   ;;  %v3377_v2 = vld [vmem:[#allocation12 + $0x70] ss:$8 sps:$4 sm:$0xff]   ;;  %v822_v3 = vld [vmem:[#allocation5 + $0x20] sm:$0xff] }
 0x229   : > { %939 = vmatpush1.bf16.msra.mxu1 %v3359_v53  ;;  %v823_v4 = vld [vmem:[#allocation5 + $0x28] sm:$0xff]  ;;  %v824_v6 = vld [vmem:[#allocation5 + $0x30] sm:$0xff]  ;;  %v825_v7 = vld [vmem:[#allocation5 + $0x38] sm:$0xff] }
 0x22a   : > { %940 = vmatprep.subr.bf16.mxu1 %v3360_v54  ;;  %v826_v5 = vpack.c.bf16 %v823_v4, %v822_v3  ;;  %v827_v8 = vpack.c.bf16 %v825_v7, %v824_v6  ;;  %v844_v9 = vld [vmem:[%s4732_s2] sm:$0x3] }
 0x22b   : > { %v849_v10 = vrot.slane %v844_v9, %v671_v25  ;;  %v853_v12 = vrot.slane %v844_v9, %v675_v27 }
 0x22d   : > { %941 = vmatpush1.bf16.msra.mxu1 %v3362_v55 }
 0x22e   : > { %942 = vmatprep.subr.bf16.mxu1 %v3363_v56 }
 0x231   : > { %943 = vmatpush1.bf16.msra.mxu1 %v3365_v57 }
 0x232   : > { %944 = vmatprep.subr.bf16.mxu1 %v3366_v58 }
 0x235   : > { %945 = vmatpush1.bf16.msra.mxu1 %v3368_v59 }
 0x236   : > { %946 = vmatprep.subr.bf16.mxu1 %v3369_v60 }
 0x239   : > { %947 = vmatpush1.bf16.msra.mxu1 %v3371_v61 }
 0x23a   : > { %948 = vmatprep.subr.bf16.mxu1 %v3372_v62 }
 0x23d   : > { %949 = vmatpush1.bf16.msra.mxu1 %v3374_v63 }
 0x23e   : > { %950 = vmatprep.subr.bf16.mxu1 %v3375_v1 }
 0x241   : > { %951 = vmatpush1.bf16.msra.mxu1 %v3377_v2 }
 0x244   : > { %969 = vmatmul.mubr.bf16.vlgmr.msra.gmra.mrb[0].mxu1 %v826_v5 }
 0x245   : > { %978 = vmatprep.mubr.bf16.mxu1 %v3865_v0 }
 0x24c   : > { %979 = vmatmul.mubr.bf16.gmra.mrb[4].mxu1 %v827_v8 }
 0x317   : > { %v970_v11 = vpop.f32.mrb[0].mxu1 }
 0x318   : > { %v972_v13 = vpop.f32.mrb[1].mxu1  ;;  %v971_v15 = vadd.f32 %v970_v11, %v849_v10 }
 0x319   : > { %v974_v14 = vpop.f32.mrb[2].mxu1  ;;  %v973_v17 = vadd.f32 %v972_v13, %v853_v12 }
 0x31a   : > { %v975_v16 = vadd.f32 %v974_v14, %v849_v10  ;;  %v976_v0 = vpop.f32.mrb[3].mxu1 }
 0x31b   : > { %v977_v18 = vadd.f32 %v976_v0, %v853_v12 }
 0x31c   : > { %v989_v19 = vpack.c.bf16 %v975_v16, %v971_v15 }
 0x31d   : > { %v993_v20 = vpack.c.bf16 %v977_v18, %v973_v17 }
 0x31e   : > { %991 = vst [vmem:[#allocation2 + $0x10] sm:$0xff] %v989_v19 }
 0x31f   : > { %995 = vst [vmem:[#allocation3 + $0x10] sm:$0xff] %v993_v20  ;;  %v980_v21 = vpop.f32.mrb[4].mxu1 }
 0x320   : > { %v982_v22 = vpop.f32.mrb[5].mxu1  ;;  %v981_v26 = vadd.f32 %v980_v21, %v849_v10 }
 0x321   : > { %v984_v23 = vpop.f32.mrb[6].mxu1  ;;  %v983_v29 = vadd.f32 %v982_v22, %v853_v12 }
 0x322   : > { %v985_v25 = vadd.f32 %v984_v23, %v849_v10  ;;  %v986_v28 = vpop.f32.mrb[7].mxu1 }
 0x323   : > { %v987_v24 = vadd.f32 %v986_v28, %v853_v12 }
 0x324   : > { %v990_v27 = vpack.c.bf16 %v985_v25, %v981_v26 }
 0x325   : > { %v994_v30 = vpack.c.bf16 %v987_v24, %v983_v29 }
 0x326   : > { %992 = vst [vmem:[#allocation2 + $0x18] sm:$0xff] %v990_v27 }
 0x327   : > { %996 = vst [vmem:[#allocation3 + $0x18] sm:$0xff] %v994_v30 }
 0x328 PF: > { %v3378_v31 = vld [vmem:[#allocation10] sm:$0xff]   ;;  %v3379_v32 = vld [vmem:[#allocation10 + $0x8] sm:$0xff]   ;;  %v3380_v33 = vld [vmem:[#allocation10 + $0x10] sm:$0xff]   ;;  %vm1129_vm0 = vcmask 261120   ;;  %s4733_s17 = sld [smem:[#allocation35_spill]]  ;;  %vm1197_vm1 = vcmask 523264  }
 0x329   : > { %3037 = vmatprep.subr.bf16.mxu0 %v3378_v31  ;;  %v3381_v34 = vld [vmem:[#allocation10 + $0x18] sm:$0xff]   ;;  %v997_v35 = vld [vmem:[%s4242_s14] sm:$0xff]  ;;  %v998_v36 = vld [vmem:[%s4242_s14 + $0x8] sm:$0xff]  ;;  %s3866_s30 = smov 96   ;;  %s3867_s3 = smov 64   ;;  %vm1527_vm2 = vcmask 523520  }
 0x32a   : > { %3038 = vmatpush3.bf16.msra.mxu0 %v3378_v31  ;;  %v1001_v37 = vpack.c.bf16 %v998_v36, %v997_v35  ;;  %v4319_v38 = vld [vmem:[#allocation2] sm:$0xff]  ;;  %v3382_v39 = vld [vmem:[#allocation10 + $0x20] sm:$0xff]   ;;  %v4325_v41 = vld [vmem:[#allocation2 + $0x8] sm:$0xff]  ;;  %s3868_s20 = smov 32   ;;  %vm1748_vm3 = vcmask 785920   ;;  %vm1969_vm4 = vcmask 1048320  }
 0x32b   : > { %3039 = vmatprep.subr.bf16.mxu0 %v3379_v32  ;;  %3173 = vmatprep.subr.msk.bf16.mxu1 %vm1129_vm0, %v4319_v38  ;;  %v1137_v40 = vsel %vm1129_vm0, %v4319_v38, 0  ;;  %v3383_v42 = vld [vmem:[#allocation10 + $0x28] sm:$0xff]   ;;  %v4329_v43 = vld [vmem:[#allocation2 + $0x10] sm:$0xff]  ;;  %v1140_v44 = vsel %vm1129_vm0, %v4325_v41, 0  ;;  %v3384_v45 = vld [vmem:[#allocation10 + $0x30] sm:$0xff]   ;;  %s4734_s1 = sld [smem:[#allocation39_spill]] }
 0x32c   : > { %3053 = vmatprep.mubr.bf16.mxu0 %v1001_v37  ;;  %3058 = vmatpush3.bf16.xpose.msra.mxu1 %v1137_v40  ;;  %v1143_v46 = vsel %vm1129_vm0, %v4329_v43, 0  ;;  %v3385_v47 = vld [vmem:[#allocation10 + $0x38] sm:$0xff]   ;;  %v999_v48 = vld [vmem:[%s4242_s14 + $0x10] sm:$0xff]  ;;  %v4372_v30 = vld [vmem:[#allocation3 + $0x10] sm:$0xff]  ;;  %s4735_s29 = sld [smem:[#allocation40_spill]]  ;;  %s4737_s10 = sld [smem:[#allocation43_spill]] }
 0x32d   : > { %3174 = vmatprep.subr.msk.bf16.mxu1 %vm1129_vm0, %v4325_v41  ;;  %v1000_v49 = vld [vmem:[%s4242_s14 + $0x18] sm:$0xff]  ;;  %v4339_v51 = vld [vmem:[#allocation2 + $0x18] sm:$0xff]  ;;  %v4364_v24 = vld [vmem:[#allocation3] sm:$0xff]  ;;  %s4739_s5 = sld [smem:[#allocation45_spill]]  ;;  %s2611_s11 = scalar_lea.sflag [#allocation9], %s4238_s8 }
 0x32e   : > { %3040 = vmatpush3.bf16.msra.mxu0 %v3379_v32  ;;  %v1002_v50 = vpack.c.bf16 %v1000_v49, %v999_v48  ;;  %v1146_v52 = vsel %vm1129_vm0, %v4339_v51, 0  ;;  %v2841_v54 = vld [vmem:[%s4733_s17] ss:$0 sm:$0xff]  ;;  %v4368_v27 = vld [vmem:[#allocation3 + $0x8] sm:$0xff]  ;;  %v4380_v31 = vld [vmem:[#allocation3 + $0x18] sm:$0xff]  ;;  %s4736_s17 = sld [smem:[#allocation41_spill]] }
 0x32f   : > { %3041 = vmatprep.subr.bf16.mxu0 %v3380_v33  ;;  %p4743_p3 = scmp.ne.s32.totalorder %s4723_s7, 0 }
 0x332   : > { %3042 = vmatpush3.bf16.msra.mxu0 %v3380_v33 }
 0x333   : > { %3043 = vmatprep.subr.bf16.mxu0 %v3381_v34 }
 0x334   : > { %3060 = vmatpush3.bf16.xpose.msra.mxu1 %v1140_v44 }
 0x335   : > { %3175 = vmatprep.subr.msk.bf16.mxu1 %vm1129_vm0, %v4329_v43 }
 0x336   : > { %3044 = vmatpush3.bf16.msra.mxu0 %v3381_v34 }
 0x337   : > { %3045 = vmatprep.subr.bf16.mxu0 %v3382_v39 }
 0x33a   : > { %3046 = vmatpush3.bf16.msra.mxu0 %v3382_v39 }
 0x33b   : > { %3047 = vmatprep.subr.bf16.mxu0 %v3383_v42 }
 0x33c   : > { %3062 = vmatpush3.bf16.xpose.msra.mxu1 %v1143_v46 }
 0x33d   : > { %3176 = vmatprep.subr.msk.bf16.mxu1 %vm1129_vm0, %v4339_v51 }
 0x33e   : > { %3048 = vmatpush3.bf16.msra.mxu0 %v3383_v42 }
 0x33f   : > { %3049 = vmatprep.subr.bf16.mxu0 %v3384_v45 }
 0x342   : > { %3050 = vmatpush3.bf16.msra.mxu0 %v3384_v45 }
 0x343   : > { %3051 = vmatprep.subr.bf16.mxu0 %v3385_v47 }
 0x344   : > { %3064 = vmatpush3.bf16.xpose.msra.mxu1 %v1146_v52 }
 0x345   : > { %3069 = vmatprep.subr.bf16.mxu1 %v4364_v24 }
 0x346   : > { %3052 = vmatpush3.bf16.msra.mxu0 %v3385_v47 }
 0x349   : > { %3054 = vmatmul.mubr.bf16.vlgmr.msra.gmra.mrb[0].mxu0 %v1002_v50 }
 0x41c   : > { %v3055_v53 = vpop.f32.mrb[0].mxu0 }
 0x41d   : > { %v1108_v55 = vpop.f32.mrb[1].mxu0  ;;  %v1117_v57 = vadd.f32 %v3055_v53, %v2841_v54 }
 0x41e   : > { %v3056_v56 = vpop.f32.mrb[2].mxu0  ;;  %v1109_v60 = vadd.f32 %v2841_v54, %v1108_v55 }
 0x41f   : > { %v1120_v58 = vadd.f32 %v3056_v56, %v2841_v54  ;;  %v1111_v59 = vpop.f32.mrb[3].mxu0 }
 0x420   : > { %v1112_v61 = vadd.f32 %v2841_v54, %v1111_v59 }
 0x421   : > { %v4348_v62 = vpack.c.bf16 %v1120_v58, %v1117_v57 }
 0x422   : > { %v4350_v63 = vpack.c.bf16 %v1112_v61, %v1109_v60 }
 0x424   : > { %3065 = vmatprep.mubr.msk.bf16.mxu1 %vm1129_vm0, %v4350_v63 }
 0x425   : > { %3066 = vmatmul.mubr.msk.bf16.vlgmr.msra.gmra.mrb[0].mxu1 %vm1129_vm0, %v4348_v62 }
 0x426   : > { %3070 = vmatpush3.bf16.msra.mxu1 %v4364_v24 }
 0x427   : > { %3071 = vmatprep.subr.bf16.mxu1 %v4368_v27 }
 0x42a   : > { %3072 = vmatpush3.bf16.msra.mxu1 %v4368_v27 }
 0x42b   : > { %3073 = vmatprep.subr.bf16.mxu1 %v4372_v30 }
 0x42e   : > { %3074 = vmatpush3.bf16.msra.mxu1 %v4372_v30 }
 0x42f   : > { %3075 = vmatprep.subr.bf16.mxu1 %v4380_v31 }
 0x432   : > { %3076 = vmatpush3.bf16.msra.mxu1 %v4380_v31 }
 0x4f8   : > { %v3067_v1 = vpop.f32.mrb[0].mxu1 }
 0x4f9   : > { %v1182_v2 = vpop.f32.mrb[1].mxu1  ;;  %v1204_v3 = vsel %vm1197_vm1, %v3067_v1, -inf }
 0x4fa   : > { %1205 = vmax.xlane.f32.xlu1 %v1204_v3  ;;  %v3068_v4 = vpop.f32.mrb[2].mxu1  ;;  %v1198_v5 = vsel %vm1197_vm1, %v1182_v2, -inf }
 0x4fb   : > { %1199 = vmax.xlane.f32.xlu0 %v1198_v5  ;;  %v1185_v6 = vpop.f32.mrb[3].mxu1  ;;  %v1207_v7 = vsel %vm1197_vm1, %v3068_v4, -inf }
 0x4fc   : > { %v1201_v8 = vsel %vm1197_vm1, %v1185_v6, -inf }
 0x4fe   : > { %1208 = vmax.xlane.f32.xlu1 %v1207_v7 }
 0x4ff   : > { %1202 = vmax.xlane.f32.xlu0 %v1201_v8 }
 0x587   : > { %v1206_v9 = vpop.xlane.xlu1 %1205 }
 0x588   : > { %v1212_v10 = vsub.f32 %v3067_v1, %v1206_v9  ;;  %v1200_v11 = vpop.xlane.xlu0 %1199 }
 0x589   : > { %v1210_v12 = vsub.f32 %v1182_v2, %v1200_v11 }
 0x58a   : > { %v1218_v13 = vmul.f32 1.442695, %v1212_v10 }
 0x58b   : > { %v1214_v14 = vmul.f32 1.442695, %v1210_v12  ;;  %v1209_v15 = vpop.xlane.xlu1 %1208 }
 0x58c   : > { %3434 = vpow2.f32 %v1218_v13  ;;  %v1213_v16 = vsub.f32 %v3068_v4, %v1209_v15  ;;  %v1203_v0 = vpop.xlane.xlu0 %1202 }
 0x58d   : > { %v1211_v17 = vsub.f32 %v1185_v6, %v1203_v0  ;;  %3436 = vpow2.f32 %v1214_v14 }
 0x58e   : > { %v1220_v18 = vmul.f32 1.442695, %v1213_v16 }
 0x58f   : > { %v1216_v19 = vmul.f32 1.442695, %v1211_v17 }
 0x591   : > { %3438 = vpow2.f32 %v1216_v19 }
 0x592   : > { %3440 = vpow2.f32 %v1220_v18 }
 0x596   : > { %v3435_v20 = vpop.eup %3434 }
 0x597   : > { %v1228_v21 = vsel %vm1197_vm1, %v3435_v20, 0.0  ;;  %v3437_v22 = vpop.eup %3436 }
 0x598   : > { %1229 = vadd.xlane.f32.xlu0 %v1228_v21  ;;  %v1222_v26 = vsel %vm1197_vm1, %v3437_v22, 0.0 }
 0x59b   : > { %v3439_v23 = vpop.eup %3438 }
 0x59c   : > { %1223 = vadd.xlane.f32.xlu0 %v1222_v26  ;;  %v1225_v25 = vsel %vm1197_vm1, %v3439_v23, 0.0  ;;  %v3441_v28 = vpop.eup %3440 }
 0x59d   : > { %1226 = vadd.xlane.f32.xlu1 %v1225_v25  ;;  %v1231_v29 = vsel %vm1197_vm1, %v3441_v28, 0.0 }
 0x5a1   : > { %1232 = vadd.xlane.f32.xlu1 %v1231_v29 }
 0x5b2   : > { %1321 = vrot.lane.b32.xlu0 %v4319_v38, %s3866_s30  ;;  %1323 = vrot.lane.b32.xlu1 %v4325_v41, %s3866_s30 }
 0x5b6   : > { %1313 = vrot.lane.b32.xlu0 %v4350_v63, %s3866_s30  ;;  %1325 = vrot.lane.b32.xlu1 %v4329_v43, %s3866_s30 }
 0x5ba   : > { %1327 = vrot.lane.b32.xlu1 %v4339_v51, %s3866_s30 }
 0x5be   : > { %1315 = vrot.lane.b32.xlu1 %v4348_v62, %s3866_s30 }
 0x625   : > { %v1230_v32 = vpop.xlane.xlu0 %1229 }
 0x629   : > { %v1224_v33 = vpop.xlane.xlu0 %1223 }
 0x62a   : > { %3442 = vrcp.f32 %v1224_v33  ;;  %v1227_v34 = vpop.xlane.xlu1 %1226 }
 0x62b   : > { %3444 = vrcp.f32 %v1227_v34 }
 0x62c   : > { %3446 = vrcp.f32 %v1230_v32 }
 0x62d   : > { %v1322_v35 = vpop.permute.xlu0 %1321 }
 0x62e   : > { %v1233_v36 = vpop.xlane.xlu1 %1232  ;;  %3177 = vmatprep.subr.msk.bf16.mxu1 %vm1129_vm0, %v1322_v35  ;;  %v1336_v49 = vsel %vm1129_vm0, %v1322_v35, 0 }
 0x62f   : > { %3448 = vrcp.f32 %v1233_v36 }
 0x631   : > { %v1314_v52 = vpop.permute.xlu0 %1313 }
 0x632   : > { %v1324_v53 = vpop.permute.xlu1 %1323 }
 0x633   : > { %v1339_v54 = vsel %vm1129_vm0, %v1324_v53, 0 }
 0x634   : > { %v3443_v37 = vpop.eup %3442 }
 0x635   : > { %v3445_v39 = vpop.eup %3444  ;;  %v1238_v40 = vmul.f32 %v3443_v37, %v3437_v22 }
 0x636   : > { %v1239_v42 = vmul.f32 %v3445_v39, %v3439_v23  ;;  %v3447_v44 = vpop.eup %3446  ;;  %v1326_v55 = vpop.permute.xlu1 %1325 }
 0x637   : > { %v1240_v47 = vmul.f32 %v3447_v44, %v3435_v20  ;;  %v1342_v56 = vsel %vm1129_vm0, %v1326_v55, 0 }
 0x638   : > { %v1242_v45 = vpack.c.bf16 %v1239_v42, %v1238_v40 }
 0x639   : > { %v3449_v46 = vpop.eup %3448 }
 0x63a   : > { %v1241_v48 = vmul.f32 %v3449_v46, %v3441_v28  ;;  %3077 = vmatprep.mubr.msk.bf16.mxu1 %vm1197_vm1, %v1242_v45  ;;  %v1328_v57 = vpop.permute.xlu1 %1327 }
 0x63b   : > { %v1345_v58 = vsel %vm1129_vm0, %v1328_v57, 0 }
 0x63c   : > { %v1243_v50 = vpack.c.bf16 %v1241_v48, %v1240_v47 }
 0x63e   : > { %3078 = vmatmul.mubr.msk.bf16.vlgmr.msra.gmra.mrb[4].mxu1 %vm1197_vm1, %v1243_v50  ;;  %v1316_v59 = vpop.permute.xlu1 %1315 }
 0x63f   : > { %3082 = vmatpush3.bf16.xpose.msra.mxu1 %v1336_v49  ;;  %3089 = vmatprep.mubr.msk.bf16.mxu1 %vm1129_vm0, %v1314_v52 }
 0x640   : > { %3178 = vmatprep.subr.msk.bf16.mxu1 %vm1129_vm0, %v1324_v53 }
 0x647   : > { %3084 = vmatpush3.bf16.xpose.msra.mxu1 %v1339_v54 }
 0x648   : > { %3179 = vmatprep.subr.msk.bf16.mxu1 %vm1129_vm0, %v1326_v55 }
 0x64f   : > { %3086 = vmatpush3.bf16.xpose.msra.mxu1 %v1342_v56 }
 0x650   : > { %3180 = vmatprep.subr.msk.bf16.mxu1 %vm1129_vm0, %v1328_v57 }
 0x657   : > { %3088 = vmatpush3.bf16.xpose.msra.mxu1 %v1345_v58 }
 0x65e   : > { %3090 = vmatmul.mubr.msk.bf16.vlgmr.msra.gmra.mrb[8].mxu1 %vm1129_vm0, %v1316_v59 }
 0x711   : > { %v3079_v60 = vpop.f32.mrb[4].mxu1 }
 0x712   : > { %v1288_v61 = vpop.f32.mrb[5].mxu1 }
 0x713   : > { %v3080_v1 = vpop.f32.mrb[6].mxu1 }
 0x714   : > { %v1304_v2 = vpack.c.bf16 %v3080_v1, %v3079_v60  ;;  %v1291_v3 = vpop.f32.mrb[7].mxu1 }
 0x715   : > { %v1303_v4 = vpack.c.bf16 %v1291_v3, %v1288_v61 }
 0x716   : > { %1306 = vst.msk [vmem:[#allocation4 + $0x8] sm:$0xff] %vm1129_vm0, %v1304_v2 }
 0x717   : > { %1305 = vst.msk [vmem:[#allocation4] sm:$0xff] %vm1129_vm0, %v1303_v4 }
 0x731   : > { %v3091_v5 = vpop.f32.mrb[8].mxu1 }
 0x732   : > { %v1381_v6 = vpop.f32.mrb[9].mxu1  ;;  %v1402_v11 = vsel %vm1197_vm1, %v3091_v5, -inf }
 0x733   : > { %v3092_v7 = vpop.f32.mrb[10].mxu1  ;;  %v1396_v8 = vsel %vm1197_vm1, %v1381_v6, -inf }
 0x734   : > { %1397 = vmax.xlane.f32.xlu0 %v1396_v8  ;;  %v1384_v9 = vpop.f32.mrb[11].mxu1  ;;  %v1405_v12 = vsel %vm1197_vm1, %v3092_v7, -inf }
 0x735   : > { %v1399_v10 = vsel %vm1197_vm1, %v1384_v9, -inf }
 0x736   : > { %1400 = vmax.xlane.f32.xlu1 %v1399_v10 }
 0x738   : > { %1403 = vmax.xlane.f32.xlu0 %v1402_v11 }
 0x73c   : > { %1406 = vmax.xlane.f32.xlu0 %v1405_v12 }
 0x747   : > { %1452 = vrot.lane.b32.xlu1 %v4368_v27, %s3866_s30 }
 0x74b   : > { %1454 = vrot.lane.b32.xlu1 %v4372_v30, %s3866_s30 }
 0x752   : > { %1450 = vrot.lane.b32.xlu0 %v4364_v24, %s3866_s30 }
 0x7c1   : > { %v1398_v13 = vpop.xlane.xlu0 %1397 }
 0x7c2   : > { %v1408_v14 = vsub.f32 %v1381_v6, %v1398_v13 }
 0x7c3   : > { %v1401_v15 = vpop.xlane.xlu1 %1400 }
 0x7c4   : > { %v1412_v17 = vmul.f32 1.442695, %v1408_v14  ;;  %v1409_v18 = vsub.f32 %v1384_v9, %v1401_v15 }
 0x7c5   : > { %v1404_v16 = vpop.xlane.xlu0 %1403 }
 0x7c6   : > { %v1410_v0 = vsub.f32 %v3091_v5, %v1404_v16  ;;  %v1414_v23 = vmul.f32 1.442695, %v1409_v18 }
 0x7c7   : > { %v1453_v22 = vpop.permute.xlu1 %1452 }
 0x7c8   : > { %v1416_v19 = vmul.f32 1.442695, %v1410_v0 }
 0x7c9   : > { %v1407_v20 = vpop.xlane.xlu0 %1406 }
 0x7ca   : > { %3450 = vpow2.f32 %v1416_v19  ;;  %v1411_v21 = vsub.f32 %v3092_v7, %v1407_v20 }
 0x7cb   : > { %3452 = vpow2.f32 %v1412_v17  ;;  %v1455_v28 = vpop.permute.xlu1 %1454 }
 0x7cc   : > { %v1418_v26 = vmul.f32 1.442695, %v1411_v21 }
 0x7cd   : > { %v1451_v25 = vpop.permute.xlu0 %1450 }
 0x7ce   : > { %3454 = vpow2.f32 %v1418_v26  ;;  %3093 = vmatprep.subr.bf16.mxu0 %v1451_v25 }
 0x7cf   : > { %3094 = vmatpush3.bf16.msra.mxu0 %v1451_v25  ;;  %3456 = vpow2.f32 %v1414_v23 }
 0x7d0   : > { %3095 = vmatprep.subr.bf16.mxu0 %v1453_v22 }
 0x7d3   : > { %3096 = vmatpush3.bf16.msra.mxu0 %v1453_v22 }
 0x7d4   : > { %v3451_v29 = vpop.eup %3450  ;;  %3097 = vmatprep.subr.bf16.mxu0 %v1455_v28 }
 0x7d5   : > { %v1426_v32 = vsel %vm1197_vm1, %v3451_v29, 0.0  ;;  %v3453_v33 = vpop.eup %3452 }
 0x7d6   : > { %1427 = vadd.xlane.f32.xlu0 %v1426_v32  ;;  %v1420_v35 = vsel %vm1197_vm1, %v3453_v33, 0.0 }
 0x7d7   : > { %3098 = vmatpush3.bf16.msra.mxu0 %v1455_v28 }
 0x7d8   : > { %v3455_v34 = vpop.eup %3454 }
 0x7d9   : > { %v1429_v36 = vsel %vm1197_vm1, %v3455_v34, 0.0  ;;  %v3457_v37 = vpop.eup %3456 }
 0x7da   : > { %1421 = vadd.xlane.f32.xlu0 %v1420_v35  ;;  %1430 = vadd.xlane.f32.xlu1 %v1429_v36  ;;  %v1423_v39 = vsel %vm1197_vm1, %v3457_v37, 0.0 }
 0x7de   : > { %1424 = vadd.xlane.f32.xlu1 %v1423_v39 }
 0x7ef   : > { %1456 = vrot.lane.b32.xlu1 %v4380_v31, %s3866_s30 }
 0x7f0   : > { %1542 = vrot.lane.b32.xlu0 %v4319_v38, %s3867_s3 }
 0x7f3   : > { %1544 = vrot.lane.b32.xlu1 %v4325_v41, %s3867_s3 }
 0x7f4   : > { %1546 = vrot.lane.b32.xlu0 %v4329_v43, %s3867_s3 }
 0x7f7   : > { %1548 = vrot.lane.b32.xlu1 %v4339_v51, %s3867_s3 }
 0x7f8   : > { %1534 = vrot.lane.b32.xlu0 %v4350_v63, %s3867_s3 }
 0x7fb   : > { %1536 = vrot.lane.b32.xlu1 %v4348_v62, %s3867_s3 }
 0x863   : > { %v1428_v40 = vpop.xlane.xlu0 %1427 }
 0x867   : > { %v1422_v42 = vpop.xlane.xlu0 %1421  ;;  %v1431_v44 = vpop.xlane.xlu1 %1430 }
 0x868   : > { %3458 = vrcp.f32 %v1431_v44 }
 0x869   : > { %3460 = vrcp.f32 %v1422_v42 }
 0x86a   : > { %3462 = vrcp.f32 %v1428_v40 }
 0x86b   : > { %v1425_v45 = vpop.xlane.xlu1 %1424  ;;  %v1543_v47 = vpop.permute.xlu0 %1542 }
 0x86c   : > { %3464 = vrcp.f32 %v1425_v45  ;;  %v1557_v59 = vsel %vm1129_vm0, %v1543_v47, 0 }
 0x86f   : > { %v1457_v46 = vpop.permute.xlu1 %1456  ;;  %v1547_v54 = vpop.permute.xlu0 %1546 }
 0x870   : > { %3099 = vmatprep.subr.bf16.mxu0 %v1457_v46  ;;  %v1563_v3 = vsel %vm1129_vm0, %v1547_v54, 0 }
 0x871   : > { %3100 = vmatpush3.bf16.msra.mxu0 %v1457_v46 }
 0x872   : > { %3181 = vmatprep.subr.msk.bf16.mxu0 %vm1129_vm0, %v1543_v47  ;;  %v3459_v48 = vpop.eup %3458 }
 0x873   : > { %v3461_v49 = vpop.eup %3460  ;;  %v1439_v53 = vmul.f32 %v3459_v48, %v3455_v34  ;;  %v1535_v61 = vpop.permute.xlu0 %1534 }
 0x874   : > { %v3463_v50 = vpop.eup %3462  ;;  %v1436_v55 = vmul.f32 %v3461_v49, %v3453_v33  ;;  %v1545_v1 = vpop.permute.xlu1 %1544 }
 0x875   : > { %v1438_v57 = vmul.f32 %v3463_v50, %v3451_v29  ;;  %v1560_v2 = vsel %vm1129_vm0, %v1545_v1, 0 }
 0x876   : > { %v3465_v52 = vpop.eup %3464 }
 0x877   : > { %v1437_v56 = vmul.f32 %v3465_v52, %v3457_v37  ;;  %v1441_v60 = vpack.c.bf16 %v1439_v53, %v1438_v57 }
 0x878   : > { %v1549_v4 = vpop.permute.xlu1 %1548 }
 0x879   : > { %v1440_v58 = vpack.c.bf16 %v1437_v56, %v1436_v55  ;;  %v1566_v5 = vsel %vm1129_vm0, %v1549_v4, 0 }
 0x87b   : > { %3101 = vmatprep.mubr.msk.bf16.mxu0 %vm1197_vm1, %v1440_v58 }
 0x87c   : > { %3102 = vmatmul.mubr.msk.bf16.vlgmr.msra.gmra.mrb[4].mxu0 %vm1197_vm1, %v1441_v60  ;;  %v1537_v6 = vpop.permute.xlu1 %1536 }
 0x87d   : > { %3106 = vmatpush3.bf16.xpose.msra.mxu0 %v1557_v59  ;;  %3113 = vmatprep.mubr.msk.bf16.mxu0 %vm1129_vm0, %v1535_v61 }
 0x87e   : > { %3182 = vmatprep.subr.msk.bf16.mxu0 %vm1129_vm0, %v1545_v1 }
 0x885   : > { %3108 = vmatpush3.bf16.xpose.msra.mxu0 %v1560_v2 }
 0x886   : > { %3183 = vmatprep.subr.msk.bf16.mxu0 %vm1129_vm0, %v1547_v54 }
 0x88d   : > { %3110 = vmatpush3.bf16.xpose.msra.mxu0 %v1563_v3 }
 0x88e   : > { %3184 = vmatprep.subr.msk.bf16.mxu0 %vm1129_vm0, %v1549_v4 }
 0x895   : > { %3112 = vmatpush3.bf16.xpose.msra.mxu0 %v1566_v5 }
 0x89c   : > { %3114 = vmatmul.mubr.msk.bf16.vlgmr.msra.gmra.mrb[8].mxu0 %vm1129_vm0, %v1537_v6 }
 0x94f   : > { %v4446_v7 = vpop.f32.mrb[4].mxu0 }
 0x950   : > { %v4448_v8 = vpop.f32.mrb[5].mxu0 }
 0x951   : > { %v4450_v9 = vpop.f32.mrb[6].mxu0 }
 0x952   : > { %v1518_v10 = vpack.c.bf16 %v4450_v9, %v4446_v7  ;;  %v4454_v11 = vpop.f32.mrb[7].mxu0 }
 0x953   : > { %v1517_v12 = vpack.c.bf16 %v4454_v11, %v4448_v8 }
 0x96f   : > { %v3115_v13 = vpop.f32.mrb[8].mxu0 }
 0x970   : > { %v1602_v14 = vpop.f32.mrb[9].mxu0  ;;  %v1623_v18 = vsel %vm1197_vm1, %v3115_v13, -inf }
 0x971   : > { %v3116_v15 = vpop.f32.mrb[10].mxu0  ;;  %v1617_v16 = vsel %vm1197_vm1, %v1602_v14, -inf }
 0x972   : > { %1618 = vmax.xlane.f32.xlu0 %v1617_v16  ;;  %v1605_v0 = vpop.f32.mrb[11].mxu0  ;;  %v1626_v19 = vsel %vm1197_vm1, %v3116_v15, -inf }
 0x973   : > { %v1620_v17 = vsel %vm1197_vm1, %v1605_v0, -inf }
 0x974   : > { %1621 = vmax.xlane.f32.xlu1 %v1620_v17 }
 0x976   : > { %1624 = vmax.xlane.f32.xlu0 %v1623_v18 }
 0x97a   : > { %1627 = vmax.xlane.f32.xlu0 %v1626_v19 }
 0x985   : > { %1673 = vrot.lane.b32.xlu1 %v4368_v27, %s3867_s3 }
 0x989   : > { %1675 = vrot.lane.b32.xlu1 %v4372_v30, %s3867_s3 }
 0x990   : > { %1671 = vrot.lane.b32.xlu0 %v4364_v24, %s3867_s3 }
 0x9ff   : > { %v1619_v20 = vpop.xlane.xlu0 %1618 }
 0xa00   : > { %v1629_v21 = vsub.f32 %v1602_v14, %v1619_v20 }
 0xa01   : > { %v1622_v22 = vpop.xlane.xlu1 %1621 }
 0xa02   : > { %v1633_v25 = vmul.f32 1.442695, %v1629_v21  ;;  %v1630_v28 = vsub.f32 %v1605_v0, %v1622_v22 }
 0xa03   : > { %v1625_v23 = vpop.xlane.xlu0 %1624 }
 0xa04   : > { %v1631_v26 = vsub.f32 %v3115_v13, %v1625_v23  ;;  %v1635_v35 = vmul.f32 1.442695, %v1630_v28 }
 0xa05   : > { %v1674_v34 = vpop.permute.xlu1 %1673 }
 0xa06   : > { %v1637_v29 = vmul.f32 1.442695, %v1631_v26 }
 0xa07   : > { %v1628_v32 = vpop.xlane.xlu0 %1627 }
 0xa08   : > { %3466 = vpow2.f32 %v1637_v29  ;;  %v1632_v33 = vsub.f32 %v3116_v15, %v1628_v32 }
 0xa09   : > { %3468 = vpow2.f32 %v1633_v25  ;;  %v1676_v39 = vpop.permute.xlu1 %1675 }
 0xa0a   : > { %v1639_v36 = vmul.f32 1.442695, %v1632_v33 }
 0xa0b   : > { %v1672_v37 = vpop.permute.xlu0 %1671 }
 0xa0c   : > { %3470 = vpow2.f32 %v1639_v36  ;;  %3117 = vmatprep.subr.bf16.mxu1 %v1672_v37 }
 0xa0d   : > { %3118 = vmatpush3.bf16.msra.mxu1 %v1672_v37  ;;  %3472 = vpow2.f32 %v1635_v35 }
 0xa0e   : > { %3119 = vmatprep.subr.bf16.mxu1 %v1674_v34 }
 0xa11   : > { %3120 = vmatpush3.bf16.msra.mxu1 %v1674_v34 }
 0xa12   : > { %v3467_v40 = vpop.eup %3466  ;;  %3121 = vmatprep.subr.bf16.mxu1 %v1676_v39 }
 0xa13   : > { %v1647_v42 = vsel %vm1197_vm1, %v3467_v40, 0.0  ;;  %v3469_v44 = vpop.eup %3468 }
 0xa14   : > { %1648 = vadd.xlane.f32.xlu0 %v1647_v42  ;;  %v1641_v46 = vsel %vm1197_vm1, %v3469_v44, 0.0 }
 0xa15   : > { %3122 = vmatpush3.bf16.msra.mxu1 %v1676_v39 }
 0xa16   : > { %v3471_v45 = vpop.eup %3470 }
 0xa17   : > { %v1650_v47 = vsel %vm1197_vm1, %v3471_v45, 0.0  ;;  %v3473_v48 = vpop.eup %3472 }
 0xa18   : > { %1642 = vadd.xlane.f32.xlu0 %v1641_v46  ;;  %1651 = vadd.xlane.f32.xlu1 %v1650_v47  ;;  %v1644_v49 = vsel %vm1197_vm1, %v3473_v48, 0.0 }
 0xa1c   : > { %1645 = vadd.xlane.f32.xlu1 %v1644_v49 }
 0xa2d   : > { %1677 = vrot.lane.b32.xlu1 %v4380_v31, %s3867_s3 }
 0xa2e   : > { %1763 = vrot.lane.b32.xlu0 %v4319_v38, %s3868_s20 }
 0xa31   : > { %1765 = vrot.lane.b32.xlu1 %v4325_v41, %s3868_s20 }
 0xa32   : > { %1767 = vrot.lane.b32.xlu0 %v4329_v43, %s3868_s20 }
 0xa35   : > { %1769 = vrot.lane.b32.xlu1 %v4339_v51, %s3868_s20 }
 0xa36   : > { %1755 = vrot.lane.b32.xlu0 %v4350_v63, %s3868_s20 }
 0xa39   : > { %1757 = vrot.lane.b32.xlu1 %v4348_v62, %s3868_s20 }
 0xaa1   : > { %v1649_v50 = vpop.xlane.xlu0 %1648 }
 0xaa5   : > { %v1643_v52 = vpop.xlane.xlu0 %1642  ;;  %v1652_v53 = vpop.xlane.xlu1 %1651 }
 0xaa6   : > { %3474 = vrcp.f32 %v1652_v53 }
 0xaa7   : > { %3476 = vrcp.f32 %v1643_v52 }
 0xaa8   : > { %3478 = vrcp.f32 %v1649_v50 }
 0xaa9   : > { %v1646_v38 = vpop.xlane.xlu1 %1645  ;;  %v1764_v54 = vpop.permute.xlu0 %1763 }
 0xaaa   : > { %3480 = vrcp.f32 %v1646_v38  ;;  %v1778_v61 = vsel %vm1129_vm0, %v1764_v54, 0 }
 0xaad   : > { %v1678_v41 = vpop.permute.xlu1 %1677  ;;  %v1768_v62 = vpop.permute.xlu0 %1767 }
 0xaae   : > { %3123 = vmatprep.subr.bf16.mxu1 %v1678_v41  ;;  %v1784_v5 = vsel %vm1129_vm0, %v1768_v62, 0 }
 0xaaf   : > { %3124 = vmatpush3.bf16.msra.mxu1 %v1678_v41 }
 0xab0   : > { %3185 = vmatprep.subr.msk.bf16.mxu1 %vm1129_vm0, %v1764_v54  ;;  %v3475_v43 = vpop.eup %3474 }
 0xab1   : > { %v3477_v51 = vpop.eup %3476  ;;  %v1660_v56 = vmul.f32 %v3475_v43, %v3471_v45  ;;  %v1756_v2 = vpop.permute.xlu0 %1755 }
 0xab2   : > { %v3479_v63 = vpop.eup %3478  ;;  %v1657_v57 = vmul.f32 %v3477_v51, %v3469_v44  ;;  %v1766_v3 = vpop.permute.xlu1 %1765 }
 0xab3   : > { %v1659_v59 = vmul.f32 %v3479_v63, %v3467_v40  ;;  %v1781_v4 = vsel %vm1129_vm0, %v1766_v3, 0 }
 0xab4   : > { %v3481_v55 = vpop.eup %3480 }
 0xab5   : > { %v1658_v58 = vmul.f32 %v3481_v55, %v3473_v48  ;;  %v1662_v1 = vpack.c.bf16 %v1660_v56, %v1659_v59 }
 0xab6   : > { %v1770_v6 = vpop.permute.xlu1 %1769 }
 0xab7   : > { %v1661_v60 = vpack.c.bf16 %v1658_v58, %v1657_v57  ;;  %v1787_v13 = vsel %vm1129_vm0, %v1770_v6, 0 }
 0xab9   : > { %3125 = vmatprep.mubr.msk.bf16.mxu1 %vm1197_vm1, %v1661_v60 }
 0xaba   : > { %3126 = vmatmul.mubr.msk.bf16.vlgmr.msra.gmra.mrb[12].mxu1 %vm1197_vm1, %v1662_v1  ;;  %v1758_v14 = vpop.permute.xlu1 %1757  ;;  %v3386_v1 = vld [vmem:[#allocation13] sm:$0xff]  }
 0xabb   : > { %3130 = vmatpush3.bf16.xpose.msra.mxu1 %v1778_v61  ;;  %3137 = vmatprep.mubr.msk.bf16.mxu1 %vm1129_vm0, %v1756_v2  ;;  %v3387_v2 = vld [vmem:[#allocation13 + $0x8] sm:$0xff]  }
 0xabc   : > { %3186 = vmatprep.subr.msk.bf16.mxu1 %vm1129_vm0, %v1766_v3  ;;  %v3388_v3 = vld [vmem:[#allocation13 + $0x10] sm:$0xff]  }
 0xac3   : > { %3132 = vmatpush3.bf16.xpose.msra.mxu1 %v1781_v4  ;;  %v3389_v4 = vld [vmem:[#allocation13 + $0x18] sm:$0xff]  }
 0xac4   : > { %3187 = vmatprep.subr.msk.bf16.mxu1 %vm1129_vm0, %v1768_v62 }
 0xacb   : > { %3134 = vmatpush3.bf16.xpose.msra.mxu1 %v1784_v5  ;;  %v3390_v5 = vld [vmem:[#allocation13 + $0x20] sm:$0xff]  }
 0xacc   : > { %3188 = vmatprep.subr.msk.bf16.mxu1 %vm1129_vm0, %v1770_v6  ;;  %v3391_v6 = vld [vmem:[#allocation13 + $0x28] sm:$0xff]  }
 0xad3   : > { %3136 = vmatpush3.bf16.xpose.msra.mxu1 %v1787_v13  ;;  %v3392_v13 = vld [vmem:[#allocation13 + $0x30] sm:$0xff]  }
 0xada   : > { %3138 = vmatmul.mubr.msk.bf16.vlgmr.msra.gmra.mrb[16].mxu1 %vm1129_vm0, %v1758_v14  ;;  %v3393_v14 = vld [vmem:[#allocation13 + $0x38] sm:$0xff]  }
 0xb8d   : > { %v3127_v15 = vpop.f32.mrb[12].mxu1 }
 0xb8e   : > { %v1723_v16 = vpop.f32.mrb[13].mxu1 }
 0xb8f   : > { %v3128_v0 = vpop.f32.mrb[14].mxu1 }
 0xb90   : > { %v1739_v17 = vpack.c.bf16 %v3128_v0, %v3127_v15  ;;  %v1726_v18 = vpop.f32.mrb[15].mxu1 }
 0xb91   : > { %v1738_v19 = vpack.c.bf16 %v1726_v18, %v1723_v16 }
 0xbad   : > { %v3139_v20 = vpop.f32.mrb[16].mxu1 }
 0xbae   : > { %v1823_v21 = vpop.f32.mrb[17].mxu1  ;;  %v1844_v28 = vsel %vm1197_vm1, %v3139_v20, -inf }
 0xbaf   : > { %v3140_v22 = vpop.f32.mrb[18].mxu1  ;;  %v1838_v23 = vsel %vm1197_vm1, %v1823_v21, -inf }
 0xbb0   : > { %1839 = vmax.xlane.f32.xlu0 %v1838_v23  ;;  %v1826_v26 = vpop.f32.mrb[19].mxu1  ;;  %v1847_v29 = vsel %vm1197_vm1, %v3140_v22, -inf }
 0xbb1   : > { %v1841_v25 = vsel %vm1197_vm1, %v1826_v26, -inf }
 0xbb2   : > { %1842 = vmax.xlane.f32.xlu1 %v1841_v25 }
 0xbb4   : > { %1845 = vmax.xlane.f32.xlu0 %v1844_v28 }
 0xbb8   : > { %1848 = vmax.xlane.f32.xlu0 %v1847_v29 }
 0xbc3   : > { %1894 = vrot.lane.b32.xlu1 %v4368_v27, %s3868_s20 }
 0xbc7   : > { %1896 = vrot.lane.b32.xlu1 %v4372_v30, %s3868_s20 }
 0xc3d   : > { %v1840_v32 = vpop.xlane.xlu0 %1839 }
 0xc3e   : > { %v1850_v33 = vsub.f32 %v1823_v21, %v1840_v32 }
 0xc3f   : > { %v1843_v34 = vpop.xlane.xlu1 %1842 }
 0xc40   : > { %v1854_v37 = vmul.f32 1.442695, %v1850_v33  ;;  %v1851_v39 = vsub.f32 %v1826_v26, %v1843_v34  ;;  %v2866_v26 = vld [vmem:[%s4734_s1] ss:$0 sm:$0xff] }
 0xc41   : > { %v1846_v35 = vpop.xlane.xlu0 %1845 }
 0xc42   : > { %v1852_v36 = vsub.f32 %v3139_v20, %v1846_v35  ;;  %v1856_v45 = vmul.f32 1.442695, %v1851_v39  ;;  %v3515_v39 = vld [vmem:[%s4242_s14 + $0x8] sm:$0xff] }
 0xc43   : > { %v1895_v38 = vpop.permute.xlu1 %1894 }
 0xc44   : > { %v1858_v40 = vmul.f32 1.442695, %v1852_v36  ;;  %v3514_v36 = vld [vmem:[%s4242_s14] sm:$0xff] }
 0xc45   : > { %v1849_v42 = vpop.xlane.xlu0 %1848 }
 0xc46   : > { %3482 = vpow2.f32 %v1858_v40  ;;  %v1853_v44 = vsub.f32 %v3140_v22, %v1849_v42 }
 0xc47   : > { %3484 = vpow2.f32 %v1854_v37  ;;  %v1897_v41 = vpop.permute.xlu1 %1896 }
 0xc48   : > { %v1860_v46 = vmul.f32 1.442695, %v1853_v44  ;;  %v3516_v44 = vld [vmem:[%s4242_s14 + $0x10] sm:$0xff] }
 0xc4a   : > { %3486 = vpow2.f32 %v1860_v46  ;;  %v3517_v46 = vld [vmem:[%s4242_s14 + $0x18] sm:$0xff]  ;;  %s4738_s14 = sld [smem:[#allocation44_spill]] }
 0xc4b   : > { %3488 = vpow2.f32 %v1856_v45 }
 0xc50   : > { %v3483_v27 = vpop.eup %3482 }
 0xc51   : > { %v1868_v47 = vsel %vm1197_vm1, %v3483_v27, 0.0  ;;  %v3485_v30 = vpop.eup %3484 }
 0xc52   : > { %1869 = vadd.xlane.f32.xlu0 %v1868_v47  ;;  %v1862_v49 = vsel %vm1197_vm1, %v3485_v30, 0.0  ;;  %v3394_v47 = vld [vmem:[#allocation15] ss:$8 sps:$4 sm:$0xff]  }
 0xc54   : > { %v3487_v48 = vpop.eup %3486 }
 0xc55   : > { %v1871_v50 = vsel %vm1197_vm1, %v3487_v48, 0.0  ;;  %v3489_v52 = vpop.eup %3488 }
 0xc56   : > { %1863 = vadd.xlane.f32.xlu0 %v1862_v49  ;;  %1872 = vadd.xlane.f32.xlu1 %v1871_v50  ;;  %v1865_v53 = vsel %vm1197_vm1, %v3489_v52, 0.0  ;;  %v3397_v49 = vld [vmem:[#allocation15 + $0x10] ss:$8 sps:$4 sm:$0xff]  }
 0xc5a   : > { %1866 = vadd.xlane.f32.xlu1 %v1865_v53 }
 0xc6b   : > { %1898 = vrot.lane.b32.xlu1 %v4380_v31, %s3868_s20 }
 0xc6c   : > { %1892 = vrot.lane.b32.xlu0 %v4364_v24, %s3868_s20 }
 0xc6f   : > { %1523 = vrot.lane.b32.xlu1 %v1518_v10, %s3868_s20 }
 0xc70   : > { %1521 = vrot.lane.b32.xlu0 %v1517_v12, %s3868_s20  ;;  %s2917_s20 = sshll.u32 %s3835_s24, 2  ;;  %s4741_s24 = sld [smem:[#allocation47_spill]] }
 0xc73   : > { %1744 = vrot.lane.b32.xlu1 %v1739_v17, %s3867_s3 }
 0xc74   : > { %1742 = vrot.lane.b32.xlu0 %v1738_v19, %s3867_s3 }
 0xcdf   : > { %v1870_v31 = vpop.xlane.xlu0 %1869 }
 0xce3   : > { %v1864_v54 = vpop.xlane.xlu0 %1863  ;;  %v1873_v43 = vpop.xlane.xlu1 %1872 }
 0xce4   : > { %3490 = vrcp.f32 %v1873_v43 }
 0xce5   : > { %3492 = vrcp.f32 %v1864_v54 }
 0xce6   : > { %3494 = vrcp.f32 %v1870_v31 }
 0xce7   : > { %v1893_v24 = vpop.permute.xlu0 %1892  ;;  %v1867_v7 = vpop.xlane.xlu1 %1866 }
 0xce8   : > { %3496 = vrcp.f32 %v1867_v7  ;;  %3141 = vmatprep.subr.bf16.mxu0 %v1893_v24 }
 0xce9   : > { %3142 = vmatpush3.bf16.msra.mxu0 %v1893_v24 }
 0xcea   : > { %3143 = vmatprep.subr.bf16.mxu0 %v1895_v38 }
 0xceb   : > { %v1522_v8 = vpop.permute.xlu0 %1521  ;;  %v1899_v9 = vpop.permute.xlu1 %1898 }
 0xcec   : > { %1528 = vst.msk [vmem:[#allocation4] sm:$0xff] %vm1527_vm2, %v1522_v8 }
 0xced   : > { %3144 = vmatpush3.bf16.msra.mxu0 %v1895_v38 }
 0xcee   : > { %3145 = vmatprep.subr.bf16.mxu0 %v1897_v41  ;;  %v3491_v10 = vpop.eup %3490 }
 0xcef   : > { %v1743_v11 = vpop.permute.xlu0 %1742  ;;  %v1524_v12 = vpop.permute.xlu1 %1523  ;;  %v1881_v56 = vmul.f32 %v3491_v10, %v3487_v48  ;;  %v3399_v48 = vld [vmem:[#allocation15 + $0x14] ss:$8 sps:$4 sm:$0xff]  }
 0xcf0   : > { %v3493_v51 = vpop.eup %3492  ;;  %1749 = vst.msk [vmem:[#allocation4] sm:$0xff] %vm1748_vm3, %v1743_v11 }
 0xcf1   : > { %1529 = vst.msk [vmem:[#allocation4 + $0x8] sm:$0xff] %vm1527_vm2, %v1524_v12  ;;  %v3495_v63 = vpop.eup %3494  ;;  %3146 = vmatpush3.bf16.msra.mxu0 %v1897_v41  ;;  %v1878_v57 = vmul.f32 %v3493_v51, %v3485_v30  ;;  %v3396_v30 = vld [vmem:[#allocation15 + $0x4] ss:$8 sps:$4 sm:$0xff]  }
 0xcf2   : > { %v3497_v55 = vpop.eup %3496  ;;  %3147 = vmatprep.subr.bf16.mxu0 %v1899_v9  ;;  %v1880_v59 = vmul.f32 %v3495_v63, %v3483_v27  ;;  %2275 = vmatprep.subr.bf16.mxu1 %v3396_v30  ;;  %v3402_v63 = vld [vmem:[#allocation15 + $0x24] ss:$8 sps:$4 sm:$0xff]  }
 0xcf3   : > { %v1745_v62 = vpop.permute.xlu1 %1744  ;;  %v1879_v58 = vmul.f32 %v3497_v55, %v3489_v52  ;;  %2276 = vmatpush1.bf16.msra.mxu1 %v3394_v47  ;;  %v3400_v55 = vld [vmem:[#allocation15 + $0x20] ss:$8 sps:$4 sm:$0xff]  }
 0xcf4   : > { %1750 = vst.msk [vmem:[#allocation4 + $0x8] sm:$0xff] %vm1748_vm3, %v1745_v62  ;;  %v1883_v61 = vpack.c.bf16 %v1881_v56, %v1880_v59  ;;  %2277 = vmatprep.subr.bf16.mxu1 %v3399_v48  ;;  %v3405_v56 = vld [vmem:[#allocation15 + $0x34] ss:$8 sps:$4 sm:$0xff]   ;;  %v3403_v62 = vld [vmem:[#allocation15 + $0x30] ss:$8 sps:$4 sm:$0xff]  }
 0xcf5   : > { %3148 = vmatpush3.bf16.msra.mxu0 %v1899_v9  ;;  %v1882_v60 = vpack.c.bf16 %v1879_v58, %v1878_v57  ;;  %v3408_v57 = vld [vmem:[#allocation15 + $0x44] ss:$8 sps:$4 sm:$0xff]   ;;  %v3406_v58 = vld [vmem:[#allocation15 + $0x40] ss:$8 sps:$4 sm:$0xff]   ;;  %v3411_v59 = vld [vmem:[#allocation15 + $0x54] ss:$8 sps:$4 sm:$0xff]  }
 0xcf6   : > { %3153 = vmatprep.subr.bf16.mxu0 %v3386_v1 }
 0xcf7   : > { %3149 = vmatprep.mubr.msk.bf16.mxu0 %vm1197_vm1, %v1882_v60  ;;  %2278 = vmatpush1.bf16.msra.mxu1 %v3397_v49  ;;  %v3409_v60 = vld [vmem:[#allocation15 + $0x50] ss:$8 sps:$4 sm:$0xff]  }
 0xcf8   : > { %3150 = vmatmul.mubr.msk.bf16.vlgmr.msra.gmra.mrb[12].mxu0 %vm1197_vm1, %v1883_v61  ;;  %2279 = vmatprep.subr.bf16.mxu1 %v3402_v63  ;;  %v3414_v61 = vld [vmem:[#allocation15 + $0x64] ss:$8 sps:$4 sm:$0xff]   ;;  %v2183_v63 = vld [vmem:[%s4737_s10] sm:$0x3]  ;;  %s2918_s10 = sshll.u32 %s3839_s25, 3 }
 0xcf9   : > { %3154 = vmatpush3.bf16.msra.mxu0 %v3386_v1  ;;  %v3412_v1 = vld [vmem:[#allocation15 + $0x60] ss:$8 sps:$4 sm:$0xff]   ;;  %s2623_s13 = sadd.s32 %s2918_s10, %s2917_s20 }
 0xcfa   : > { %3155 = vmatprep.subr.bf16.mxu0 %v3387_v2  ;;  %s2919_s1 = sshll.u32 %s2623_s13, 6 }
 0xcfb   : > { %2280 = vmatpush1.bf16.msra.mxu1 %v3400_v55  ;;  %s4604_s25 = scalar_lea.hbm %s4741_s24, %s2919_s1 }
 0xcfc   : > { %2281 = vmatprep.subr.bf16.mxu1 %v3405_v56 }
 0xcfd   : > { %3156 = vmatpush3.bf16.msra.mxu0 %v3387_v2  ;;  %v3417_v2 = vld [vmem:[#allocation15 + $0x74] ss:$8 sps:$4 sm:$0xff]  }
 0xcfe   : > { %3157 = vmatprep.subr.bf16.mxu0 %v3388_v3 }
 0xcff   : > { %2282 = vmatpush1.bf16.msra.mxu1 %v3403_v62 }
 0xd00   : > { %2283 = vmatprep.subr.bf16.mxu1 %v3408_v57 }
 0xd01   : > { %3158 = vmatpush3.bf16.msra.mxu0 %v3388_v3  ;;  %v3415_v3 = vld [vmem:[#allocation15 + $0x70] ss:$8 sps:$4 sm:$0xff]  }
 0xd02   : > { %3159 = vmatprep.subr.bf16.mxu0 %v3389_v4 }
 0xd03   : > { %2284 = vmatpush1.bf16.msra.mxu1 %v3406_v58 }
 0xd04   : > { %2285 = vmatprep.subr.bf16.mxu1 %v3411_v59 }
 0xd05   : > { %3160 = vmatpush3.bf16.msra.mxu0 %v3389_v4  ;;  %v3869_v4 = vmov 0  }
 0xd06   : > { %3161 = vmatprep.subr.bf16.mxu0 %v3390_v5  ;;  %2307 = vmatprep.mubr.bf16.mxu1 %v3869_v4 }
 0xd07   : > { %2286 = vmatpush1.bf16.msra.mxu1 %v3409_v60 }
 0xd08   : > { %2287 = vmatprep.subr.bf16.mxu1 %v3414_v61 }
 0xd09   : > { %3162 = vmatpush3.bf16.msra.mxu0 %v3390_v5  ;;  %v3418_v5 = vld [vmem:[#allocation16 + $0x40] sm:$0xff]  }
 0xd0a   : > { %3163 = vmatprep.subr.bf16.mxu0 %v3391_v6 }
 0xd0b   : > { %2288 = vmatpush1.bf16.msra.mxu1 %v3412_v1 }
 0xd0c   : > { %2289 = vmatprep.subr.bf16.mxu1 %v3417_v2 }
 0xd0d   : > { %3164 = vmatpush3.bf16.msra.mxu0 %v3391_v6  ;;  %v3419_v6 = vld [vmem:[#allocation16] sm:$0xff]  }
 0xd0e   : > { %3165 = vmatprep.subr.bf16.mxu0 %v3392_v13 }
 0xd0f   : > { %2290 = vmatpush1.bf16.msra.mxu1 %v3415_v3 }
 0xd11   : > { %3166 = vmatpush3.bf16.msra.mxu0 %v3392_v13  ;;  %v3420_v13 = vld [vmem:[#allocation16 + $0x48] sm:$0xff]  }
 0xd12   : > { %3167 = vmatprep.subr.bf16.mxu0 %v3393_v14 }
 0xd15   : > { %3168 = vmatpush3.bf16.msra.mxu0 %v3393_v14  ;;  %v3421_v14 = vld [vmem:[#allocation16 + $0x8] sm:$0xff]  }
 0xd16   : > { %3009 = vmatprep.subr.bf16.mxu0 %v3418_v5 }
 0xdcb   : > { %v3151_v15 = vpop.f32.mrb[12].mxu0 }
 0xdcc   : > { %v1944_v16 = vpop.f32.mrb[13].mxu0 }
 0xdcd   : > { %v3152_v0 = vpop.f32.mrb[14].mxu0 }
 0xdce   : > { %v1960_v17 = vpack.c.bf16 %v3152_v0, %v3151_v15  ;;  %v1947_v18 = vpop.f32.mrb[15].mxu0  ;;  %v3422_v15 = vld [vmem:[#allocation16 + $0x50] sm:$0xff]   ;;  %v3424_v0 = vld [vmem:[#allocation16 + $0x58] sm:$0xff]  }
 0xdcf   : > { %v1959_v19 = vpack.c.bf16 %v1947_v18, %v1944_v16  ;;  %v3423_v16 = vld [vmem:[#allocation16 + $0x10] sm:$0xff]   ;;  %v3426_v18 = vld [vmem:[#allocation16 + $0x60] sm:$0xff]  }
 0xdd0   : > { %1965 = vrot.lane.b32.xlu1 %v1960_v17, %s3866_s30  ;;  %v3425_v17 = vld [vmem:[#allocation16 + $0x18] sm:$0xff]  }
 0xdd1   : > { %1963 = vrot.lane.b32.xlu0 %v1959_v19, %s3866_s30  ;;  %v3427_v19 = vld [vmem:[#allocation16 + $0x20] sm:$0xff]   ;;  %s4740_s30 = sld [smem:[#allocation46_spill]] }
 0xe42   : > { %v1966_v20 = vpop.permute.xlu1 %1965 }
 0xe43   : > { %1971 = vst.msk [vmem:[#allocation4 + $0x8] sm:$0xff] %vm1969_vm4, %v1966_v20  ;;  %v1964_v21 = vpop.permute.xlu0 %1963  ;;  %v3428_v20 = vld [vmem:[#allocation16 + $0x68] sm:$0xff]  }
 0xe44   : > { %1970 = vst.msk [vmem:[#allocation4] sm:$0xff] %vm1969_vm4, %v1964_v21 }
 0xe4a   : > { %v1973_v23 = vld [vmem:[#allocation4 + $0x8] sm:$0xff] }
 0xe4b   : > { %v1972_v22 = vld [vmem:[#allocation4] sm:$0xff] }
 0xe4c   : > { %3169 = vmatprep.mubr.bf16.mxu0 %v1972_v22 }
 0xe4d   : > { %3170 = vmatmul.mubr.bf16.vlgmr.msra.gmra.mrb[16].mxu0 %v1973_v23 }
 0xe4e   : > { %3010 = vmatpush3.bf16.msra.mxu0 %v3419_v6 }
 0xe4f   : > { %3011 = vmatprep.subr.bf16.mxu0 %v3420_v13 }
 0xe52   : > { %3012 = vmatpush3.bf16.msra.mxu0 %v3421_v14 }
 0xe53   : > { %3013 = vmatprep.subr.bf16.mxu0 %v3422_v15 }
 0xe56   : > { %3014 = vmatpush3.bf16.msra.mxu0 %v3423_v16 }
 0xe57   : > { %3015 = vmatprep.subr.bf16.mxu0 %v3424_v0 }
 0xe5a   : > { %3016 = vmatpush3.bf16.msra.mxu0 %v3425_v17 }
 0xe5b   : > { %3017 = vmatprep.subr.bf16.mxu0 %v3426_v18 }
 0xe5e   : > { %3018 = vmatpush3.bf16.msra.mxu0 %v3427_v19 }
 0xe5f   : > { %3019 = vmatprep.subr.bf16.mxu0 %v3428_v20 }
 0xf20   : > { %v3171_v25 = vpop.f32.mrb[16].mxu0 }
 0xf21   : > { %v2079_v28 = vpop.f32.mrb[17].mxu0  ;;  %v2088_v34 = vadd.f32 %v3171_v25, %v2866_v26 }
 0xf22   : > { %v2080_v29 = vadd.f32 %v2866_v26, %v2079_v28  ;;  %v3172_v32 = vpop.f32.mrb[18].mxu0 }
 0xf23   : > { %v2082_v33 = vpop.f32.mrb[19].mxu0  ;;  %v2091_v42 = vadd.f32 %v3172_v32, %v2866_v26  ;;  %v2096_v45 = vadd.f32 %v3516_v44, %v2088_v34 }
 0xf24   : > { %v2083_v35 = vadd.f32 %v2866_v26, %v2082_v33  ;;  %v2094_v37 = vadd.f32 %v3514_v36, %v2080_v29 }
 0xf25   : > { %v2097_v27 = vadd.f32 %v3517_v46, %v2091_v42 }
 0xf26   : > { %2100 = vadd.xlane.f32.xlu0 %v2094_v37  ;;  %v2095_v40 = vadd.f32 %v3515_v39, %v2083_v35  ;;  %v2875_v39 = vld [vmem:[%s4735_s29] ss:$0 sm:$0xff] }
 0xf28   : > { %2102 = vadd.xlane.f32.xlu1 %v2095_v40 }
 0xf2a   : > { %2104 = vadd.xlane.f32.xlu0 %v2096_v45 }
 0xf2e   : > { %2106 = vadd.xlane.f32.xlu0 %v2097_v27 }
 0xfb3   : > { %v2101_v50 = vpop.xlane.xlu0 %2100 }
 0xfb4   : > { %v2109_v52 = vmul.f32 0.0078125, %v2101_v50 }
 0xfb5   : > { %v2103_v53 = vpop.xlane.xlu1 %2102 }
 0xfb6   : > { %v4537_v38 = vsub.f32 %v2094_v37, %v2109_v52  ;;  %v2110_v41 = vmul.f32 0.0078125, %v2103_v53 }
 0xfb7   : > { %v2105_v31 = vpop.xlane.xlu0 %2104 }
 0xfb8   : > { %v4539_v54 = vsub.f32 %v2095_v40, %v2110_v41  ;;  %v2111_v43 = vmul.f32 0.0078125, %v2105_v31  ;;  %v2117_v24 = vmul.f32 %v4537_v38, %v4537_v38 }
 0xfba   : > { %v4543_v7 = vsub.f32 %v2096_v45, %v2111_v43  ;;  %2121 = vadd.xlane.f32.xlu0 %v2117_v24  ;;  %v2118_v8 = vmul.f32 %v4539_v54, %v4539_v54  ;;  %v3429_v24 = vld [vmem:[#allocation16 + $0x28] sm:$0xff]  }
 0xfbb   : > { %v2107_v9 = vpop.xlane.xlu0 %2106  ;;  %3020 = vmatpush3.bf16.msra.mxu0 %v3429_v24 }
 0xfbc   : > { %v2112_v10 = vmul.f32 0.0078125, %v2107_v9  ;;  %2123 = vadd.xlane.f32.xlu1 %v2118_v8  ;;  %v2119_v11 = vmul.f32 %v4543_v7, %v4543_v7  ;;  %v3431_v8 = vld [vmem:[#allocation16 + $0x30] sm:$0xff]   ;;  %v3432_v9 = vld [vmem:[#allocation16 + $0x78] sm:$0xff]  }
 0xfbe   : > { %v4549_v12 = vsub.f32 %v2097_v27, %v2112_v10  ;;  %2125 = vadd.xlane.f32.xlu0 %v2119_v11  ;;  %v2876_v27 = vld [vmem:[%s4736_s17] ss:$0 sm:$0xff]  ;;  %v3433_v10 = vld [vmem:[#allocation16 + $0x38] sm:$0xff]   ;;  %v2185_v11 = vlaneseq }
 0xfc0   : > { %v2120_v51 = vmul.f32 %v4549_v12, %v4549_v12 }
 0xfc2   : > { %2127 = vadd.xlane.f32.xlu1 %v2120_v51 }
0x1047   : > { %v2122_v21 = vpop.xlane.xlu0 %2121 }
0x1048   : > { %v2129_v22 = vmul.f32 0.0078125, %v2122_v21 }
0x1049   : > { %v2124_v23 = vpop.xlane.xlu1 %2123 }
0x104a   : > { %v2133_v26 = vadd.f32 1e-05, %v2129_v22  ;;  %v2130_v25 = vmul.f32 0.0078125, %v2124_v23 }
0x104b   : > { %v2126_v28 = vpop.xlane.xlu0 %2125 }
0x104c   : > { %3498 = vrsqrt.f32 %v2133_v26  ;;  %v2134_v29 = vadd.f32 1e-05, %v2130_v25  ;;  %v2131_v32 = vmul.f32 0.0078125, %v2126_v28 }
0x104e   : > { %3500 = vrsqrt.f32 %v2134_v29  ;;  %v2135_v33 = vadd.f32 1e-05, %v2131_v32  ;;  %v2893_v29 = vld [vmem:[%s4738_s14] ss:$0 sm:$0xff]  ;;  %s2626_s14 = sshll.u32 %s4261_s0, 4  ;;  %s4606_s14 = int_to_ptr.vmem [resolvable:$true] %s2626_s14 }
0x104f   : > { %v2128_v34 = vpop.xlane.xlu1 %2127  ;;  %s3737_s17 = scalar_lea.vmem %s4606_s14, 256 }
0x1050   : > { %3502 = vrsqrt.f32 %v2135_v33  ;;  %v2132_v35 = vmul.f32 0.0078125, %v2128_v34  ;;  %p3738_p0 = scmp.ne.s32.totalorder %s4606_s14, %s3737_s17 }
0x1052   : > { %v2136_v36 = vadd.f32 1e-05, %v2132_v35  ;;  %p3739_p6 = pnand %p3738_p0, %p4743_p3 }
0x1054   : > { %3504 = vrsqrt.f32 %v2136_v36  ;;  %p3740_p4 = pneg %p3739_p6 }
0x1056   : > { %v3499_v37 = vpop.eup %3498 }
0x1057   : > { %v2141_v40 = vmul.f32 %v3499_v37, %v4537_v38 }
0x1058   : > { %v3501_v42 = vpop.eup %3500 }
0x1059   : > { %v2142_v44 = vmul.f32 %v3501_v42, %v4539_v54  ;;  %v2151_v45 = vmul.f32 %v2875_v39, %v2141_v40 }
0x105a   : > { %v3503_v46 = vpop.eup %3502 }
0x105b   : > { %v2152_v47 = vmul.f32 %v2875_v39, %v2142_v44  ;;  %v4562_v30 = vadd.f32 %v2876_v27, %v2151_v45  ;;  %v2143_v49 = vmul.f32 %v3503_v46, %v4543_v7  ;;  %v3430_v7 = vld [vmem:[#allocation16 + $0x70] sm:$0xff]  }
0x105c   : > { %3021 = vmatprep.subr.bf16.mxu0 %v3430_v7 }
0x105d   : > { %v4564_v48 = vadd.f32 %v2876_v27, %v2152_v47  ;;  %v2153_v38 = vmul.f32 %v2875_v39, %v2143_v49  ;;  %3022 = vmatpush3.bf16.msra.mxu0 %v3431_v8 }
0x105e   : > { %v3505_v50 = vpop.eup %3504  ;;  %3023 = vmatprep.subr.bf16.mxu0 %v3432_v9 }
0x105f   : > { %v2165_v52 = vpack.c.bf16 %v4564_v48, %v4562_v30  ;;  %v2144_v53 = vmul.f32 %v3505_v50, %v4549_v12  ;;  %v4573_v54 = vadd.f32 %v2876_v27, %v2153_v38  ;;  %v2186_v12 = vshrl.u32 %v2185_v11, 7 }
0x1061   : > { %2308 = vmatmul.mubr.bf16.vlgmr.msra.gmra.mrb[20].mxu1 %v2165_v52  ;;  %v2154_v41 = vmul.f32 %v2875_v39, %v2144_v53  ;;  %3024 = vmatpush3.bf16.msra.mxu0 %v3433_v10  ;;  %v2187_v51 = vsub.s32 0, %v2186_v12  ;;  %v2191_v55 = vsub.s32 1, %v2186_v12 }
0x1062   : > { %2317 = vmatprep.mubr.bf16.mxu1 %v3869_v4 }
0x1063   : > { %v4571_v31 = vadd.f32 %v2876_v27, %v2154_v41  ;;  %v2188_v56 = vrot.slane %v2183_v63, %v2187_v51  ;;  %v2192_v57 = vrot.slane %v2183_v63, %v2191_v55 }
0x1065   : > { %v2166_v43 = vpack.c.bf16 %v4571_v31, %v4573_v54 }
0x1069   : > { %2318 = vmatmul.mubr.bf16.gmra.mrb[24].mxu1 %v2166_v43 }
0x1134   : > { %v2309_v62 = vpop.f32.mrb[20].mxu1 }
0x1135   : > { %v2311_v58 = vpop.f32.mrb[21].mxu1  ;;  %v2310_v60 = vadd.f32 %v2309_v62, %v2188_v56 }
0x1136   : > { %v2313_v59 = vpop.f32.mrb[22].mxu1  ;;  %v2312_v2 = vadd.f32 %v2311_v58, %v2192_v57 }
0x1137   : > { %v2314_v61 = vadd.f32 %v2313_v59, %v2188_v56  ;;  %v2315_v1 = vpop.f32.mrb[23].mxu1 }
0x1138   : > { %v2316_v3 = vadd.f32 %v2315_v1, %v2192_v57 }
0x1139   : > { %v2328_v5 = vpack.c.bf16 %v2314_v61, %v2310_v60 }
0x113a   : > { %v2329_v6 = vpack.c.bf16 %v2316_v3, %v2312_v2 }
0x113b   : > { %v2332_v15 = vmax.bf16 %v3869_v4, %v2328_v5 }
0x113c   : > { %v2319_v13 = vpop.f32.mrb[24].mxu1  ;;  %v2333_v14 = vmax.bf16 %v3869_v4, %v2329_v6 }
0x113d   : > { %v2321_v16 = vpop.f32.mrb[25].mxu1  ;;  %v2320_v17 = vadd.f32 %v2319_v13, %v2188_v56  ;;  %v2910_v13 = vld [vmem:[%s4739_s5] ss:$0 sm:$0xff]  ;;  %s4742_s5 = smov %s4741_s24 }
0x113e   : > { %v2323_v0 = vpop.f32.mrb[26].mxu1  ;;  %2503 = vmatprep.mubr.bf16.mxu0 %v2333_v14  ;;  %v2322_v20 = vadd.f32 %v2321_v16, %v2192_v57 }
0x113f   : > { %v2324_v18 = vadd.f32 %v2323_v0, %v2188_v56  ;;  %v2325_v19 = vpop.f32.mrb[27].mxu1  ;;  %2504 = vmatmul.mubr.bf16.vlgmr.msra.gmra.mrb[20].mxu0 %v2332_v15 }
0x1140   : > { %v2326_v21 = vadd.f32 %v2325_v19, %v2192_v57 }
0x1141   : > { %v2330_v22 = vpack.c.bf16 %v2324_v18, %v2320_v17  ;;  %v2911_v17 = vld [vmem:[%s4740_s30] ss:$0 sm:$0xff]  ;;  %s3870_s30 = smov [#allocation18]  }
0x1142   : > { %v2331_v23 = vpack.c.bf16 %v2326_v21, %v2322_v20  ;;  %s3741_s20 = sshll.u32 %s3870_s30, 4  ;;  %s3742_s20 = int_to_ptr.vmem [resolvable:$false] %s3741_s20 }
0x1143   : > { %v2334_v25 = vmax.bf16 %v3869_v4, %v2330_v22  ;;  %s3743_s10 = scalar_lea.vmem %s3742_s20, 512  ;;  %p3744_p8 = scmp.lt.s32.totalorder %s4606_s14, %s3742_s20 }
0x1144   : > { %v2335_v26 = vmax.bf16 %v3869_v4, %v2331_v23  ;;  %p3745_p7 = scmp.lt.s32.totalorder %s3743_s10, %s3737_s17 }
0x1146   : > { %2511 = vmatprep.mubr.bf16.mxu0 %v2335_v26  ;;  %p3746_p5 = por %p3745_p7, %p3744_p8 }
0x1147   : > { %2512 = vmatmul.mubr.bf16.gmra.mrb[24].mxu0 %v2334_v25 }
0x1148   : > { %p3747_p2 = pnand %p3746_p5, %p3740_p4 }
0x1212   : > { %v3025_v28 = vpop.f32.mrb[20].mxu0 }
0x1213   : > { %v3026_v32 = vpop.f32.mrb[21].mxu0 }
0x1214   : > { %v3027_v33 = vadd.f32 %v3026_v32, %v3025_v28  ;;  %v3028_v34 = vpop.f32.mrb[22].mxu0 }
0x1215   : > { %v3029_v35 = vpop.f32.mrb[23].mxu0 }
0x1216   : > { %v2506_v36 = vadd.f32 %v3027_v33, %v2893_v29  ;;  %v3030_v37 = vadd.f32 %v3029_v35, %v3028_v34 }
0x1218   : > { %v2509_v39 = vadd.f32 %v3030_v37, %v2893_v29  ;;  %v2520_v40 = vadd.f32 %v2506_v36, %v4562_v30 }
0x121a   : > { %2526 = vadd.xlane.f32.xlu0 %v2520_v40  ;;  %v3031_v42 = vpop.f32.mrb[24].mxu0  ;;  %v2521_v4 = vadd.f32 %v2509_v39, %v4564_v48 }
0x121b   : > { %v3032_v44 = vpop.f32.mrb[25].mxu0 }
0x121c   : > { %v3033_v45 = vadd.f32 %v3032_v44, %v3031_v42  ;;  %2528 = vadd.xlane.f32.xlu1 %v2521_v4  ;;  %v3034_v46 = vpop.f32.mrb[26].mxu0 }
0x121d   : > { %v3035_v27 = vpop.f32.mrb[27].mxu0 }
0x121e   : > { %v2514_v47 = vadd.f32 %v3033_v45, %v2893_v29  ;;  %v3036_v49 = vadd.f32 %v3035_v27, %v3034_v46 }
0x1220   : > { %v2517_v50 = vadd.f32 %v3036_v49, %v2893_v29  ;;  %v2522_v52 = vadd.f32 %v2514_v47, %v4573_v54 }
0x1222   : > { %2530 = vadd.xlane.f32.xlu0 %v2522_v52  ;;  %v2523_v53 = vadd.f32 %v2517_v50, %v4571_v31 }
0x1224   : > { %2532 = vadd.xlane.f32.xlu1 %v2523_v53 }
0x12a7   : > { %v2527_v38 = vpop.xlane.xlu0 %2526 }
0x12a8   : > { %v2534_v30 = vmul.f32 0.0078125, %v2527_v38 }
0x12a9   : > { %v2529_v41 = vpop.xlane.xlu1 %2528 }
0x12aa   : > { %v2538_v43 = vsub.f32 %v2520_v40, %v2534_v30  ;;  %v2535_v24 = vmul.f32 0.0078125, %v2529_v41 }
0x12ac   : > { %v2539_v48 = vsub.f32 %v2521_v4, %v2535_v24  ;;  %v2542_v7 = vmul.f32 %v2538_v43, %v2538_v43 }
0x12ae   : > { %2546 = vadd.xlane.f32.xlu0 %v2542_v7  ;;  %v2543_v8 = vmul.f32 %v2539_v48, %v2539_v48 }
0x12af   : > { %v2531_v9 = vpop.xlane.xlu0 %2530 }
0x12b0   : > { %v2536_v10 = vmul.f32 0.0078125, %v2531_v9  ;;  %2548 = vadd.xlane.f32.xlu1 %v2543_v8 }
0x12b1   : > { %v2533_v11 = vpop.xlane.xlu1 %2532 }
0x12b2   : > { %v2540_v12 = vsub.f32 %v2522_v52, %v2536_v10  ;;  %v2537_v51 = vmul.f32 0.0078125, %v2533_v11 }
0x12b4   : > { %v2541_v54 = vsub.f32 %v2523_v53, %v2537_v51  ;;  %v2544_v63 = vmul.f32 %v2540_v12, %v2540_v12 }
0x12b6   : > { %2550 = vadd.xlane.f32.xlu0 %v2544_v63  ;;  %v2545_v31 = vmul.f32 %v2541_v54, %v2541_v54 }
0x12b8   : > { %2552 = vadd.xlane.f32.xlu1 %v2545_v31 }
0x133b   : > { %v2547_v55 = vpop.xlane.xlu0 %2546 }
0x133c   : > { %v2554_v56 = vmul.f32 0.0078125, %v2547_v55 }
0x133d   : > { %v2549_v62 = vpop.xlane.xlu1 %2548 }
0x133e   : > { %v2558_v57 = vadd.f32 1e-05, %v2554_v56  ;;  %v2555_v58 = vmul.f32 0.0078125, %v2549_v62 }
0x1340   : > { %3506 = vrsqrt.f32 %v2558_v57  ;;  %v2559_v59 = vadd.f32 1e-05, %v2555_v58 }
0x1342   : > { %3508 = vrsqrt.f32 %v2559_v59 }
0x1343   : > { %v2551_v60 = vpop.xlane.xlu0 %2550 }
0x1344   : > { %v2556_v61 = vmul.f32 0.0078125, %v2551_v60 }
0x1345   : > { %v2553_v1 = vpop.xlane.xlu1 %2552 }
0x1346   : > { %v2560_v2 = vadd.f32 1e-05, %v2556_v61  ;;  %v2557_v3 = vmul.f32 0.0078125, %v2553_v1 }
0x1348   : > { %3510 = vrsqrt.f32 %v2560_v2  ;;  %v2561_v5 = vadd.f32 1e-05, %v2557_v3 }
0x134a   : > { %v3507_v6 = vpop.eup %3506  ;;  %3512 = vrsqrt.f32 %v2561_v5 }
0x134b   : > { %v2566_v14 = vmul.f32 %v3507_v6, %v2538_v43 }
0x134c   : > { %v3509_v15 = vpop.eup %3508 }
0x134d   : > { %v2576_v16 = vmul.f32 %v2910_v13, %v2566_v14  ;;  %v2567_v0 = vmul.f32 %v3509_v15, %v2539_v48 }
0x134f   : > { %v2577_v18 = vmul.f32 %v2910_v13, %v2567_v0  ;;  %v2586_v19 = vadd.f32 %v2911_v17, %v2576_v16 }
0x1351   : > { %v2587_v20 = vadd.f32 %v2911_v17, %v2577_v18 }
0x1352   : > { %v3511_v21 = vpop.eup %3510 }
0x1353   : > { %v2568_v22 = vmul.f32 %v3511_v21, %v2540_v12  ;;  %v2933_v23 = vpack.c.bf16 %v2587_v20, %v2586_v19 }
0x1354   : > { %v3513_v26 = vpop.eup %3512 }
0x1355   : > { %v2578_v25 = vmul.f32 %v2910_v13, %v2568_v22  ;;  %v2569_v28 = vmul.f32 %v3513_v26, %v2541_v54  ;;  %2934 = vst [vmem:[%s4261_s0] sm:$0xff] %v2933_v23  }
0x1357   : > { %v2579_v29 = vmul.f32 %v2910_v13, %v2569_v28  ;;  %v2588_v32 = vadd.f32 %v2911_v17, %v2578_v25 }
0x1359   : > { %v2589_v33 = vadd.f32 %v2911_v17, %v2579_v29 }
0x135b   : > { %v2938_v34 = vpack.c.bf16 %v2589_v33, %v2588_v32 }
0x135d   : > { %2940 = vst [vmem:[%s4261_s0 + $0x8] sm:$0xff] %v2938_v34  }
0x135e   : > { %3750 = shalt.err (!%p3747_p2)
}
0x135f   : > { %s3751_s0 = scalar_lea.hbm %s4604_s25, 256  ;;  %s3755_s4 = scalar_lea.hbm %s4742_s5, 1024 }
0x1360   : > { %p3752_p9 = scmp.ne.s32.totalorder %s4604_s25, %s3751_s0  ;;  %p3756_p11 = scmp.lt.u32.totalorder %s4604_s25, %s4742_s5 }
0x1361   : > { %p3757_p12 = scmp.lt.u32.totalorder %s3755_s4, %s3751_s0  ;;  %p3759_p0 = scmp.lt.u32.totalorder %s3751_s0, %s4604_s25 }
0x1362   : > { %p3753_p10 = pnand %p3752_p9, %p4743_p3 }
0x1363   : > { %p3758_p13 = por %p3757_p12, %p3756_p11 }
0x1364   : > { %p3754_p1 = pneg %p3753_p10 }
0x1365   : > { %p3760_p6 = por %p3759_p0, %p3758_p13 }
0x1367   : > { %p3761_p4 = pnand %p3760_p6, %p3754_p1 }
0x1369   : > { %3764 = shalt.err (!%p3761_p4)
}
0x136a   : > { %s3871_s17 = smov 4  }
0x136b   : > { %3211 = dma.vmem_to_hbm [thread:$0]  (%p4743_p3), %s4606_s14, 256, %s4604_s25, %s2611_s11, %s3867_s3, %s3867_s3, %s3871_s17  }
0x136c PF: > { %p3248_p8 = scmp.ge.s32.totalorder %s3851_s28, 2  ;;  %s2641_s30 = sand.u32 1, %s3823_s21  }
0x136d   : > { %p4744_p7 = scmp.ne.s32.totalorder %s4724_s16, 0  ;;  %s2642_s20 = scalar_lea.sflag [#allocation9], %s2641_s30 }
0x136f   : > { %p3234_p5 = pnand %p3248_p8, %p4744_p7 }
0x1371   : > { %3818 = dma.done.wait (!%p3234_p5), %s2642_s20, 256  }
0x1372   : > { %3820 = vsyncadd (!%p3234_p5), %s2642_s20, 4294967040  ;;  %s35_s28 = sadd.s32 1, %s3851_s28   ;;  %s4745_s21 = smov %s3827_s22 }
0x1373   : > { %p32_p2 = scmp.ge.s32.totalorder %s35_s28, 6   ;;  %s4746_s22 = smov %s3831_s23 }
0x1374   : > { %s4747_s23 = smov %s4187_s15  ;;  %s4748_s24 = smov %s3843_s26 }
0x1375   : > { %s4749_s25 = smov %s3847_s27  ;;  %s4750_s26 = smov %s4753_s19 }
0x1376   : > { %s4751_s27 = smov %s4757_s6  ;;  %34 = sbr.rel (!%p32_p2) target bundleno = 27 (0x1b), region = 162 }
0x137d   :  { %2647 = vsyncpa [#allocation8], 1 }
0x137e   :  { %2649 = vsyncpa [#allocation8 + $0x1], 1 }
0x137f   :  { %2650 = vsyncpa [#allocation11], 1 }
0x1380   :  { %2651 = vsyncpa [#allocation14], 1 }
0x1381   :  { %2652 = vsyncpa [#allocation17], 1 }
0x1382   :  { %2653 = vsyncpa [#allocation9], 1 }
0x1383   :  { %2655 = vsyncpa [#allocation9 + $0x1], 1 }
0x1384   :  { %2656 = vsyncmov [#allocation6] }
0x1387   :  { %s2657_s7 = vpop.sfrf %2656 }
0x1388   :  { %p2922_p3 = scmp.ne.s32.totalorder %s2657_s7, 0 }
0x138a   :  { %2661 = shalt.err (%p2922_p3)  }
0x138b   :  { %2663 = vsyncmov [#allocation6 + $0x1] }
0x138e   :  { %s2664_s16 = vpop.sfrf %2663 }
0x138f   :  { %p2923_p9 = scmp.ne.s32.totalorder %s2664_s16, 0 }
0x1391   :  { %2668 = shalt.err (%p2923_p9)  }

</bundles_post_ra>
